<compile_context>
chip_gen: v5e
topology: v5e:2x2
jax: 0.10.0
libtpu: 0.0.40
codegen_flags: <defaults>
</compile_context>

<pallas_src>
import functools

import jax
import jax.numpy as jnp
from jax.experimental import pallas as pl
from jax.experimental.pallas import tpu as pltpu

NUM_GROUPS = 8   # nn.GroupNorm(8, ch_out)
EPS = 1e-5       # PyTorch GroupNorm default eps


# --------------------- weight preprocessing (wrapper-side) ------------------ #
def _toeplitz_w(w, W):
    """Fold kw + the W zero-padding (padding=1) and kh into the contraction K axis.

    Returns (3, 3*W*Cin, W*Cout) with
      T[kd, kh*W*Cin + w_in*Cin + ci, w_out*Cout + co] = w[kd, kh, w_in - w_out + 1, ci, co]
    and 0 when (w_in - w_out + 1) is outside [0, 3) -- which implements the W padding.
    w: (3, 3, 3, Cin, Cout) cross-correlation weights (DHWIO).
    """
    Cin, Cout = w.shape[3], w.shape[4]
    kw = jnp.arange(W)[:, None] - jnp.arange(W)[None, :] + 1        # (W_in, W_out)
    valid = (kw >= 0) & (kw <= 2)
    taps = w[:, :, jnp.clip(kw, 0, 2)]                              # (3,3,W_in,W_out,Cin,Cout)
    taps = jnp.where(valid[None, None, :, :, None, None], taps, 0.0)
    taps = jnp.transpose(taps, (0, 1, 2, 4, 3, 5))                  # (3,3,W_in,Cin,W_out,Cout)
    return taps.reshape(3, 3 * W * Cin, W * Cout)


# -------------------- fused Conv3d + bias + GN + ReLU kernel ---------------- #
def _fused_conv_gn_relu_kernel(x_ref, tw_ref, bgb_ref, gfwd_ref, gbwd_ref,
                               o_ref, ls_ref, *, nb, H):
    # x_ref   : (D, nb*H, W*Cin)      bf16  activation block; block rows = (sample, h)
    # tw_ref  : (3, 3*W*Cin, W*Cout)  bf16  block-Toeplitz weights (kh, kw, W-padding folded)
    # bgb_ref : (3, W*Cout)           f32   rows = conv bias / GN gamma / GN beta (lane-tiled)
    # gfwd_ref: (W*Cout, 8)           f32   lane -> group one-hot / per-group element count
    # gbwd_ref: (8, W*Cout)           f32   group -> lane one-hot (broadcast stats back)
    # o_ref   : (D, nb*H, W*Cout)           output block (bf16 inter-layer, f32 final)
    # ls_ref  : (D+2, nb*H, 3*W*Cin)  bf16  scratch: D/H-zero-padded, kh-stacked LHS
    D, nbH, WCin = x_ref.shape
    WCout = o_ref.shape[-1]
    dt = ls_ref.dtype

    # ---- halo only: the interior is fully overwritten below, so no full-scratch zeroing.
    ls_ref[0:1] = jnp.zeros((1, nbH, 3 * WCin), dt)                 # d = -1 plane
    ls_ref[D + 1:D + 2] = jnp.zeros((1, nbH, 3 * WCin), dt)         # d = D  plane
    zrow = jnp.zeros((D, 1, WCin), dt)
    for s in range(nb):                                             # per-sample H halo
        ls_ref[1:D + 1, s * H:s * H + 1, 0:WCin] = zrow                         # kh=0, h=-1
        ls_ref[1:D + 1, (s + 1) * H - 1:(s + 1) * H, 2 * WCin:3 * WCin] = zrow  # kh=2, h=H

    # ---- build the kh-stacked LHS (3 passes over the block; replaces 9 relayouts + the
    #      old separate padded-copy staging pass).
    xin = x_ref[...]                                                # (D, nb*H, W*Cin) bf16
    ls_ref[1:D + 1, :, WCin:2 * WCin] = xin                         # kh = 1 (center)
    for s in range(nb):
        lo, hi = s * H, (s + 1) * H
        ls_ref[1:D + 1, lo + 1:hi, 0:WCin] = xin[:, lo:hi - 1, :]               # kh = 0
        ls_ref[1:D + 1, lo:hi - 1, 2 * WCin:3 * WCin] = xin[:, lo + 1:hi, :]    # kh = 2

    # ---- Conv3d: 3 MXU matmuls (one per kd), K = 3*W*Cin, M = nb*D*H, f32 accumulation.
    M = D * nbH
    acc = jnp.zeros((M, WCout), jnp.float32)
    for kd in range(3):
        lhs = ls_ref[kd:kd + D].reshape(M, 3 * WCin)                # aligned row window
        acc = acc + jnp.dot(lhs, tw_ref[kd], preferred_element_type=jnp.float32)
    acc = acc + bgb_ref[0:1, :]                                     # conv bias (per lane)

    # ---- GroupNorm (per sample, biased variance, PyTorch eps) + affine + ReLU.
    acc4 = acc.reshape(D, nb, H, WCout)
    s1 = jnp.sum(acc4, axis=(0, 2))                                 # (nb, W*Cout)
    s2 = jnp.sum(acc4 * acc4, axis=(0, 2))
    stats = jnp.concatenate([s1, s2], axis=0)                       # (2*nb, W*Cout)
    g = jnp.dot(stats, gfwd_ref[...], preferred_element_type=jnp.float32)   # (2*nb, 8)
    mean_g = g[0:nb]
    # One-pass E[x^2]-E[x]^2 in f32; fine at this tolerance (two-pass if tightened).
    rstd_g = jax.lax.rsqrt(g[nb:2 * nb] - mean_g * mean_g + EPS)    # (nb, 8)
    back = jnp.dot(jnp.concatenate([mean_g, rstd_g], axis=0), gbwd_ref[...],
                   preferred_element_type=jnp.float32)              # (2*nb, W*Cout)
    scale = back[nb:2 * nb] * bgb_ref[1:2, :]                       # rstd * gamma
    shift = bgb_ref[2:3, :] - back[0:nb] * scale                    # beta - mean * scale
    y = acc4 * scale[None, :, None, :] + shift[None, :, None, :]
    o_ref[...] = jnp.maximum(y, 0.0).reshape(D, nbH, WCout).astype(o_ref.dtype)


def _pick_block_batch(N, D, H, target_rows=512):
    """Largest divisor of N with nb*D*H <= target_rows (MXU M occupancy vs VMEM)."""
    nb = 1
    for cand in range(1, N + 1):
        if N % cand == 0 and cand * D * H <= target_rows:
            nb = cand
    return nb


def fused_conv3d_gn_relu(x, w, b, gamma, beta, *, out_dtype=jnp.bfloat16):
    """One fused Conv3d(3x3x3, pad=1) + bias + GroupNorm(8) + ReLU layer.

    x: (D, N, H, W, Cin) channels-last activation (bf16 preferred).
    w: (3, 3, 3, Cin, Cout) DHWIO cross-correlation weights.
    Returns (D, N, H, W, Cout) in out_dtype.
    """
    D, N, H, W, Cin = x.shape
    Cout = w.shape[-1]
    assert w.shape == (3, 3, 3, Cin, Cout), w.shape
    assert Cout % NUM_GROUPS == 0, (Cout, NUM_GROUPS)
    WCin, WCout = W * Cin, W * Cout
    nb = _pick_block_batch(N, D, H)
    grid = (N // nb,)

    # Wrapper-side preprocessing (tiny, one-time).
    tw = _toeplitz_w(w, W).astype(jnp.bfloat16)                     # (3, 3*WCin, WCout)
    bgb = jnp.stack([jnp.tile(b, W), jnp.tile(gamma, W),
                     jnp.tile(beta, W)]).astype(jnp.float32)        # (3, WCout)
    grp = (jnp.arange(WCout) % Cout) // (Cout // NUM_GROUPS)
    onehot = (grp[:, None] == jnp.arange(NUM_GROUPS)[None, :]).astype(jnp.float32)
    count = D * H * WCout // NUM_GROUPS                             # elems per (sample, group)
    gfwd = onehot / count                                           # (WCout, 8)
    gbwd = onehot.T                                                 # (8, WCout)

    x2 = x.reshape(D, N * H, WCin).astype(jnp.bfloat16)             # free reshape (+ cast once)

    kernel = functools.partial(_fused_conv_gn_relu_kernel, nb=nb, H=H)
    cost = pl.CostEstimate(
        flops=2 * 27 * N * D * H * W * Cin * Cout + 10 * N * D * H * W * Cout,
        transcendentals=N * NUM_GROUPS,
        bytes_accessed=int(x2.size * x2.dtype.itemsize
                           + D * N * H * WCout * jnp.dtype(out_dtype).itemsize
                           + tw.size * 2))

    out = pl.pallas_call(
        kernel,
        out_shape=jax.ShapeDtypeStruct((D, N * H, WCout), out_dtype),
        grid=grid,
        in_specs=[
            pl.BlockSpec((D, nb * H, WCin), lambda i: (0, i, 0)),
            pl.BlockSpec((3, 3 * WCin, WCout), lambda i: (0, 0, 0)),
            pl.BlockSpec((3, WCout), lambda i: (0, 0)),
            pl.BlockSpec((WCout, NUM_GROUPS), lambda i: (0, 0)),
            pl.BlockSpec((NUM_GROUPS, WCout), lambda i: (0, 0)),
        ],
        out_specs=pl.BlockSpec((D, nb * H, WCout), lambda i: (0, i, 0)),
        scratch_shapes=[pltpu.VMEM((D + 2, nb * H, 3 * WCin), jnp.bfloat16)],
        compiler_params=pltpu.CompilerParams(
            dimension_semantics=("parallel",),
            vmem_limit_bytes=64 * 1024 * 1024),
        cost_estimate=cost,
    )(x2, tw, bgb, gfwd, gbwd)
    return out.reshape(D, N, H, W, Cout)


# ------------------------------ full module --------------------------------- #
def conv_block_3d(x_ncdhw, params):
    """conv_block_3D forward.  x_ncdhw: (N, C_in, D, H, W), PyTorch layout.

    params use PyTorch-native layouts: w*: (C_out, C_in, 3, 3, 3); b*/g*/be*: (C_out,).
    """
    w1 = jnp.transpose(params["w1"], (2, 3, 4, 1, 0))               # OIDHW -> DHWIO
    w2 = jnp.transpose(params["w2"], (2, 3, 4, 1, 0))
    # NCDHW <-> kernel-native channels-last only at the PyTorch boundary; the two fused
    # layers exchange the (D, N*H, W*C) bf16 activation directly (no extra round trip).
    x = jnp.transpose(x_ncdhw, (2, 0, 3, 4, 1)).astype(jnp.bfloat16)  # (D, N, H, W, Cin)
    x = fused_conv3d_gn_relu(x, w1, params["b1"], params["g1"], params["be1"],
                             out_dtype=jnp.bfloat16)                 # inter-layer act in bf16
    x = fused_conv3d_gn_relu(x, w2, params["b2"], params["g2"], params["be2"],
                             out_dtype=jnp.float32)                  # final output in f32
    return jnp.transpose(x, (1, 4, 0, 2, 3))                         # -> (N, C_out, D, H, W)


# --------------------------- pure-JAX reference ------------------------------ #
def _conv3d_ref(x, w, b):
    y = jax.lax.conv_general_dilated(
        x, w, window_strides=(1, 1, 1), padding="SAME",
        dimension_numbers=("NDHWC", "DHWIO", "NDHWC"),
        preferred_element_type=jnp.float32)
    return y + b


def _gn_relu_ref(x, gamma, beta):
    N, D, H, W, C = x.shape
    xg = x.reshape(N, D * H * W, NUM_GROUPS, C // NUM_GROUPS)
    m = xg.mean(axis=(1, 3), keepdims=True)
    v = ((xg - m) ** 2).mean(axis=(1, 3), keepdims=True)
    y = (xg - m) / jnp.sqrt(v + EPS)
    y = y.reshape(N, D, H, W, C) * gamma + beta
    return jnp.maximum(y, 0.0)


def conv_block_3d_ref(x_ncdhw, params):
    w1 = jnp.transpose(params["w1"], (2, 3, 4, 1, 0))
    w2 = jnp.transpose(params["w2"], (2, 3, 4, 1, 0))
    x = jnp.transpose(x_ncdhw, (0, 2, 3, 4, 1))
    x = _gn_relu_ref(_conv3d_ref(x, w1, params["b1"]), params["g1"], params["be1"])
    x = _gn_relu_ref(_conv3d_ref(x, w2, params["b2"]), params["g2"], params["be2"])
    return jnp.transpose(x, (0, 4, 1, 2, 3))


if __name__ == "__main__":
    key = jax.random.PRNGKey(0)
    N, Cin, Cout, D, H, W = 2, 8, 16, 8, 8, 8
    ks = jax.random.split(key, 9)
    x = jax.random.normal(ks[0], (N, Cin, D, H, W), jnp.float32)
    # PyTorch-native parameter layouts (Conv3d weight: (C_out, C_in, kD, kH, kW)).
    params = {
        "w1": 0.1 * jax.random.normal(ks[1], (Cout, Cin, 3, 3, 3), jnp.float32),
        "b1": 0.1 * jax.random.normal(ks[2], (Cout,), jnp.float32),
        "g1": 1.0 + 0.1 * jax.random.normal(ks[3], (Cout,), jnp.float32),
        "be1": 0.1 * jax.random.normal(ks[4], (Cout,), jnp.float32),
        "w2": 0.1 * jax.random.normal(ks[5], (Cout, Cout, 3, 3, 3), jnp.float32),
        "b2": 0.1 * jax.random.normal(ks[6], (Cout,), jnp.float32),
        "g2": 1.0 + 0.1 * jax.random.normal(ks[7], (Cout,), jnp.float32),
        "be2": 0.1 * jax.random.normal(ks[8], (Cout,), jnp.float32),
    }

    out = jax.block_until_ready(jax.jit(conv_block_3d)(x, params))
    assert out.shape == (N, Cout, D, H, W), out.shape

    ref = conv_block_3d_ref(x, params)
    err = jnp.abs(out - ref)
    max_err = float(jnp.max(err))
    mean_err = float(jnp.mean(err))
    # bf16 MXU inputs + bf16 inter-layer activation -> ~1% relative error on O(1-4) outputs.
    assert max_err < 1e-1 and mean_err < 1e-2, (max_err, mean_err)
    print("KERNEL_OK")
</pallas_src>

<mosaic_0001>
module attributes {stable_mosaic.version = 11 : i64} {
  func.func @_fused_conv_gn_relu_kernel(%arg0: i32, %arg1: memref<8x16x64xbf16, #tpu.memory_space<vmem>>, %arg2: memref<3x192x128xbf16, #tpu.memory_space<vmem>>, %arg3: memref<3x128xf32, #tpu.memory_space<vmem>>, %arg4: memref<128x8xf32, #tpu.memory_space<vmem>>, %arg5: memref<8x128xf32, #tpu.memory_space<vmem>>, %arg6: memref<8x16x128xbf16, #tpu.memory_space<vmem>>, %arg7: memref<10x16x192xbf16, #tpu.memory_space<vmem>>) attributes {dimension_semantics = [#tpu.dimension_semantics<parallel>], iteration_bounds = array<i64: 1>, scalar_prefetch = 0 : i64, scratch_operands = 1 : i64, tpu.core_type = #tpu.core_type<tc>, window_params = [{transform_indices = @transform_0, window_bounds = array<i64: 8, 16, 64>}, {pipeline_mode = #tpu.pipeline_mode<synchronous>, transform_indices = @transform_1, window_bounds = array<i64: 3, 192, 128>}, {pipeline_mode = #tpu.pipeline_mode<synchronous>, transform_indices = @transform_2, window_bounds = array<i64: 3, 128>}, {pipeline_mode = #tpu.pipeline_mode<synchronous>, transform_indices = @transform_3, window_bounds = array<i64: 128, 8>}, {pipeline_mode = #tpu.pipeline_mode<synchronous>, transform_indices = @transform_4, window_bounds = array<i64: 8, 128>}, {transform_indices = @transform_5, window_bounds = array<i64: 8, 16, 128>}]} {
    %cst = arith.constant 0.000000e+00 : bf16
    %0 = vector.broadcast %cst : bf16 to vector<1x16x192xbf16>
    %c0 = arith.constant 0 : index
    %c0_0 = arith.constant 0 : index
    %c0_1 = arith.constant 0 : index
    %1 = vector.load %arg7[%c0, %c0_0, %c0_1] : memref<10x16x192xbf16, #tpu.memory_space<vmem>>, vector<1x16x192xbf16>
    tpu.vector_store %arg7[%c0, %c0_0, %c0_1], %0 {strides = array<i32>} : memref<10x16x192xbf16, #tpu.memory_space<vmem>>, vector<1x16x192xbf16>,
    %cst_2 = arith.constant 0.000000e+00 : bf16
    %2 = vector.broadcast %cst_2 : bf16 to vector<1x16x192xbf16>
    %c9 = arith.constant 9 : index
    %c0_3 = arith.constant 0 : index
    %c0_4 = arith.constant 0 : index
    %3 = vector.load %arg7[%c9, %c0_3, %c0_4] : memref<10x16x192xbf16, #tpu.memory_space<vmem>>, vector<1x16x192xbf16>
    tpu.vector_store %arg7[%c9, %c0_3, %c0_4], %2 {strides = array<i32>} : memref<10x16x192xbf16, #tpu.memory_space<vmem>>, vector<1x16x192xbf16>,
    %cst_5 = arith.constant 0.000000e+00 : bf16
    %4 = vector.broadcast %cst_5 : bf16 to vector<8x1x64xbf16>
    %c1 = arith.constant 1 : index
    %c0_6 = arith.constant 0 : index
    %c0_7 = arith.constant 0 : index
    %5 = vector.load %arg7[%c1, %c0_6, %c0_7] : memref<10x16x192xbf16, #tpu.memory_space<vmem>>, vector<8x1x64xbf16>
    tpu.vector_store %arg7[%c1, %c0_6, %c0_7], %4 {strides = array<i32>} : memref<10x16x192xbf16, #tpu.memory_space<vmem>>, vector<8x1x64xbf16>,
    %c1_8 = arith.constant 1 : index
    %c7 = arith.constant 7 : index
    %c128 = arith.constant 128 : index
    %6 = vector.load %arg7[%c1_8, %c7, %c128] : memref<10x16x192xbf16, #tpu.memory_space<vmem>>, vector<8x1x64xbf16>
    tpu.vector_store %arg7[%c1_8, %c7, %c128], %4 {strides = array<i32>} : memref<10x16x192xbf16, #tpu.memory_space<vmem>>, vector<8x1x64xbf16>,
    %c1_9 = arith.constant 1 : index
    %c8 = arith.constant 8 : index
    %c0_10 = arith.constant 0 : index
    %7 = vector.load %arg7[%c1_9, %c8, %c0_10] : memref<10x16x192xbf16, #tpu.memory_space<vmem>>, vector<8x1x64xbf16>
    tpu.vector_store %arg7[%c1_9, %c8, %c0_10], %4 {strides = array<i32>} : memref<10x16x192xbf16, #tpu.memory_space<vmem>>, vector<8x1x64xbf16>,
    %c1_11 = arith.constant 1 : index
    %c15 = arith.constant 15 : index
    %c128_12 = arith.constant 128 : index
    %8 = vector.load %arg7[%c1_11, %c15, %c128_12] : memref<10x16x192xbf16, #tpu.memory_space<vmem>>, vector<8x1x64xbf16>
    tpu.vector_store %arg7[%c1_11, %c15, %c128_12], %4 {strides = array<i32>} : memref<10x16x192xbf16, #tpu.memory_space<vmem>>, vector<8x1x64xbf16>,
    %c0_13 = arith.constant 0 : index
    %c0_14 = arith.constant 0 : index
    %c0_15 = arith.constant 0 : index
    %9 = vector.load %arg1[%c0_13, %c0_14, %c0_15] : memref<8x16x64xbf16, #tpu.memory_space<vmem>>, vector<8x16x64xbf16>
    %c1_16 = arith.constant 1 : index
    %c0_17 = arith.constant 0 : index
    %c64 = arith.constant 64 : index
    %10 = vector.load %arg7[%c1_16, %c0_17, %c64] : memref<10x16x192xbf16, #tpu.memory_space<vmem>>, vector<8x16x64xbf16>
    tpu.vector_store %arg7[%c1_16, %c0_17, %c64], %9 {strides = array<i32>} : memref<10x16x192xbf16, #tpu.memory_space<vmem>>, vector<8x16x64xbf16>,
    %11 = vector.extract_strided_slice %9 {offsets = [0, 0, 0], sizes = [8, 7, 64], strides = [1, 1, 1]} : vector<8x16x64xbf16> to vector<8x7x64xbf16>
    %c1_18 = arith.constant 1 : index
    %c1_19 = arith.constant 1 : index
    %c0_20 = arith.constant 0 : index
    %12 = vector.load %arg7[%c1_18, %c1_19, %c0_20] : memref<10x16x192xbf16, #tpu.memory_space<vmem>>, vector<8x7x64xbf16>
    tpu.vector_store %arg7[%c1_18, %c1_19, %c0_20], %11 {strides = array<i32>} : memref<10x16x192xbf16, #tpu.memory_space<vmem>>, vector<8x7x64xbf16>,
    %13 = vector.extract_strided_slice %9 {offsets = [0, 1, 0], sizes = [8, 7, 64], strides = [1, 1, 1]} : vector<8x16x64xbf16> to vector<8x7x64xbf16>
    %c1_21 = arith.constant 1 : index
    %c0_22 = arith.constant 0 : index
    %c128_23 = arith.constant 128 : index
    %14 = vector.load %arg7[%c1_21, %c0_22, %c128_23] : memref<10x16x192xbf16, #tpu.memory_space<vmem>>, vector<8x7x64xbf16>
    tpu.vector_store %arg7[%c1_21, %c0_22, %c128_23], %13 {strides = array<i32>} : memref<10x16x192xbf16, #tpu.memory_space<vmem>>, vector<8x7x64xbf16>,
    %15 = vector.extract_strided_slice %9 {offsets = [0, 8, 0], sizes = [8, 7, 64], strides = [1, 1, 1]} : vector<8x16x64xbf16> to vector<8x7x64xbf16>
    %c1_24 = arith.constant 1 : index
    %c9_25 = arith.constant 9 : index
    %c0_26 = arith.constant 0 : index
    %16 = vector.load %arg7[%c1_24, %c9_25, %c0_26] : memref<10x16x192xbf16, #tpu.memory_space<vmem>>, vector<8x7x64xbf16>
    tpu.vector_store %arg7[%c1_24, %c9_25, %c0_26], %15 {strides = array<i32>} : memref<10x16x192xbf16, #tpu.memory_space<vmem>>, vector<8x7x64xbf16>,
    %17 = vector.extract_strided_slice %9 {offsets = [0, 9, 0], sizes = [8, 7, 64], strides = [1, 1, 1]} : vector<8x16x64xbf16> to vector<8x7x64xbf16>
    %c1_27 = arith.constant 1 : index
    %c8_28 = arith.constant 8 : index
    %c128_29 = arith.constant 128 : index
    %18 = vector.load %arg7[%c1_27, %c8_28, %c128_29] : memref<10x16x192xbf16, #tpu.memory_space<vmem>>, vector<8x7x64xbf16>
    tpu.vector_store %arg7[%c1_27, %c8_28, %c128_29], %17 {strides = array<i32>} : memref<10x16x192xbf16, #tpu.memory_space<vmem>>, vector<8x7x64xbf16>,
    %cst_30 = arith.constant 0.000000e+00 : f32
    %19 = vector.broadcast %cst_30 : f32 to vector<128x128xf32>
    %c0_31 = arith.constant 0 : index
    %c0_32 = arith.constant 0 : index
    %c0_33 = arith.constant 0 : index
    %20 = vector.load %arg7[%c0_31, %c0_32, %c0_33] : memref<10x16x192xbf16, #tpu.memory_space<vmem>>, vector<8x16x192xbf16>
    %21 = vector.shape_cast %20 : vector<8x16x192xbf16> to vector<128x192xbf16>
    %c0_34 = arith.constant 0 : index
    %c0_35 = arith.constant 0 : index
    %c0_36 = arith.constant 0 : index
    %22 = vector.load %arg2[%c0_34, %c0_35, %c0_36] : memref<3x192x128xbf16, #tpu.memory_space<vmem>>, vector<1x192x128xbf16>
    %23 = vector.shape_cast %22 : vector<1x192x128xbf16> to vector<192x128xbf16>
    %cst_37 = arith.constant dense<0.000000e+00> : vector<128x128xf32>
    %24 = tpu.matmul %21, %23, %cst_37 {dimension_numbers = #tpu.dot_dimension_numbers<[1], [0], [0], [1], [0, 0, 1, 1], [], []>} : vector<128x192xbf16>, vector<192x128xbf16>, vector<128x128xf32> -> vector<128x128xf32>
    %25 = arith.addf %19, %24 : vector<128x128xf32>
    %c1_38 = arith.constant 1 : index
    %c0_39 = arith.constant 0 : index
    %c0_40 = arith.constant 0 : index
    %26 = vector.load %arg7[%c1_38, %c0_39, %c0_40] : memref<10x16x192xbf16, #tpu.memory_space<vmem>>, vector<8x16x192xbf16>
    %27 = vector.shape_cast %26 : vector<8x16x192xbf16> to vector<128x192xbf16>
    %c1_41 = arith.constant 1 : index
    %c0_42 = arith.constant 0 : index
    %c0_43 = arith.constant 0 : index
    %28 = vector.load %arg2[%c1_41, %c0_42, %c0_43] : memref<3x192x128xbf16, #tpu.memory_space<vmem>>, vector<1x192x128xbf16>
    %29 = vector.shape_cast %28 : vector<1x192x128xbf16> to vector<192x128xbf16>
    %cst_44 = arith.constant dense<0.000000e+00> : vector<128x128xf32>
    %30 = tpu.matmul %27, %29, %cst_44 {dimension_numbers = #tpu.dot_dimension_numbers<[1], [0], [0], [1], [0, 0, 1, 1], [], []>} : vector<128x192xbf16>, vector<192x128xbf16>, vector<128x128xf32> -> vector<128x128xf32>
    %31 = arith.addf %25, %30 : vector<128x128xf32>
    %c2 = arith.constant 2 : index
    %c0_45 = arith.constant 0 : index
    %c0_46 = arith.constant 0 : index
    %32 = vector.load %arg7[%c2, %c0_45, %c0_46] : memref<10x16x192xbf16, #tpu.memory_space<vmem>>, vector<8x16x192xbf16>
    %33 = vector.shape_cast %32 : vector<8x16x192xbf16> to vector<128x192xbf16>
    %c2_47 = arith.constant 2 : index
    %c0_48 = arith.constant 0 : index
    %c0_49 = arith.constant 0 : index
    %34 = vector.load %arg2[%c2_47, %c0_48, %c0_49] : memref<3x192x128xbf16, #tpu.memory_space<vmem>>, vector<1x192x128xbf16>
    %35 = vector.shape_cast %34 : vector<1x192x128xbf16> to vector<192x128xbf16>
    %cst_50 = arith.constant dense<0.000000e+00> : vector<128x128xf32>
    %36 = tpu.matmul %33, %35, %cst_50 {dimension_numbers = #tpu.dot_dimension_numbers<[1], [0], [0], [1], [0, 0, 1, 1], [], []>} : vector<128x192xbf16>, vector<192x128xbf16>, vector<128x128xf32> -> vector<128x128xf32>
    %37 = arith.addf %31, %36 : vector<128x128xf32>
    %c0_51 = arith.constant 0 : index
    %c0_52 = arith.constant 0 : index
    %38 = vector.load %arg3[%c0_51, %c0_52] : memref<3x128xf32, #tpu.memory_space<vmem>>, vector<1x128xf32>
    %39 = vector.broadcast %38 : vector<1x128xf32> to vector<128x128xf32>
    %40 = arith.addf %37, %39 : vector<128x128xf32>
    %41 = vector.shape_cast %40 : vector<128x128xf32> to vector<8x2x8x128xf32>
    %cst_53 = arith.constant dense<0.000000e+00> : vector<2x128xf32>
    %42 = vector.multi_reduction <add>, %41, %cst_53 [0, 2] : vector<8x2x8x128xf32> to vector<2x128xf32>
    %43 = arith.mulf %41, %41 : vector<8x2x8x128xf32>
    %cst_54 = arith.constant dense<0.000000e+00> : vector<2x128xf32>
    %44 = vector.multi_reduction <add>, %43, %cst_54 [0, 2] : vector<8x2x8x128xf32> to vector<2x128xf32>
    %45 = tpu.concatenate %42, %44 in 0 : vector<2x128xf32>, vector<2x128xf32> -> vector<4x128xf32>
    %c0_55 = arith.constant 0 : index
    %c0_56 = arith.constant 0 : index
    %46 = vector.load %arg4[%c0_55, %c0_56] : memref<128x8xf32, #tpu.memory_space<vmem>>, vector<128x8xf32>
    %cst_57 = arith.constant dense<0.000000e+00> : vector<4x8xf32>
    %47 = tpu.matmul %45, %46, %cst_57 {dimension_numbers = #tpu.dot_dimension_numbers<[1], [0], [0], [1], [0, 0, 1, 1], [], []>} : vector<4x128xf32>, vector<128x8xf32>, vector<4x8xf32> -> vector<4x8xf32>
    %48 = vector.extract_strided_slice %47 {offsets = [0, 0], sizes = [2, 8], strides = [1, 1]} : vector<4x8xf32> to vector<2x8xf32>
    %49 = vector.extract_strided_slice %47 {offsets = [2, 0], sizes = [2, 8], strides = [1, 1]} : vector<4x8xf32> to vector<2x8xf32>
    %50 = arith.mulf %48, %48 : vector<2x8xf32>
    %51 = arith.subf %49, %50 : vector<2x8xf32>
    %cst_58 = arith.constant 9.99999974E-6 : f32
    %52 = vector.broadcast %cst_58 : f32 to vector<2x8xf32>
    %53 = arith.addf %51, %52 : vector<2x8xf32>
    %54 = math.rsqrt %53 : vector<2x8xf32>
    %55 = tpu.concatenate %48, %54 in 0 : vector<2x8xf32>, vector<2x8xf32> -> vector<4x8xf32>
    %c0_59 = arith.constant 0 : index
    %c0_60 = arith.constant 0 : index
    %56 = vector.load %arg5[%c0_59, %c0_60] : memref<8x128xf32, #tpu.memory_space<vmem>>, vector<8x128xf32>
    %cst_61 = arith.constant dense<0.000000e+00> : vector<4x128xf32>
    %57 = tpu.matmul %55, %56, %cst_61 {dimension_numbers = #tpu.dot_dimension_numbers<[1], [0], [0], [1], [0, 0, 1, 1], [], []>} : vector<4x8xf32>, vector<8x128xf32>, vector<4x128xf32> -> vector<4x128xf32>
    %58 = vector.extract_strided_slice %57 {offsets = [2, 0], sizes = [2, 128], strides = [1, 1]} : vector<4x128xf32> to vector<2x128xf32>
    %c1_62 = arith.constant 1 : index
    %c0_63 = arith.constant 0 : index
    %59 = vector.load %arg3[%c1_62, %c0_63] : memref<3x128xf32, #tpu.memory_space<vmem>>, vector<1x128xf32>
    %60 = vector.broadcast %59 : vector<1x128xf32> to vector<2x128xf32>
    %61 = arith.mulf %58, %60 : vector<2x128xf32>
    %c2_64 = arith.constant 2 : index
    %c0_65 = arith.constant 0 : index
    %62 = vector.load %arg3[%c2_64, %c0_65] : memref<3x128xf32, #tpu.memory_space<vmem>>, vector<1x128xf32>
    %63 = vector.extract_strided_slice %57 {offsets = [0, 0], sizes = [2, 128], strides = [1, 1]} : vector<4x128xf32> to vector<2x128xf32>
    %64 = arith.mulf %63, %61 : vector<2x128xf32>
    %65 = vector.broadcast %62 : vector<1x128xf32> to vector<2x128xf32>
    %66 = arith.subf %65, %64 : vector<2x128xf32>
    %67 = vector.shape_cast %61 : vector<2x128xf32> to vector<1x2x1x128xf32>
    %68 = vector.broadcast %67 : vector<1x2x1x128xf32> to vector<8x2x8x128xf32>
    %69 = arith.mulf %41, %68 : vector<8x2x8x128xf32>
    %70 = vector.shape_cast %66 : vector<2x128xf32> to vector<1x2x1x128xf32>
    %71 = vector.broadcast %70 : vector<1x2x1x128xf32> to vector<8x2x8x128xf32>
    %72 = arith.addf %69, %71 : vector<8x2x8x128xf32>
    %cst_66 = arith.constant 0.000000e+00 : f32
    %73 = vector.broadcast %cst_66 : f32 to vector<8x2x8x128xf32>
    %74 = arith.maximumf %72, %73 : vector<8x2x8x128xf32>
    %75 = vector.shape_cast %74 : vector<8x2x8x128xf32> to vector<8x16x128xf32>
    %76 = arith.truncf %75 : vector<8x16x128xf32> to vector<8x16x128xbf16>
    %c0_67 = arith.constant 0 : index
    %c0_68 = arith.constant 0 : index
    %c0_69 = arith.constant 0 : index
    %77 = vector.load %arg6[%c0_67, %c0_68, %c0_69] : memref<8x16x128xbf16, #tpu.memory_space<vmem>>, vector<8x16x128xbf16>
    tpu.vector_store %arg6[%c0_67, %c0_68, %c0_69], %76 {strides = array<i32>} : memref<8x16x128xbf16, #tpu.memory_space<vmem>>, vector<8x16x128xbf16>,
    return
  }
  func.func @transform_0(%arg0: i32) -> (i32, i32, i32) {
    %c0_i32 = arith.constant 0 : i32
    %c0_i32_0 = arith.constant 0 : i32
    %c0_i32_1 = arith.constant 0 : i32
    return %c0_i32, %arg0, %c0_i32_0 : i32, i32, i32
  }
  func.func @transform_1(%arg0: i32) -> (i32, i32, i32) {
    %c0_i32 = arith.constant 0 : i32
    %c0_i32_0 = arith.constant 0 : i32
    %c0_i32_1 = arith.constant 0 : i32
    %c0_i32_2 = arith.constant 0 : i32
    return %c0_i32, %c0_i32_0, %c0_i32_1 : i32, i32, i32
  }
  func.func @transform_2(%arg0: i32) -> (i32, i32) {
    %c0_i32 = arith.constant 0 : i32
    %c0_i32_0 = arith.constant 0 : i32
    %c0_i32_1 = arith.constant 0 : i32
    return %c0_i32, %c0_i32_0 : i32, i32
  }
  func.func @transform_3(%arg0: i32) -> (i32, i32) {
    %c0_i32 = arith.constant 0 : i32
    %c0_i32_0 = arith.constant 0 : i32
    %c0_i32_1 = arith.constant 0 : i32
    return %c0_i32, %c0_i32_0 : i32, i32
  }
  func.func @transform_4(%arg0: i32) -> (i32, i32) {
    %c0_i32 = arith.constant 0 : i32
    %c0_i32_0 = arith.constant 0 : i32
    %c0_i32_1 = arith.constant 0 : i32
    return %c0_i32, %c0_i32_0 : i32, i32
  }
  func.func @transform_5(%arg0: i32) -> (i32, i32, i32) {
    %c0_i32 = arith.constant 0 : i32
    %c0_i32_0 = arith.constant 0 : i32
    %c0_i32_1 = arith.constant 0 : i32
    return %c0_i32, %arg0, %c0_i32_0 : i32, i32, i32
  }
}

module attributes {stable_mosaic.version = 11 : i64} {
  func.func @_fused_conv_gn_relu_kernel(%arg0: i32, %arg1: memref<8x16x128xbf16, #tpu.memory_space<vmem>>, %arg2: memref<3x384x128xbf16, #tpu.memory_space<vmem>>, %arg3: memref<3x128xf32, #tpu.memory_space<vmem>>, %arg4: memref<128x8xf32, #tpu.memory_space<vmem>>, %arg5: memref<8x128xf32, #tpu.memory_space<vmem>>, %arg6: memref<8x16x128xf32, #tpu.memory_space<vmem>>, %arg7: memref<10x16x384xbf16, #tpu.memory_space<vmem>>) attributes {dimension_semantics = [#tpu.dimension_semantics<parallel>], iteration_bounds = array<i64: 1>, scalar_prefetch = 0 : i64, scratch_operands = 1 : i64, tpu.core_type = #tpu.core_type<tc>, window_params = [{transform_indices = @transform_0, window_bounds = array<i64: 8, 16, 128>}, {pipeline_mode = #tpu.pipeline_mode<synchronous>, transform_indices = @transform_1, window_bounds = array<i64: 3, 384, 128>}, {pipeline_mode = #tpu.pipeline_mode<synchronous>, transform_indices = @transform_2, window_bounds = array<i64: 3, 128>}, {pipeline_mode = #tpu.pipeline_mode<synchronous>, transform_indices = @transform_3, window_bounds = array<i64: 128, 8>}, {pipeline_mode = #tpu.pipeline_mode<synchronous>, transform_indices = @transform_4, window_bounds = array<i64: 8, 128>}, {transform_indices = @transform_5, window_bounds = array<i64: 8, 16, 128>}]} {
    %cst = arith.constant 0.000000e+00 : bf16
    %0 = vector.broadcast %cst : bf16 to vector<1x16x384xbf16>
    %c0 = arith.constant 0 : index
    %c0_0 = arith.constant 0 : index
    %c0_1 = arith.constant 0 : index
    %1 = vector.load %arg7[%c0, %c0_0, %c0_1] : memref<10x16x384xbf16, #tpu.memory_space<vmem>>, vector<1x16x384xbf16>
    tpu.vector_store %arg7[%c0, %c0_0, %c0_1], %0 {strides = array<i32>} : memref<10x16x384xbf16, #tpu.memory_space<vmem>>, vector<1x16x384xbf16>,
    %cst_2 = arith.constant 0.000000e+00 : bf16
    %2 = vector.broadcast %cst_2 : bf16 to vector<1x16x384xbf16>
    %c9 = arith.constant 9 : index
    %c0_3 = arith.constant 0 : index
    %c0_4 = arith.constant 0 : index
    %3 = vector.load %arg7[%c9, %c0_3, %c0_4] : memref<10x16x384xbf16, #tpu.memory_space<vmem>>, vector<1x16x384xbf16>
    tpu.vector_store %arg7[%c9, %c0_3, %c0_4], %2 {strides = array<i32>} : memref<10x16x384xbf16, #tpu.memory_space<vmem>>, vector<1x16x384xbf16>,
    %cst_5 = arith.constant 0.000000e+00 : bf16
    %4 = vector.broadcast %cst_5 : bf16 to vector<8x1x128xbf16>
    %c1 = arith.constant 1 : index
    %c0_6 = arith.constant 0 : index
    %c0_7 = arith.constant 0 : index
    %5 = vector.load %arg7[%c1, %c0_6, %c0_7] : memref<10x16x384xbf16, #tpu.memory_space<vmem>>, vector<8x1x128xbf16>
    tpu.vector_store %arg7[%c1, %c0_6, %c0_7], %4 {strides = array<i32>} : memref<10x16x384xbf16, #tpu.memory_space<vmem>>, vector<8x1x128xbf16>,
    %c1_8 = arith.constant 1 : index
    %c7 = arith.constant 7 : index
    %c256 = arith.constant 256 : index
    %6 = vector.load %arg7[%c1_8, %c7, %c256] : memref<10x16x384xbf16, #tpu.memory_space<vmem>>, vector<8x1x128xbf16>
    tpu.vector_store %arg7[%c1_8, %c7, %c256], %4 {strides = array<i32>} : memref<10x16x384xbf16, #tpu.memory_space<vmem>>, vector<8x1x128xbf16>,
    %c1_9 = arith.constant 1 : index
    %c8 = arith.constant 8 : index
    %c0_10 = arith.constant 0 : index
    %7 = vector.load %arg7[%c1_9, %c8, %c0_10] : memref<10x16x384xbf16, #tpu.memory_space<vmem>>, vector<8x1x128xbf16>
    tpu.vector_store %arg7[%c1_9, %c8, %c0_10], %4 {strides = array<i32>} : memref<10x16x384xbf16, #tpu.memory_space<vmem>>, vector<8x1x128xbf16>,
    %c1_11 = arith.constant 1 : index
    %c15 = arith.constant 15 : index
    %c256_12 = arith.constant 256 : index
    %8 = vector.load %arg7[%c1_11, %c15, %c256_12] : memref<10x16x384xbf16, #tpu.memory_space<vmem>>, vector<8x1x128xbf16>
    tpu.vector_store %arg7[%c1_11, %c15, %c256_12], %4 {strides = array<i32>} : memref<10x16x384xbf16, #tpu.memory_space<vmem>>, vector<8x1x128xbf16>,
    %c0_13 = arith.constant 0 : index
    %c0_14 = arith.constant 0 : index
    %c0_15 = arith.constant 0 : index
    %9 = vector.load %arg1[%c0_13, %c0_14, %c0_15] : memref<8x16x128xbf16, #tpu.memory_space<vmem>>, vector<8x16x128xbf16>
    %c1_16 = arith.constant 1 : index
    %c0_17 = arith.constant 0 : index
    %c128 = arith.constant 128 : index
    %10 = vector.load %arg7[%c1_16, %c0_17, %c128] : memref<10x16x384xbf16, #tpu.memory_space<vmem>>, vector<8x16x128xbf16>
    tpu.vector_store %arg7[%c1_16, %c0_17, %c128], %9 {strides = array<i32>} : memref<10x16x384xbf16, #tpu.memory_space<vmem>>, vector<8x16x128xbf16>,
    %11 = vector.extract_strided_slice %9 {offsets = [0, 0, 0], sizes = [8, 7, 128], strides = [1, 1, 1]} : vector<8x16x128xbf16> to vector<8x7x128xbf16>
    %c1_18 = arith.constant 1 : index
    %c1_19 = arith.constant 1 : index
    %c0_20 = arith.constant 0 : index
    %12 = vector.load %arg7[%c1_18, %c1_19, %c0_20] : memref<10x16x384xbf16, #tpu.memory_space<vmem>>, vector<8x7x128xbf16>
    tpu.vector_store %arg7[%c1_18, %c1_19, %c0_20], %11 {strides = array<i32>} : memref<10x16x384xbf16, #tpu.memory_space<vmem>>, vector<8x7x128xbf16>,
    %13 = vector.extract_strided_slice %9 {offsets = [0, 1, 0], sizes = [8, 7, 128], strides = [1, 1, 1]} : vector<8x16x128xbf16> to vector<8x7x128xbf16>
    %c1_21 = arith.constant 1 : index
    %c0_22 = arith.constant 0 : index
    %c256_23 = arith.constant 256 : index
    %14 = vector.load %arg7[%c1_21, %c0_22, %c256_23] : memref<10x16x384xbf16, #tpu.memory_space<vmem>>, vector<8x7x128xbf16>
    tpu.vector_store %arg7[%c1_21, %c0_22, %c256_23], %13 {strides = array<i32>} : memref<10x16x384xbf16, #tpu.memory_space<vmem>>, vector<8x7x128xbf16>,
    %15 = vector.extract_strided_slice %9 {offsets = [0, 8, 0], sizes = [8, 7, 128], strides = [1, 1, 1]} : vector<8x16x128xbf16> to vector<8x7x128xbf16>
    %c1_24 = arith.constant 1 : index
    %c9_25 = arith.constant 9 : index
    %c0_26 = arith.constant 0 : index
    %16 = vector.load %arg7[%c1_24, %c9_25, %c0_26] : memref<10x16x384xbf16, #tpu.memory_space<vmem>>, vector<8x7x128xbf16>
    tpu.vector_store %arg7[%c1_24, %c9_25, %c0_26], %15 {strides = array<i32>} : memref<10x16x384xbf16, #tpu.memory_space<vmem>>, vector<8x7x128xbf16>,
    %17 = vector.extract_strided_slice %9 {offsets = [0, 9, 0], sizes = [8, 7, 128], strides = [1, 1, 1]} : vector<8x16x128xbf16> to vector<8x7x128xbf16>
    %c1_27 = arith.constant 1 : index
    %c8_28 = arith.constant 8 : index
    %c256_29 = arith.constant 256 : index
    %18 = vector.load %arg7[%c1_27, %c8_28, %c256_29] : memref<10x16x384xbf16, #tpu.memory_space<vmem>>, vector<8x7x128xbf16>
    tpu.vector_store %arg7[%c1_27, %c8_28, %c256_29], %17 {strides = array<i32>} : memref<10x16x384xbf16, #tpu.memory_space<vmem>>, vector<8x7x128xbf16>,
    %cst_30 = arith.constant 0.000000e+00 : f32
    %19 = vector.broadcast %cst_30 : f32 to vector<128x128xf32>
    %c0_31 = arith.constant 0 : index
    %c0_32 = arith.constant 0 : index
    %c0_33 = arith.constant 0 : index
    %20 = vector.load %arg7[%c0_31, %c0_32, %c0_33] : memref<10x16x384xbf16, #tpu.memory_space<vmem>>, vector<8x16x384xbf16>
    %21 = vector.shape_cast %20 : vector<8x16x384xbf16> to vector<128x384xbf16>
    %c0_34 = arith.constant 0 : index
    %c0_35 = arith.constant 0 : index
    %c0_36 = arith.constant 0 : index
    %22 = vector.load %arg2[%c0_34, %c0_35, %c0_36] : memref<3x384x128xbf16, #tpu.memory_space<vmem>>, vector<1x384x128xbf16>
    %23 = vector.shape_cast %22 : vector<1x384x128xbf16> to vector<384x128xbf16>
    %cst_37 = arith.constant dense<0.000000e+00> : vector<128x128xf32>
    %24 = tpu.matmul %21, %23, %cst_37 {dimension_numbers = #tpu.dot_dimension_numbers<[1], [0], [0], [1], [0, 0, 1, 1], [], []>} : vector<128x384xbf16>, vector<384x128xbf16>, vector<128x128xf32> -> vector<128x128xf32>
    %25 = arith.addf %19, %24 : vector<128x128xf32>
    %c1_38 = arith.constant 1 : index
    %c0_39 = arith.constant 0 : index
    %c0_40 = arith.constant 0 : index
    %26 = vector.load %arg7[%c1_38, %c0_39, %c0_40] : memref<10x16x384xbf16, #tpu.memory_space<vmem>>, vector<8x16x384xbf16>
    %27 = vector.shape_cast %26 : vector<8x16x384xbf16> to vector<128x384xbf16>
    %c1_41 = arith.constant 1 : index
    %c0_42 = arith.constant 0 : index
    %c0_43 = arith.constant 0 : index
    %28 = vector.load %arg2[%c1_41, %c0_42, %c0_43] : memref<3x384x128xbf16, #tpu.memory_space<vmem>>, vector<1x384x128xbf16>
    %29 = vector.shape_cast %28 : vector<1x384x128xbf16> to vector<384x128xbf16>
    %cst_44 = arith.constant dense<0.000000e+00> : vector<128x128xf32>
    %30 = tpu.matmul %27, %29, %cst_44 {dimension_numbers = #tpu.dot_dimension_numbers<[1], [0], [0], [1], [0, 0, 1, 1], [], []>} : vector<128x384xbf16>, vector<384x128xbf16>, vector<128x128xf32> -> vector<128x128xf32>
    %31 = arith.addf %25, %30 : vector<128x128xf32>
    %c2 = arith.constant 2 : index
    %c0_45 = arith.constant 0 : index
    %c0_46 = arith.constant 0 : index
    %32 = vector.load %arg7[%c2, %c0_45, %c0_46] : memref<10x16x384xbf16, #tpu.memory_space<vmem>>, vector<8x16x384xbf16>
    %33 = vector.shape_cast %32 : vector<8x16x384xbf16> to vector<128x384xbf16>
    %c2_47 = arith.constant 2 : index
    %c0_48 = arith.constant 0 : index
    %c0_49 = arith.constant 0 : index
    %34 = vector.load %arg2[%c2_47, %c0_48, %c0_49] : memref<3x384x128xbf16, #tpu.memory_space<vmem>>, vector<1x384x128xbf16>
    %35 = vector.shape_cast %34 : vector<1x384x128xbf16> to vector<384x128xbf16>
    %cst_50 = arith.constant dense<0.000000e+00> : vector<128x128xf32>
    %36 = tpu.matmul %33, %35, %cst_50 {dimension_numbers = #tpu.dot_dimension_numbers<[1], [0], [0], [1], [0, 0, 1, 1], [], []>} : vector<128x384xbf16>, vector<384x128xbf16>, vector<128x128xf32> -> vector<128x128xf32>
    %37 = arith.addf %31, %36 : vector<128x128xf32>
    %c0_51 = arith.constant 0 : index
    %c0_52 = arith.constant 0 : index
    %38 = vector.load %arg3[%c0_51, %c0_52] : memref<3x128xf32, #tpu.memory_space<vmem>>, vector<1x128xf32>
    %39 = vector.broadcast %38 : vector<1x128xf32> to vector<128x128xf32>
    %40 = arith.addf %37, %39 : vector<128x128xf32>
    %41 = vector.shape_cast %40 : vector<128x128xf32> to vector<8x2x8x128xf32>
    %cst_53 = arith.constant dense<0.000000e+00> : vector<2x128xf32>
    %42 = vector.multi_reduction <add>, %41, %cst_53 [0, 2] : vector<8x2x8x128xf32> to vector<2x128xf32>
    %43 = arith.mulf %41, %41 : vector<8x2x8x128xf32>
    %cst_54 = arith.constant dense<0.000000e+00> : vector<2x128xf32>
    %44 = vector.multi_reduction <add>, %43, %cst_54 [0, 2] : vector<8x2x8x128xf32> to vector<2x128xf32>
    %45 = tpu.concatenate %42, %44 in 0 : vector<2x128xf32>, vector<2x128xf32> -> vector<4x128xf32>
    %c0_55 = arith.constant 0 : index
    %c0_56 = arith.constant 0 : index
    %46 = vector.load %arg4[%c0_55, %c0_56] : memref<128x8xf32, #tpu.memory_space<vmem>>, vector<128x8xf32>
    %cst_57 = arith.constant dense<0.000000e+00> : vector<4x8xf32>
    %47 = tpu.matmul %45, %46, %cst_57 {dimension_numbers = #tpu.dot_dimension_numbers<[1], [0], [0], [1], [0, 0, 1, 1], [], []>} : vector<4x128xf32>, vector<128x8xf32>, vector<4x8xf32> -> vector<4x8xf32>
    %48 = vector.extract_strided_slice %47 {offsets = [0, 0], sizes = [2, 8], strides = [1, 1]} : vector<4x8xf32> to vector<2x8xf32>
    %49 = vector.extract_strided_slice %47 {offsets = [2, 0], sizes = [2, 8], strides = [1, 1]} : vector<4x8xf32> to vector<2x8xf32>
    %50 = arith.mulf %48, %48 : vector<2x8xf32>
    %51 = arith.subf %49, %50 : vector<2x8xf32>
    %cst_58 = arith.constant 9.99999974E-6 : f32
    %52 = vector.broadcast %cst_58 : f32 to vector<2x8xf32>
    %53 = arith.addf %51, %52 : vector<2x8xf32>
    %54 = math.rsqrt %53 : vector<2x8xf32>
    %55 = tpu.concatenate %48, %54 in 0 : vector<2x8xf32>, vector<2x8xf32> -> vector<4x8xf32>
    %c0_59 = arith.constant 0 : index
    %c0_60 = arith.constant 0 : index
    %56 = vector.load %arg5[%c0_59, %c0_60] : memref<8x128xf32, #tpu.memory_space<vmem>>, vector<8x128xf32>
    %cst_61 = arith.constant dense<0.000000e+00> : vector<4x128xf32>
    %57 = tpu.matmul %55, %56, %cst_61 {dimension_numbers = #tpu.dot_dimension_numbers<[1], [0], [0], [1], [0, 0, 1, 1], [], []>} : vector<4x8xf32>, vector<8x128xf32>, vector<4x128xf32> -> vector<4x128xf32>
    %58 = vector.extract_strided_slice %57 {offsets = [2, 0], sizes = [2, 128], strides = [1, 1]} : vector<4x128xf32> to vector<2x128xf32>
    %c1_62 = arith.constant 1 : index
    %c0_63 = arith.constant 0 : index
    %59 = vector.load %arg3[%c1_62, %c0_63] : memref<3x128xf32, #tpu.memory_space<vmem>>, vector<1x128xf32>
    %60 = vector.broadcast %59 : vector<1x128xf32> to vector<2x128xf32>
    %61 = arith.mulf %58, %60 : vector<2x128xf32>
    %c2_64 = arith.constant 2 : index
    %c0_65 = arith.constant 0 : index
    %62 = vector.load %arg3[%c2_64, %c0_65] : memref<3x128xf32, #tpu.memory_space<vmem>>, vector<1x128xf32>
    %63 = vector.extract_strided_slice %57 {offsets = [0, 0], sizes = [2, 128], strides = [1, 1]} : vector<4x128xf32> to vector<2x128xf32>
    %64 = arith.mulf %63, %61 : vector<2x128xf32>
    %65 = vector.broadcast %62 : vector<1x128xf32> to vector<2x128xf32>
    %66 = arith.subf %65, %64 : vector<2x128xf32>
    %67 = vector.shape_cast %61 : vector<2x128xf32> to vector<1x2x1x128xf32>
    %68 = vector.broadcast %67 : vector<1x2x1x128xf32> to vector<8x2x8x128xf32>
    %69 = arith.mulf %41, %68 : vector<8x2x8x128xf32>
    %70 = vector.shape_cast %66 : vector<2x128xf32> to vector<1x2x1x128xf32>
    %71 = vector.broadcast %70 : vector<1x2x1x128xf32> to vector<8x2x8x128xf32>
    %72 = arith.addf %69, %71 : vector<8x2x8x128xf32>
    %cst_66 = arith.constant 0.000000e+00 : f32
    %73 = vector.broadcast %cst_66 : f32 to vector<8x2x8x128xf32>
    %74 = arith.maximumf %72, %73 : vector<8x2x8x128xf32>
    %75 = vector.shape_cast %74 : vector<8x2x8x128xf32> to vector<8x16x128xf32>
    %c0_67 = arith.constant 0 : index
    %c0_68 = arith.constant 0 : index
    %c0_69 = arith.constant 0 : index
    %76 = vector.load %arg6[%c0_67, %c0_68, %c0_69] : memref<8x16x128xf32, #tpu.memory_space<vmem>>, vector<8x16x128xf32>
    tpu.vector_store %arg6[%c0_67, %c0_68, %c0_69], %75 {strides = array<i32>} : memref<8x16x128xf32, #tpu.memory_space<vmem>>, vector<8x16x128xf32>,
    return
  }
  func.func @transform_0(%arg0: i32) -> (i32, i32, i32) {
    %c0_i32 = arith.constant 0 : i32
    %c0_i32_0 = arith.constant 0 : i32
    %c0_i32_1 = arith.constant 0 : i32
    return %c0_i32, %arg0, %c0_i32_0 : i32, i32, i32
  }
  func.func @transform_1(%arg0: i32) -> (i32, i32, i32) {
    %c0_i32 = arith.constant 0 : i32
    %c0_i32_0 = arith.constant 0 : i32
    %c0_i32_1 = arith.constant 0 : i32
    %c0_i32_2 = arith.constant 0 : i32
    return %c0_i32, %c0_i32_0, %c0_i32_1 : i32, i32, i32
  }
  func.func @transform_2(%arg0: i32) -> (i32, i32) {
    %c0_i32 = arith.constant 0 : i32
    %c0_i32_0 = arith.constant 0 : i32
    %c0_i32_1 = arith.constant 0 : i32
    return %c0_i32, %c0_i32_0 : i32, i32
  }
  func.func @transform_3(%arg0: i32) -> (i32, i32) {
    %c0_i32 = arith.constant 0 : i32
    %c0_i32_0 = arith.constant 0 : i32
    %c0_i32_1 = arith.constant 0 : i32
    return %c0_i32, %c0_i32_0 : i32, i32
  }
  func.func @transform_4(%arg0: i32) -> (i32, i32) {
    %c0_i32 = arith.constant 0 : i32
    %c0_i32_0 = arith.constant 0 : i32
    %c0_i32_1 = arith.constant 0 : i32
    return %c0_i32, %c0_i32_0 : i32, i32
  }
  func.func @transform_5(%arg0: i32) -> (i32, i32, i32) {
    %c0_i32 = arith.constant 0 : i32
    %c0_i32_0 = arith.constant 0 : i32
    %c0_i32_1 = arith.constant 0 : i32
    return %c0_i32, %arg0, %c0_i32_0 : i32, i32, i32
  }
}

</mosaic_0001>

<bundles_post_ra>
// kernel: tile.33
= control target key start
LH: loop header
LB: loop body
LE: loop exit
PB: predicated region body
PF: predicated region fallthrough
CT: control target
= control target key end

     0   :  { %s22_s0 = inlined_call_operand.vmem [shape: f32[16], index: 0, kind: input, shape index: {}]   ;;  %s23_s1 = inlined_call_operand.vmem [shape: f32[8,16], index: 1, kind: output, shape index: {}]  }
   0x1   :  { %v4_v0 = vld [vmem:[%s22_s0] ss:$0 sm:$0xff] }
   0x2   :  { %5 = vst [vmem:[%s23_s1] sm:$0xff] %v4_v0 }

// kernel: tile.42
= control target key start
LH: loop header
LB: loop body
LE: loop exit
PB: predicated region body
PF: predicated region fallthrough
CT: control target
= control target key end

     0   :  { %s67_s10 = smov 112   ;;  %s68_s11 = smov 80   ;;  %vm3_vm0 = vcmask 130048   ;;  %vm9_vm1 = vcmask 1048448   ;;  %vm15_vm2 = vcmask 917248   ;;  %vm21_vm3 = vcmask 786048   ;;  %s111_s0 = inlined_call_operand.vmem [shape: f32[8,16], index: 0, kind: input, shape index: {}]   ;;  %s112_s1 = inlined_call_operand.vmem [shape: f32[1,128], index: 1, kind: output, shape index: {}]  }
   0x1   :  { %v53_v0 = vld [vmem:[%s111_s0 + $0x7] sm:$0x1]   ;;  %v55_v1 = vld [vmem:[%s111_s0 + $0x5] sm:$0x1]   ;;  %v57_v2 = vld [vmem:[%s111_s0 + $0x3] sm:$0x1]  }
   0x2   :  { %7 = vrot.lane.b32.xlu0 %v53_v0, %s67_s10  ;;  %19 = vrot.lane.b32.xlu1 %v55_v1, %s68_s11  ;;  %s69_s14 = smov 48   ;;  %v54_v3 = vld [vmem:[%s111_s0 + $0x6] sm:$0x1]   ;;  %v56_v4 = vld [vmem:[%s111_s0 + $0x4] sm:$0x1]   ;;  %s70_s21 = smov 96  }
   0x3   :  { %31 = vrot.lane.b32.xlu2 %v57_v2, %s69_s14  ;;  %v58_v5 = vld [vmem:[%s111_s0 + $0x2] sm:$0x1]   ;;  %s71_s22 = smov 64   ;;  %s72_s23 = smov 32   ;;  %v59_v6 = vld [vmem:[%s111_s0 + $0x1] sm:$0x1]  }
   0x4   :  { %s73_s26 = smov 16   ;;  %v2_v7 = vld [vmem:[%s111_s0] sm:$0x1]   ;;  %vm27_vm4 = vcmask 654848   ;;  %vm33_vm5 = vcmask 523648   ;;  %vm39_vm6 = vcmask 392448  }
   0x5   :  { %4 = vst.msk [vmem:[#allocation0] sm:$0x1] %vm3_vm0, %v2_v7   ;;  %vm45_vm7 = vcmask 261248  }
   0xa   :  { %13 = vrot.lane.b32.xlu0 %v54_v3, %s70_s21  ;;  %25 = vrot.lane.b32.xlu1 %v56_v4, %s71_s22 }
   0xb   :  { %37 = vrot.lane.b32.xlu2 %v58_v5, %s72_s23 }
  0x12   :  { %43 = vrot.lane.b32.xlu0 %v59_v6, %s73_s26 }
  0x5d   :  { %v32_v8 = vpop.permute.xlu2 %31  }
  0x65   :  { %v38_v9 = vpop.permute.xlu2 %37  }
  0x74   :  { %v8_v10 = vpop.permute.xlu0 %7   ;;  %v20_v11 = vpop.permute.xlu1 %19  }
  0x75   :  { %10 = vst.msk [vmem:[#allocation0] sm:$0x1] %vm9_vm1, %v8_v10  }
  0x7c   :  { %v14_v12 = vpop.permute.xlu0 %13   ;;  %v26_v13 = vpop.permute.xlu1 %25  }
  0x7d   :  { %16 = vst.msk [vmem:[#allocation0] sm:$0x1] %vm15_vm2, %v14_v12  }
  0x7e   :  { %22 = vst.msk [vmem:[#allocation0] sm:$0x1] %vm21_vm3, %v20_v11  }
  0x7f   :  { %28 = vst.msk [vmem:[#allocation0] sm:$0x1] %vm27_vm4, %v26_v13  }
  0x80   :  { %34 = vst.msk [vmem:[#allocation0] sm:$0x1] %vm33_vm5, %v32_v8  }
  0x81   :  { %40 = vst.msk [vmem:[#allocation0] sm:$0x1] %vm39_vm6, %v38_v9  }
  0x84   :  { %v44_v14 = vpop.permute.xlu0 %43  }
  0x85   :  { %46 = vst.msk [vmem:[#allocation0] sm:$0x1] %vm45_vm7, %v44_v14  }
  0x8c   :  { %v49_v15 = vld [vmem:[#allocation0] sm:$0x1] }
  0x8d   :  { %52 = vst [vmem:[%s112_s1] sm:$0x1] %v49_v15 }

// kernel: conv_block_3d.2
= control target key start
LH: loop header
LB: loop body
LE: loop exit
PB: predicated region body
PF: predicated region fallthrough
CT: control target
= control target key end

     0   :  { %vm57_vm0 = vcmask 519171   ;;  %vm58_vm1 = vsmask.f32 7950  ;;  %v63_v0 = vld [vmem:[#allocation2 + $0x24] sm:$0x8]  ;;  %vm293_vm3 = vcmask 519168   ;;  %s3204_s0 = inlined_call_operand.vmem [shape: bf16[8,16,64], index: 0, kind: input, shape index: {}]   ;;  %s3205_s1 = inlined_call_operand.vmem [shape: bf16[3,192,128], index: 1, kind: input, shape index: {}]   ;;  %s3206_s2 = inlined_call_operand.vmem [shape: f32[3,128], index: 2, kind: input, shape index: {}]   ;;  %s3207_s3 = inlined_call_operand.vmem [shape: f32[128,8], index: 3, kind: input, shape index: {}]   ;;  %s3208_s4 = inlined_call_operand.vmem [shape: f32[8,128], index: 4, kind: input, shape index: {}]   ;;  %s3209_s5 = inlined_call_operand.vmem [shape: bf16[8,16,128], index: 5, kind: output, shape index: {}]  }
   0x1   :  { %vm2348_vm2 = vmand %vm57_vm0, %vm58_vm1  ;;  %v134_v2 = vld [vmem:[%s3204_s0 + $0x8] sm:$0xf]  ;;  %vm360_vm4 = vsmask.f32 3328  ;;  %v2358_v3 = vld [vmem:[%s3205_s1 + $0x58] sm:$0xff]  ;;  %s2316_s22 = smov 64  }
   0x2   :  { %v64_v4 = vsel %vm2348_vm2, 0, %v63_v0  ;;  %168 = vrot.lane.b32.xlu1 %v134_v2, %s2316_s22  ;;  %v237_v5 = vshrl.u32 %v134_v2, 16  ;;  %v240_v6 = vshll.u32 %v134_v2, 16  ;;  %v60_v7 = vld [vmem:[#allocation2 + $0x14] sm:$0x8]  ;;  %v2366_v8 = vld [vmem:[%s3205_s1 + $0x50] sm:$0xff]  ;;  %2305 = vmatpush.bf16.msra.mxu3 %v2358_v3  ;;  %vm2413_vm5 = vmand %vm293_vm3, %vm360_vm4 }
   0x3   :  { %65 = vst [vmem:[#allocation2 + $0x24] sm:$0x8] %v64_v4  ;;  %v61_v9 = vsel %vm2348_vm2, 0, %v60_v7  ;;  %v132_v10 = vld [vmem:[%s3204_s0] sm:$0xf]  ;;  %v2377_v11 = vld [vmem:[%s3205_s1 + $0xb8] sm:$0xff] }
   0x4   :  { %v239_v12 = vrot.slane %v237_v5, 7  ;;  %v324_v13 = vrot.slane %v237_v5, 4  ;;  %v325_v14 = vrot.slane %v240_v6, 5  ;;  %62 = vst [vmem:[#allocation2 + $0x14] sm:$0x8] %v61_v9  ;;  %164 = vrot.lane.b32.xlu0 %v132_v10, %s2316_s22  ;;  %v230_v15 = vshrl.u32 %v132_v10, 16  ;;  %2301 = vmatpush.bf16.msra.mxu1 %v2377_v11 }
   0x5   :  { %v233_v16 = vshll.u32 %v132_v10, 16  ;;  %v111_v17 = vld [vmem:[#allocation2 + $0x2c] sm:$0x8]  ;;  %v135_v18 = vld [vmem:[%s3204_s0 + $0xc] sm:$0xf]  ;;  %v2409_v40 = vld [vmem:[%s3205_s1 + $0x40] sm:$0xff] }
   0x6   :  { %v2387_v19 = vld [vmem:[%s3205_s1 + $0x48] sm:$0xff]  ;;  %v2389_v20 = vor.u32 %v240_v6, %v239_v12  ;;  %v326_v21 = vor.u32 %v325_v14, %v324_v13  ;;  %v232_v22 = vrot.slane %v230_v15, 7  ;;  %v320_v23 = vrot.slane %v230_v15, 4  ;;  %v108_v24 = vld [vmem:[#allocation2 + $0x1c] sm:$0x8]  ;;  %2306 = vmatpush.bf16.msra.mxu3 %v2366_v8  ;;  %v2404_v35 = vld [vmem:[%s3205_s1 + $0xb0] sm:$0xff] }
   0x7   :  { %v133_v25 = vld [vmem:[%s3204_s0 + $0x4] sm:$0xf]  ;;  %v321_v26 = vrot.slane %v233_v16, 5  ;;  %v112_v27 = vsel %vm2348_vm2, 0, %v111_v17  ;;  %v394_v28 = vshrl.u32 %v135_v18, 16  ;;  %v397_v29 = vshll.u32 %v135_v18, 16 }
   0x8   :  { %v66_v30 = vld [vmem:[#allocation2 + $0x34] sm:$0x8]  ;;  %v327_v31 = vrot.slane %v326_v21, 4  ;;  %v2397_v32 = vor.u32 %v233_v16, %v232_v22  ;;  %113 = vst [vmem:[#allocation2 + $0x2c] sm:$0x8] %v112_v27  ;;  %v109_v33 = vsel %vm2348_vm2, 0, %v108_v24  ;;  %2302 = vmatpush.bf16.msra.mxu1 %v2404_v35 }
   0x9   :  { %v387_v34 = vshrl.u32 %v133_v25, 16  ;;  %v322_v36 = vor.u32 %v321_v26, %v320_v23  ;;  %v396_v37 = vrot.slane %v394_v28, 7  ;;  %v478_v38 = vrot.slane %v394_v28, 4  ;;  %110 = vst [vmem:[#allocation2 + $0x1c] sm:$0x8] %v109_v33  ;;  %v2429_v52 = vld [vmem:[%s3205_s1 + $0xa8] sm:$0xff] }
   0xa   :  { %v479_v39 = vrot.slane %v397_v29, 5  ;;  %v365_v42 = vld [vmem:[#allocation2 + $0x24] sm:$0xf]  ;;  %170 = vrot.lane.b32.xlu1 %v135_v18, %s2316_s22  ;;  %v390_v44 = vshll.u32 %v133_v25, 16  ;;  %v67_v46 = vsel %vm2348_vm2, 0, %v66_v30  ;;  %2307 = vmatpush.bf16.msra.mxu3 %v2387_v19  ;;  %v2449_v0 = vld [vmem:[%s3205_s1 + $0xa0] sm:$0xff] }
   0xb   :  { %v389_v43 = vrot.slane %v387_v34, 7  ;;  %v474_v45 = vrot.slane %v387_v34, 4  ;;  %v366_v47 = vsel %vm2413_vm5, %v327_v31, %v365_v42  ;;  %v362_v48 = vld [vmem:[#allocation2 + $0x14] sm:$0xf]  ;;  %v323_v49 = vrot.slane %v322_v36, 4  ;;  %v2247_v41 = vld [vmem:[%s3205_s1 + $0xe8] sm:$0xff] }
   0xc   :  { %v2423_v50 = vor.u32 %v397_v29, %v396_v37  ;;  %v480_v51 = vor.u32 %v479_v39, %v478_v38  ;;  %68 = vst [vmem:[#allocation2 + $0x34] sm:$0x8] %v67_v46  ;;  %v475_v54 = vrot.slane %v390_v44, 5  ;;  %166 = vrot.lane.b32.xlu0 %v133_v25, %s2316_s22  ;;  %v136_v55 = vld [vmem:[%s3204_s0 + $0x10] sm:$0xf]  ;;  %2303 = vmatpush.bf16.msra.mxu1 %v2429_v52  ;;  %vm763_vm6 = vcmask 523264  }
   0xd   :  { %367 = vst [vmem:[#allocation2 + $0x24] sm:$0xf] %v366_v47  ;;  %v2431_v53 = vor.u32 %v390_v44, %v389_v43  ;;  %v363_v56 = vsel %vm2413_vm5, %v323_v49, %v362_v48  ;;  %172 = vrot.lane.b32.xlu2 %v136_v55, %s2316_s22  ;;  %v244_v58 = vshrl.u32 %v136_v55, 16  ;;  %v247_v59 = vshll.u32 %v136_v55, 16  ;;  %v117_v60 = vld [vmem:[#allocation2 + $0x4c] sm:$0x8] }
   0xe   :  { %v481_v57 = vrot.slane %v480_v51, 4  ;;  %364 = vst [vmem:[#allocation2 + $0x14] sm:$0xf] %v363_v56  ;;  %v476_v61 = vor.u32 %v475_v54, %v474_v45  ;;  %v118_v62 = vsel %vm2348_vm2, 0, %v117_v60  ;;  %v139_v63 = vld [vmem:[%s3204_s0 + $0x1c] sm:$0xf]  ;;  %2308 = vmatpush.bf16.msra.mxu3 %v2409_v40 }
   0xf   :  { %v517_v2 = vld [vmem:[#allocation2 + $0x2c] sm:$0xf]  ;;  %v246_v4 = vrot.slane %v244_v58, 7  ;;  %v328_v5 = vrot.slane %v244_v58, 4  ;;  %v329_v6 = vrot.slane %v247_v59, 5  ;;  %v408_v7 = vshrl.u32 %v139_v63, 16 }
  0x10   :  { %v518_v9 = vsel %vm2413_vm5, %v481_v57, %v517_v2  ;;  %v477_v10 = vrot.slane %v476_v61, 4  ;;  %v514_v12 = vld [vmem:[#allocation2 + $0x1c] sm:$0xf]  ;;  %119 = vst [vmem:[#allocation2 + $0x4c] sm:$0x8] %v118_v62  ;;  %v411_v13 = vshll.u32 %v139_v63, 16  ;;  %2304 = vmatpush.bf16.msra.mxu1 %v2449_v0 }
  0x11   :  { %519 = vst [vmem:[#allocation2 + $0x2c] sm:$0xf] %v518_v9  ;;  %v2454_v14 = vor.u32 %v247_v59, %v246_v4  ;;  %v330_v15 = vor.u32 %v329_v6, %v328_v5  ;;  %v410_v16 = vrot.slane %v408_v7, 7  ;;  %v486_v17 = vrot.slane %v408_v7, 4  ;;  %v69_v18 = vld [vmem:[#allocation2 + $0x44] sm:$0x8] }
  0x12   :  { %v515_v21 = vsel %vm2413_vm5, %v477_v10, %v514_v12  ;;  %v487_v23 = vrot.slane %v411_v13, 5  ;;  %178 = vrot.lane.b32.xlu1 %v139_v63, %s2316_s22  ;;  %v70_v24 = vsel %vm2348_vm2, 0, %v69_v18  ;;  %v138_v25 = vld [vmem:[%s3204_s0 + $0x18] sm:$0xf]  ;;  %v114_v31 = vld [vmem:[#allocation2 + $0x3c] sm:$0x8] }
  0x13   :  { %v368_v22 = vld [vmem:[#allocation2 + $0x34] sm:$0xf]  ;;  %516 = vst [vmem:[#allocation2 + $0x1c] sm:$0xf] %v515_v21  ;;  %v331_v26 = vrot.slane %v330_v15, 4  ;;  %v2465_v27 = vor.u32 %v411_v13, %v410_v16  ;;  %v251_v28 = vshrl.u32 %v138_v25, 16 }
  0x14   :  { %v254_v29 = vshll.u32 %v138_v25, 16  ;;  %v488_v30 = vor.u32 %v487_v23, %v486_v17  ;;  %71 = vst [vmem:[#allocation2 + $0x44] sm:$0x8] %v70_v24  ;;  %176 = vrot.lane.b32.xlu0 %v138_v25, %s2316_s22  ;;  %v137_v33 = vld [vmem:[%s3204_s0 + $0x14] sm:$0xf]  ;;  %v115_v43 = vsel %vm2348_vm2, 0, %v114_v31 }
  0x15   :  { %v369_v34 = vsel %vm2413_vm5, %v331_v26, %v368_v22  ;;  %v253_v36 = vrot.slane %v251_v28, 7  ;;  %v332_v37 = vrot.slane %v251_v28, 4  ;;  %174 = vrot.lane.b32.xlu2 %v137_v33, %s2316_s22  ;;  %v120_v39 = vld [vmem:[#allocation2 + $0x5c] sm:$0x8]  ;;  %v401_v44 = vshrl.u32 %v137_v33, 16 }
  0x16   :  { %v333_v38 = vrot.slane %v254_v29, 5  ;;  %370 = vst [vmem:[#allocation2 + $0x34] sm:$0xf] %v369_v34  ;;  %v489_v42 = vrot.slane %v488_v30, 4  ;;  %v404_v45 = vshll.u32 %v137_v33, 16  ;;  %v121_v49 = vsel %vm2348_vm2, 0, %v120_v39 }
  0x17   :  { %v523_v46 = vld [vmem:[#allocation2 + $0x4c] sm:$0xf]  ;;  %v2476_v47 = vor.u32 %v254_v29, %v253_v36  ;;  %116 = vst [vmem:[#allocation2 + $0x3c] sm:$0x8] %v115_v43  ;;  %v403_v54 = vrot.slane %v401_v44, 7  ;;  %v482_v55 = vrot.slane %v401_v44, 4 }
  0x18   :  { %v334_v48 = vor.u32 %v333_v38, %v332_v37  ;;  %v524_v51 = vsel %vm2413_vm5, %v489_v42, %v523_v46  ;;  %v483_v56 = vrot.slane %v404_v45, 5  ;;  %122 = vst [vmem:[#allocation2 + $0x5c] sm:$0x8] %v121_v49  ;;  %v141_v58 = vld [vmem:[%s3204_s0 + $0x24] sm:$0xf]  ;;  %vm30_vm7 = vcmask 516096  }
  0x19   :  { %525 = vst [vmem:[#allocation2 + $0x4c] sm:$0xf] %v524_v51  ;;  %v2485_v59 = vor.u32 %v404_v45, %v403_v54  ;;  %v415_v61 = vshrl.u32 %v141_v58, 16  ;;  %v418_v62 = vshll.u32 %v141_v58, 16  ;;  %v75_v63 = vld [vmem:[#allocation2 + $0x64] sm:$0x8] }
  0x1a   :  { %v335_v57 = vrot.slane %v334_v48, 4  ;;  %v484_v60 = vor.u32 %v483_v56, %v482_v55  ;;  %v142_v2 = vld [vmem:[%s3204_s0 + $0x28] sm:$0xf]  ;;  %v76_v5 = vsel %vm2348_vm2, 0, %v75_v63  ;;  %v72_v23 = vld [vmem:[#allocation2 + $0x54] sm:$0x8] }
  0x1b   :  { %v371_v4 = vld [vmem:[#allocation2 + $0x44] sm:$0xf]  ;;  %v265_v6 = vshrl.u32 %v142_v2, 16  ;;  %v268_v7 = vshll.u32 %v142_v2, 16  ;;  %184 = vrot.lane.b32.xlu1 %v142_v2, %s2316_s22  ;;  %v417_v12 = vrot.slane %v415_v61, 7  ;;  %v490_v13 = vrot.slane %v415_v61, 4 }
  0x1c   :  { %v372_v9 = vsel %vm2413_vm5, %v335_v57, %v371_v4  ;;  %v485_v10 = vrot.slane %v484_v60, 4  ;;  %182 = vrot.lane.b32.xlu0 %v141_v58, %s2316_s22  ;;  %77 = vst [vmem:[#allocation2 + $0x64] sm:$0x8] %v76_v5  ;;  %v491_v15 = vrot.slane %v418_v62, 5  ;;  %v73_v28 = vsel %vm2348_vm2, 0, %v72_v23  ;;  %v2193_v5 = vld [vmem:[%s3205_s1 + $0x38] sm:$0xff] }
  0x1d   :  { %373 = vst [vmem:[#allocation2 + $0x44] sm:$0xf] %v372_v9  ;;  %v267_v16 = vrot.slane %v265_v6, 7  ;;  %v2496_v18 = vor.u32 %v418_v62, %v417_v12  ;;  %v340_v21 = vrot.slane %v265_v6, 4  ;;  %v341_v22 = vrot.slane %v268_v7, 5  ;;  %1054 = vmatpush.bf16.msra.mxu2 %v2193_v5 }
  0x1e   :  { %v520_v17 = vld [vmem:[#allocation2 + $0x3c] sm:$0xf]  ;;  %v492_v25 = vor.u32 %v491_v15, %v490_v13  ;;  %v2507_v29 = vld [vmem:[%s3204_s0 + $0x20] sm:$0xf]  ;;  %74 = vst [vmem:[#allocation2 + $0x54] sm:$0x8] %v73_v28 }
  0x1f   :  { %v521_v24 = vsel %vm2413_vm5, %v485_v10, %v520_v17  ;;  %v2500_v26 = vor.u32 %v268_v7, %v267_v16  ;;  %v526_v30 = vld [vmem:[#allocation2 + $0x5c] sm:$0xf]  ;;  %v342_v31 = vor.u32 %v341_v22, %v340_v21  ;;  %180 = vrot.lane.b32.xlu2 %v2507_v29, %s2316_s22  ;;  %v258_v34 = vshrl.u32 %v2507_v29, 16  ;;  %v2176_v48 = vld [vmem:[#allocation2 + $0x34] sm:$0xf]  ;;  %v2192_v16 = vld [vmem:[%s3205_s1 + $0x30] sm:$0xff] }
  0x20   :  { %522 = vst [vmem:[#allocation2 + $0x3c] sm:$0xf] %v521_v24  ;;  %v493_v33 = vrot.slane %v492_v25, 4  ;;  %v261_v36 = vshll.u32 %v2507_v29, 16  ;;  %v1813_v37 = vld [vmem:[#allocation2 + $0x48] sm:$0xf0] }
  0x21   :  { %v343_v38 = vrot.slane %v342_v31, 4  ;;  %v336_v43 = vrot.slane %v258_v34, 4  ;;  %v126_v60 = vld [vmem:[#allocation2 + $0x7c] sm:$0x8]  ;;  %v145_v61 = vld [vmem:[%s3204_s0 + $0x34] sm:$0xf]  ;;  %1055 = vmatpush.bf16.msra.mxu2 %v2192_v16 }
  0x22   :  { %v527_v39 = vsel %vm2413_vm5, %v493_v33, %v526_v30  ;;  %v337_v44 = vrot.slane %v261_v36, 5  ;;  %v127_v62 = vsel %vm2348_vm2, 0, %v126_v60  ;;  %v429_v63 = vshrl.u32 %v145_v61, 16  ;;  %v78_v4 = vld [vmem:[#allocation2 + $0x74] sm:$0x8] }
  0x23   :  { %v377_v42 = vld [vmem:[#allocation2 + $0x64] sm:$0xf]  ;;  %528 = vst [vmem:[#allocation2 + $0x5c] sm:$0xf] %v527_v39  ;;  %190 = vrot.lane.b32.xlu1 %v145_v61, %s2316_s22  ;;  %v432_v2 = vshll.u32 %v145_v61, 16  ;;  %v79_v9 = vsel %vm2348_vm2, 0, %v78_v4 }
  0x24   :  { %v2204_v45 = vld [vmem:[#allocation2 + $0x44] sm:$0xf]  ;;  %v378_v46 = vsel %vm2413_vm5, %v343_v38, %v377_v42  ;;  %v338_v51 = vor.u32 %v337_v44, %v336_v43  ;;  %128 = vst [vmem:[#allocation2 + $0x7c] sm:$0x8] %v127_v62  ;;  %v431_v6 = vrot.slane %v429_v63, 7  ;;  %v498_v7 = vrot.slane %v429_v63, 4 }
  0x25   :  { %v1816_v49 = vor.u32 %v2204_v45, %v1813_v37  ;;  %379 = vst [vmem:[#allocation2 + $0x64] sm:$0xf] %v378_v46  ;;  %v374_v57 = vld [vmem:[#allocation2 + $0x54] sm:$0xf]  ;;  %v144_v10 = vld [vmem:[%s3204_s0 + $0x30] sm:$0xf] }
  0x26   :  { %v339_v55 = vrot.slane %v338_v51, 4  ;;  %v499_v12 = vrot.slane %v432_v2, 5  ;;  %80 = vst [vmem:[#allocation2 + $0x74] sm:$0x8] %v79_v9  ;;  %v272_v13 = vshrl.u32 %v144_v10, 16  ;;  %v275_v15 = vshll.u32 %v144_v10, 16  ;;  %188 = vrot.lane.b32.xlu0 %v144_v10, %s2316_s22 }
  0x27   :  { %v1933_v54 = vld [vmem:[#allocation2 + $0x38] sm:$0xf0]  ;;  %1900 = vmatmul.msk.bf16.vlgmr.msra.gmra.mxu1 %vm763_vm6, %v1816_v49  ;;  %v2543_v17 = vor.u32 %v432_v2, %v431_v6  ;;  %v123_v21 = vld [vmem:[#allocation2 + $0x6c] sm:$0x8]  ;;  %v2548_v22 = vld [vmem:[%s3204_s0 + $0x2c] sm:$0xf] }
  0x28   :  { %v1936_v56 = vor.u32 %v2176_v48, %v1933_v54  ;;  %v375_v58 = vsel %vm2413_vm5, %v339_v55, %v374_v57  ;;  %v500_v24 = vor.u32 %v499_v12, %v498_v7  ;;  %v274_v25 = vrot.slane %v272_v13, 7  ;;  %186 = vrot.lane.b32.xlu2 %v2548_v22, %s2316_s22  ;;  %v1941_v38 = vld [vmem:[#allocation2 + $0x48] sm:$0xf0]  ;;  %v2191_v43 = vld [vmem:[%s3205_s1 + $0x28] sm:$0xff]  ;;  %v2190_v2 = vld [vmem:[%s3205_s1 + $0x20] sm:$0xff] }
  0x29   :  { %376 = vst [vmem:[#allocation2 + $0x54] sm:$0xf] %v375_v58  ;;  %v344_v28 = vrot.slane %v272_v13, 4  ;;  %v345_v30 = vrot.slane %v275_v15, 5  ;;  %v124_v33 = vsel %vm2348_vm2, 0, %v123_v21  ;;  %v422_v37 = vshrl.u32 %v2548_v22, 16  ;;  %1056 = vmatpush.bf16.msra.mxu2 %v2191_v43 }
  0x2a   :  { %2020 = vmatmul.msk.bf16.vlgmr.msra.gmra.mxu3 %vm763_vm6, %v1936_v56  ;;  %v1821_v23 = vld [vmem:[#allocation2 + $0x58] sm:$0xf0]  ;;  %v501_v39 = vrot.slane %v500_v24, 4  ;;  %v2555_v42 = vor.u32 %v275_v15, %v274_v25  ;;  %125 = vst [vmem:[#allocation2 + $0x6c] sm:$0x8] %v124_v33  ;;  %v425_v49 = vshll.u32 %v2548_v22, 16 }
  0x2b   :  { %v2178_v44 = vld [vmem:[#allocation2 + $0x44] sm:$0xf]  ;;  %v532_v46 = vld [vmem:[#allocation2 + $0x7c] sm:$0xf]  ;;  %v346_v48 = vor.u32 %v345_v30, %v344_v28  ;;  %v494_v51 = vrot.slane %v422_v37, 4  ;;  %v2221_v12 = vld [vmem:[%s3205_s1 + $0x98] sm:$0xff] }
  0x2c   :  { %v533_v54 = vsel %vm2413_vm5, %v501_v39, %v532_v46  ;;  %v495_v57 = vrot.slane %v425_v49, 5  ;;  %v1944_v58 = vor.u32 %v2178_v44, %v1941_v38  ;;  %v129_v4 = vld [vmem:[#allocation2 + $0x8c] sm:$0x8]  ;;  %v147_v5 = vld [vmem:[%s3204_s0 + $0x3c] sm:$0xf]  ;;  %788 = vmatpush.bf16.msra.mxu0 %v2221_v12  ;;  %vm21_vm10 = vcmask 1043456  }
  0x2d   :  { %534 = vst [vmem:[#allocation2 + $0x7c] sm:$0xf] %v533_v54  ;;  %v347_v55 = vrot.slane %v346_v48, 4  ;;  %v380_v56 = vld [vmem:[#allocation2 + $0x74] sm:$0xf]  ;;  %v130_v7 = vsel %vm2348_vm2, 0, %v129_v4  ;;  %1057 = vmatpush.bf16.msra.mxu2 %v2190_v2 }
  0x2e   :  { %v496_v61 = vor.u32 %v495_v57, %v494_v51  ;;  %v436_v9 = vshrl.u32 %v147_v5, 16  ;;  %v439_v10 = vshll.u32 %v147_v5, 16  ;;  %194 = vrot.lane.b32.xlu0 %v147_v5, %s2316_s22  ;;  %v2249_v13 = vld [vmem:[%s3205_s1 + $0xf8] sm:$0xff]  ;;  %vm31_vm8 = vsmask.f32 256  ;;  %v2248_v12 = vld [vmem:[%s3205_s1 + $0xf0] sm:$0xff] }
  0x2f   :  { %v381_v60 = vsel %vm2413_vm5, %v347_v55, %v380_v56  ;;  %v2189_v15 = vld [vmem:[%s3205_s1 + $0x18] sm:$0xff]  ;;  %131 = vst [vmem:[#allocation2 + $0x8c] sm:$0x8] %v130_v7  ;;  %1362 = vmatpush.bf16.msrb.mxu1 %v2249_v13  ;;  %vm2592_vm9 = vmand %vm30_vm7, %vm31_vm8  ;;  %v36_v25 = vld [vmem:[#allocation2 + $0x20] sm:$0x1]  ;;  %vm22_vm11 = vcmask 523268  }
  0x30   :  { %v2206_v31 = vld [vmem:[#allocation2 + $0x54] sm:$0xf]  ;;  %382 = vst [vmem:[#allocation2 + $0x74] sm:$0xf] %v381_v60  ;;  %v497_v62 = vrot.slane %v496_v61, 4  ;;  %v438_v16 = vrot.slane %v436_v9, 7  ;;  %vm2633_vm12 = vmor %vm22_vm11, %vm21_vm10 }
  0x31   :  { %v1824_v45 = vor.u32 %v2206_v31, %v1821_v23  ;;  %v529_v63 = vld [vmem:[#allocation2 + $0x6c] sm:$0xf]  ;;  %v502_v21 = vrot.slane %v436_v9, 4  ;;  %v503_v23 = vrot.slane %v439_v10, 5  ;;  %v37_v31 = vsel %vm2592_vm9, 0, %v36_v25  ;;  %1058 = vmatpush.bf16.msra.mxu2 %v2189_v15  ;;  %v2219_v25 = vld [vmem:[%s3205_s1 + $0x88] sm:$0xff] }
  0x32   :  { %v530_v6 = vsel %vm2413_vm5, %v497_v62, %v529_v63  ;;  %v2596_v28 = vor.u32 %v439_v10, %v438_v16  ;;  %38 = vst [vmem:[#allocation2 + $0x20] sm:$0x1] %v37_v31  ;;  %v2208_v33 = vld [vmem:[#allocation2 + $0x64] sm:$0xf]  ;;  %v2180_v39 = vld [vmem:[#allocation2 + $0x54] sm:$0xf] }
  0x33   :  { %531 = vst [vmem:[#allocation2 + $0x6c] sm:$0xf] %v530_v6  ;;  %v504_v30 = vor.u32 %v503_v23, %v502_v21  ;;  %v1949_v43 = vld [vmem:[#allocation2 + $0x58] sm:$0xf0]  ;;  %v81_v54 = vld [vmem:[#allocation2 + $0x84] sm:$0x8]  ;;  %1363 = vmatpush.bf16.msrb.mxu1 %v2248_v12 }
  0x34   :  { %v1952_v51 = vor.u32 %v2180_v39, %v1949_v43  ;;  %v82_v55 = vsel %vm2348_vm2, 0, %v81_v54  ;;  %v2609_v56 = vld [vmem:[%s3204_s0 + $0x38] sm:$0xf]  ;;  %v1837_v61 = vld [vmem:[#allocation2 + $0x78] sm:$0xf0]  ;;  %v2220_v9 = vld [vmem:[%s3205_s1 + $0x90] sm:$0xff] }
  0x35   :  { %v505_v38 = vrot.slane %v504_v30, 4  ;;  %83 = vst [vmem:[#allocation2 + $0x84] sm:$0x8] %v82_v55  ;;  %v279_v57 = vshrl.u32 %v2609_v56, 16  ;;  %192 = vrot.lane.b32.xlu2 %v2609_v56, %s2316_s22  ;;  %v2182_v63 = vld [vmem:[#allocation2 + $0x64] sm:$0xf]  ;;  %789 = vmatpush.bf16.msra.mxu0 %v2220_v9 }
  0x36   :  { %v535_v46 = vld [vmem:[#allocation2 + $0x8c] sm:$0xf]  ;;  %v33_v6 = vld [vmem:[#allocation2 + $0x10] sm:$0x1]  ;;  %v2187_v30 = vld [vmem:[%s3205_s1 + $0x8] sm:$0xff]  ;;  %v2317_v31 = vmov 0  }
  0x37   :  { %1901 = vmatmul.msk.bf16.gmra.mxu1 %vm763_vm6, %v1824_v45  ;;  %v536_v48 = vsel %vm2413_vm5, %v505_v38, %v535_v46  ;;  %v2210_v60 = vld [vmem:[#allocation2 + $0x74] sm:$0xf]  ;;  %v348_v62 = vrot.slane %v279_v57, 4  ;;  %v34_v7 = vsel %vm2592_vm9, 0, %v33_v6  ;;  %v2188_v10 = vld [vmem:[%s3205_s1 + $0x10] sm:$0xff]  ;;  %24 = vst.msk [vmem:[#allocation2] sm:$0xff] %vm2633_vm12, %v2317_v31 }
  0x38   :  { %537 = vst [vmem:[#allocation2 + $0x8c] sm:$0xf] %v536_v48  ;;  %v1840_v4 = vor.u32 %v2210_v60, %v1837_v61  ;;  %1059 = vmatpush.bf16.msra.mxu2 %v2188_v10  ;;  %1364 = vmatpush.bf16.msrb.mxu1 %v2247_v41  ;;  %v87_v38 = vld [vmem:[#allocation2 + $0x28] sm:$0x1]  ;;  %v84_v39 = vld [vmem:[#allocation2 + $0x18] sm:$0x1] }
  0x39   :  { %35 = vst [vmem:[#allocation2 + $0x10] sm:$0x1] %v34_v7  ;;  %790 = vmatpush.bf16.msra.mxu0 %v2219_v25  ;;  %v88_v43 = vsel %vm2592_vm9, 0, %v87_v38  ;;  %v2186_v46 = vld [vmem:[%s3205_s1] sm:$0xff]  ;;  %v2251_v6 = vld [vmem:[%s3205_s1 + $0x108] sm:$0xff]  ;;  %v2216_v7 = vld [vmem:[%s3205_s1 + $0x70] sm:$0xff] }
  0x3a   :  { %2021 = vmatmul.msk.bf16.gmra.mxu3 %vm763_vm6, %v1944_v58  ;;  %v1829_v44 = vld [vmem:[#allocation2 + $0x68] sm:$0xf0]  ;;  %v282_v58 = vshll.u32 %v2609_v56, 16  ;;  %25 = vst.msk [vmem:[#allocation2 + $0x8] sm:$0xff] %vm2633_vm12, %v2317_v31  ;;  %v2246_v48 = vld [vmem:[%s3205_s1 + $0xe0] sm:$0xff]  ;;  %vm212_vm13 = vcmask 1043968  }
  0x3b   :  { %v1832_v45 = vor.u32 %v2208_v33, %v1829_v44  ;;  %v1957_v2 = vld [vmem:[#allocation2 + $0x68] sm:$0xf0]  ;;  %v2253_v33 = vld [vmem:[%s3205_s1 + $0x118] sm:$0xff]  ;;  %27 = vst.msk [vmem:[#allocation2 + $0x90] sm:$0xff] %vm2633_vm12, %v2317_v31  ;;  %v85_v44 = vsel %vm2592_vm9, 0, %v84_v39  ;;  %v2250_v12 = vld [vmem:[%s3205_s1 + $0x100] sm:$0xff] }
  0x3c   :  { %v349_v1 = vrot.slane %v282_v58, 5  ;;  %v1960_v15 = vor.u32 %v2182_v63, %v1957_v2  ;;  %v383_v16 = vld [vmem:[#allocation2 + $0x84] sm:$0xf]  ;;  %1060 = vmatpush.bf16.msra.mxu2 %v2187_v30  ;;  %28 = vst.msk [vmem:[#allocation2 + $0x98] sm:$0xff] %vm2633_vm12, %v2317_v31  ;;  %1415 = vmatpush.bf16.msrb.mxu3 %v2253_v33  ;;  %v2184_v2 = vld [vmem:[#allocation2 + $0x74] sm:$0xf] }
  0x3d   :  { %89 = vst [vmem:[#allocation2 + $0x28] sm:$0x1] %v88_v43  ;;  %1365 = vmatpush.bf16.msrb.mxu1 %v2246_v48  ;;  %v2214_v25 = vld [vmem:[%s3205_s1 + $0x60] sm:$0xff]  ;;  %vm294_vm14 = vsmask.f32 7938  ;;  %vm1564_vm0 = vcmask 1041409  }
  0x3e   :  { %v350_v5 = vor.u32 %v349_v1, %v348_v62  ;;  %86 = vst [vmem:[#allocation2 + $0x18] sm:$0x1] %v85_v44  ;;  %v1907_v60 = vld [vmem:[#allocation2] sm:$0xf]  ;;  %v2217_v62 = vld [vmem:[%s3205_s1 + $0x78] sm:$0xff]  ;;  %vm2718_vm15 = vmand %vm293_vm3, %vm294_vm14  ;;  %vm1569_vm1 = vcmask 1043459  }
  0x3f   :  { %v1845_v55 = vld [vmem:[#allocation2 + $0x88] sm:$0xf0]  ;;  %v2245_v1 = vld [vmem:[%s3205_s1 + $0xd8] sm:$0xff]  ;;  %v2226_v38 = vld [vmem:[#allocation2 + $0x24] sm:$0xf]  ;;  %vm1572_vm2 = vcmask 1041408  }
  0x40   :  { %v351_v13 = vrot.slane %v350_v5, 4  ;;  %1061 = vmatpush.bf16.msra.mxu2 %v2186_v46  ;;  %v93_v39 = vld [vmem:[#allocation2 + $0x48] sm:$0x1] }
  0x41   :  { %v2171_v61 = vld [vmem:[#allocation2 + $0x4] sm:$0xf0]  ;;  %1366 = vmatpush.bf16.msrb.mxu1 %v2245_v1  ;;  %v94_v44 = vsel %vm2592_vm9, 0, %v93_v39 }
  0x42   :  { %v384_v21 = vsel %vm2413_vm5, %v351_v13, %v383_v16  ;;  %v1908_v63 = vor.u32 %v2171_v61, %v1907_v60  ;;  %v39_v13 = vld [vmem:[#allocation2 + $0x30] sm:$0x1]  ;;  %v2243_v16 = vld [vmem:[%s3205_s1 + $0xc8] sm:$0xff]  ;;  %95 = vst [vmem:[#allocation2 + $0x48] sm:$0x1] %v94_v44 }
  0x43   :  { %385 = vst [vmem:[#allocation2 + $0x84] sm:$0xf] %v384_v21  ;;  %v90_v21 = vld [vmem:[#allocation2 + $0x38] sm:$0x1]  ;;  %v2228_v60 = vld [vmem:[#allocation2 + $0x34] sm:$0xf] }
  0x44   :  { %1107 = vmatpush.bf16.msrb.mxu2 %v2358_v3  ;;  %v2244_v3 = vld [vmem:[%s3205_s1 + $0xd0] sm:$0xff]  ;;  %v91_v23 = vsel %vm2592_vm9, 0, %v90_v21  ;;  %v2061_v61 = vld [vmem:[#allocation2 + $0x38] sm:$0xf0] }
  0x45   :  { %1062 = vmatmul.bf16.vlgmr.msra.gmra.mxu2 %v1908_v63  ;;  %1367 = vmatpush.bf16.msrb.mxu1 %v2244_v3  ;;  %92 = vst [vmem:[#allocation2 + $0x38] sm:$0x1] %v91_v23 }
  0x47   :  { %1902 = vmatmul.msk.bf16.gmra.mxu1 %vm763_vm6, %v1832_v45  ;;  %v2218_v45 = vld [vmem:[%s3205_s1 + $0x80] sm:$0xff] }
  0x48   :  { %791 = vmatpush.bf16.msra.mxu0 %v2218_v45  ;;  %1108 = vmatpush.bf16.msrb.mxu2 %v2366_v8  ;;  %v40_v8 = vsel %vm2592_vm9, 0, %v39_v13 }
  0x49   :  { %41 = vst [vmem:[#allocation2 + $0x30] sm:$0x1] %v40_v8  ;;  %1368 = vmatpush.bf16.msrb.mxu1 %v2243_v16 }
  0x4a   :  { %2022 = vmatmul.msk.bf16.gmra.mxu3 %vm763_vm6, %v1952_v51  ;;  %v2252_v51 = vld [vmem:[%s3205_s1 + $0x110] sm:$0xff]  ;;  %v2212_v54 = vld [vmem:[#allocation2 + $0x84] sm:$0xf] }
  0x4b   :  { %1416 = vmatpush.bf16.msrb.mxu3 %v2252_v51  ;;  %v1848_v5 = vor.u32 %v2212_v54, %v1845_v55 }
  0x4c   :  { %792 = vmatpush.bf16.msra.mxu0 %v2217_v62  ;;  %1109 = vmatpush.bf16.msrb.mxu2 %v2387_v19  ;;  %v2242_v19 = vld [vmem:[%s3205_s1 + $0xc0] sm:$0xff] }
  0x4d   :  { %1369 = vmatpush.bf16.msrb.mxu1 %v2242_v19 }
  0x4f   :  { %1417 = vmatpush.bf16.msrb.mxu3 %v2251_v6 }
  0x50   :  { %793 = vmatpush.bf16.msra.mxu0 %v2216_v7  ;;  %1110 = vmatpush.bf16.msrb.mxu2 %v2409_v40  ;;  %v2053_v40 = vld [vmem:[#allocation2 + $0x28] sm:$0xf0] }
  0x51   :  { %v2056_v45 = vor.u32 %v2226_v38, %v2053_v40  ;;  %v2230_v38 = vld [vmem:[#allocation2 + $0x44] sm:$0xf]  ;;  %v2069_v40 = vld [vmem:[#allocation2 + $0x48] sm:$0xf0] }
  0x53   :  { %1418 = vmatpush.bf16.msrb.mxu3 %v2250_v12 }
  0x57   :  { %1903 = vmatmul.msk.bf16.gmra.mxu1 %vm763_vm6, %v1840_v4  ;;  %v1965_v4 = vld [vmem:[#allocation2 + $0x78] sm:$0xf0] }
  0x58   :  { %v1968_v9 = vor.u32 %v2184_v2, %v1965_v4  ;;  %v2064_v4 = vor.u32 %v2228_v60, %v2061_v61 }
  0x5a   :  { %2023 = vmatmul.msk.bf16.gmra.mxu3 %vm763_vm6, %v1960_v15  ;;  %v2215_v15 = vld [vmem:[%s3205_s1 + $0x68] sm:$0xff] }
  0x5b   :  { %794 = vmatpush.bf16.msra.mxu0 %v2215_v15 }
  0x5f   :  { %795 = vmatpush.bf16.msra.mxu0 %v2214_v25 }
  0x63   :  { %841 = vmatpush.bf16.msrb.mxu0 %v2377_v11 }
  0x67   :  { %1904 = vmatmul.msk.bf16.gmra.mxu1 %vm763_vm6, %v1848_v5  ;;  %v173_v10 = vpop.permute.xlu2 %172  ;;  %842 = vmatpush.bf16.msrb.mxu0 %v2404_v35 }
  0x68   :  { %217 = vst.msk [vmem:[#allocation2 + $0x30] sm:$0xf] %vm212_vm13, %v173_v10 }
  0x6a   :  { %2024 = vmatmul.msk.bf16.gmra.mxu3 %vm763_vm6, %v1968_v9  ;;  %v260_v9 = vrot.slane %v258_v34, 7 }
  0x6b   :  { %843 = vmatpush.bf16.msrb.mxu0 %v2429_v52 }
  0x6c   :  { %v263_v23 = vor.u32 %v261_v36, %v260_v9  ;;  %v99_v36 = vld [vmem:[#allocation2 + $0x68] sm:$0x1] }
  0x6f   :  { %v175_v30 = vpop.permute.xlu2 %174  ;;  %v302_v31 = vld [vmem:[#allocation2 + $0x30] sm:$0xf]  ;;  %844 = vmatpush.bf16.msrb.mxu0 %v2449_v0 }
  0x70   :  { %218 = vst.msk [vmem:[#allocation2 + $0x38] sm:$0xf] %vm212_vm13, %v175_v30  ;;  %v303_v33 = vsel %vm2718_vm15, %v2454_v14, %v302_v31 }
  0x71   :  { %304 = vst [vmem:[#allocation2 + $0x30] sm:$0xf] %v303_v33 }
  0x74   :  { %v169_v43 = vpop.permute.xlu1 %168 }
  0x75   :  { %215 = vst.msk [vmem:[#allocation2 + $0x20] sm:$0xf] %vm212_vm13, %v169_v43  ;;  %v48_v43 = vld [vmem:[#allocation2 + $0x60] sm:$0x1] }
  0x76   :  { %v165_v11 = vpop.permute.xlu0 %164  ;;  %v49_v44 = vsel %vm2592_vm9, 0, %v48_v43 }
  0x77   :  { %213 = vst.msk [vmem:[#allocation2 + $0x10] sm:$0xf] %vm212_vm13, %v165_v11  ;;  %v456_v46 = vld [vmem:[#allocation2 + $0x38] sm:$0xf] }
  0x78   :  { %v457_v14 = vsel %vm2718_vm15, %v2485_v59, %v456_v46  ;;  %v42_v59 = vld [vmem:[#allocation2 + $0x40] sm:$0x1]  ;;  %v2072_v46 = vor.u32 %v2230_v38, %v2069_v40  ;;  %50 = vst [vmem:[#allocation2 + $0x60] sm:$0x1] %v49_v44  ;;  %v1803_v9 = vld [vmem:[#allocation2 + $0x30] sm:$0xf] }
  0x79   :  { %458 = vst [vmem:[#allocation2 + $0x38] sm:$0xf] %v457_v14  ;;  %v43_v0 = vsel %vm2592_vm9, 0, %v42_v59  ;;  %v181_v3 = vpop.permute.xlu2 %180  ;;  %v105_v38 = vld [vmem:[#allocation2 + $0x88] sm:$0x1] }
  0x7a   :  { %2161 = vmatmul.msk.bf16.vlgmr.msrb.gmra.mxu3 %vm763_vm6, %v2056_v45  ;;  %44 = vst [vmem:[#allocation2 + $0x40] sm:$0x1] %v43_v0  ;;  %v424_v45 = vrot.slane %v422_v37, 7 }
  0x7c   :  { %v299_v48 = vld [vmem:[#allocation2 + $0x20] sm:$0xf]  ;;  %v171_v51 = vpop.permute.xlu1 %170 }
  0x7d   :  { %v300_v35 = vsel %vm2718_vm15, %v2389_v20, %v299_v48  ;;  %216 = vst.msk [vmem:[#allocation2 + $0x28] sm:$0xf] %vm212_vm13, %v171_v51  ;;  %v45_v20 = vld [vmem:[#allocation2 + $0x50] sm:$0x1] }
  0x7e   :  { %301 = vst [vmem:[#allocation2 + $0x20] sm:$0xf] %v300_v35  ;;  %v296_v54 = vld [vmem:[#allocation2 + $0x10] sm:$0xf]  ;;  %v167_v55 = vpop.permute.xlu0 %166  ;;  %v46_v6 = vsel %vm2592_vm9, 0, %v45_v20 }
  0x7f   :  { %v297_v52 = vsel %vm2718_vm15, %v2397_v32, %v296_v54  ;;  %214 = vst.msk [vmem:[#allocation2 + $0x18] sm:$0xf] %vm212_vm13, %v167_v55  ;;  %v96_v32 = vld [vmem:[#allocation2 + $0x58] sm:$0x1]  ;;  %v2059_v51 = vld [vmem:[#allocation2 + $0x30] sm:$0xf]  ;;  %v427_v54 = vor.u32 %v425_v49, %v424_v45 }
  0x80   :  { %298 = vst [vmem:[#allocation2 + $0x10] sm:$0xf] %v297_v52  ;;  %v2229_v35 = vld [vmem:[#allocation2 + $0x34] sm:$0xf0] }
  0x81   :  { %47 = vst [vmem:[#allocation2 + $0x50] sm:$0x1] %v46_v6  ;;  %v2060_v37 = vor.u32 %v2229_v35, %v2059_v51 }
  0x82   :  { %221 = vst.msk [vmem:[#allocation2 + $0x50] sm:$0xf] %vm212_vm13, %v181_v3  ;;  %v187_v39 = vpop.permute.xlu2 %186 }
  0x84   :  { %v453_v62 = vld [vmem:[#allocation2 + $0x28] sm:$0xf]  ;;  %v179_v1 = vpop.permute.xlu1 %178 }
  0x85   :  { %v454_v63 = vsel %vm2718_vm15, %v2423_v50, %v453_v62  ;;  %220 = vst.msk [vmem:[#allocation2 + $0x48] sm:$0xf] %vm212_vm13, %v179_v1  ;;  %v97_v50 = vsel %vm2592_vm9, 0, %v96_v32  ;;  %v2051_v10 = vld [vmem:[#allocation2 + $0x20] sm:$0xf] }
  0x86   :  { %455 = vst [vmem:[#allocation2 + $0x28] sm:$0xf] %v454_v63  ;;  %v450_v2 = vld [vmem:[#allocation2 + $0x18] sm:$0xf]  ;;  %v177_v5 = vpop.permute.xlu0 %176  ;;  %v1795_v55 = vld [vmem:[#allocation2 + $0x20] sm:$0xf] }
  0x87   :  { %v451_v7 = vsel %vm2718_vm15, %v2431_v53, %v450_v2  ;;  %219 = vst.msk [vmem:[#allocation2 + $0x40] sm:$0xf] %vm212_vm13, %v177_v5  ;;  %v1787_v13 = vld [vmem:[#allocation2 + $0x10] sm:$0xf]  ;;  %v1923_v0 = vld [vmem:[#allocation2 + $0x20] sm:$0xf] }
  0x88   :  { %452 = vst [vmem:[#allocation2 + $0x18] sm:$0xf] %v451_v7  ;;  %v1915_v16 = vld [vmem:[#allocation2 + $0x10] sm:$0xf]  ;;  %v2232_v62 = vld [vmem:[#allocation2 + $0x54] sm:$0xf] }
  0x89   :  { %98 = vst [vmem:[#allocation2 + $0x58] sm:$0x1] %v97_v50  ;;  %v2077_v1 = vld [vmem:[#allocation2 + $0x58] sm:$0xf0]  ;;  %v102_v63 = vld [vmem:[#allocation2 + $0x78] sm:$0x1] }
  0x8a   :  { %2162 = vmatmul.msk.bf16.gmra.mxu3 %vm763_vm6, %v2064_v4  ;;  %v51_v2 = vld [vmem:[#allocation2 + $0x70] sm:$0x1]  ;;  %v103_v4 = vsel %vm2592_vm9, 0, %v102_v63 }
  0x8b   :  { %v52_v5 = vsel %vm2592_vm9, 0, %v51_v2  ;;  %104 = vst [vmem:[#allocation2 + $0x78] sm:$0x1] %v103_v4  ;;  %v2238_v2 = vld [vmem:[#allocation2 + $0x84] sm:$0xf] }
  0x8c   :  { %v459_v12 = vld [vmem:[#allocation2 + $0x48] sm:$0xf]  ;;  %53 = vst [vmem:[#allocation2 + $0x70] sm:$0x1] %v52_v5  ;;  %v2101_v4 = vld [vmem:[#allocation2 + $0x88] sm:$0xf0] }
  0x8d   :  { %v2227_v53 = vld [vmem:[#allocation2 + $0x24] sm:$0xf0]  ;;  %v460_v15 = vsel %vm2718_vm15, %v2465_v27, %v459_v12  ;;  %v308_v27 = vld [vmem:[#allocation2 + $0x50] sm:$0xf]  ;;  %v185_v11 = vpop.permute.xlu1 %184 }
  0x8e   :  { %v2052_v8 = vor.u32 %v2227_v53, %v2051_v10  ;;  %461 = vst [vmem:[#allocation2 + $0x48] sm:$0xf] %v460_v15  ;;  %v305_v21 = vld [vmem:[#allocation2 + $0x40] sm:$0xf]  ;;  %v183_v25 = vpop.permute.xlu0 %182  ;;  %v309_v29 = vsel %vm2718_vm15, %v263_v23, %v308_v27  ;;  %v2201_v59 = vld [vmem:[#allocation2 + $0x24] sm:$0xf0] }
  0x8f   :  { %v2199_v34 = vld [vmem:[#allocation2 + $0x14] sm:$0xf0]  ;;  %v306_v30 = vsel %vm2718_vm15, %v2476_v47, %v305_v21  ;;  %222 = vst.msk [vmem:[#allocation2 + $0x58] sm:$0xf] %vm212_vm13, %v183_v25  ;;  %v100_v47 = vsel %vm2592_vm9, 0, %v99_v36  ;;  %v1796_v22 = vor.u32 %v2201_v59, %v1795_v55  ;;  %v193_v27 = vpop.permute.xlu2 %192 }
  0x90   :  { %v2173_v19 = vld [vmem:[#allocation2 + $0x14] sm:$0xf0]  ;;  %v1788_v31 = vor.u32 %v2199_v34, %v1787_v13  ;;  %1370 = vmatmul.bf16.vlgmr.msrb.gmra.mxu1 %v2052_v8  ;;  %307 = vst [vmem:[#allocation2 + $0x40] sm:$0xf] %v306_v30  ;;  %v2175_v60 = vld [vmem:[#allocation2 + $0x24] sm:$0xf0] }
  0x91   :  { %v1916_v33 = vor.u32 %v2173_v19, %v1915_v16  ;;  %310 = vst [vmem:[#allocation2 + $0x50] sm:$0xf] %v309_v29  ;;  %v1924_v49 = vor.u32 %v2175_v60, %v1923_v0  ;;  %v2203_v10 = vld [vmem:[#allocation2 + $0x34] sm:$0xf0]  ;;  %v1931_v13 = vld [vmem:[#allocation2 + $0x30] sm:$0xf] }
  0x92   :  { %796 = vmatmul.bf16.vlgmr.msra.gmra.mxu0 %v1788_v31  ;;  %101 = vst [vmem:[#allocation2 + $0x68] sm:$0x1] %v100_v47  ;;  %v2177_v53 = vld [vmem:[#allocation2 + $0x34] sm:$0xf0]  ;;  %v1804_v23 = vor.u32 %v2203_v10, %v1803_v9  ;;  %v2234_v30 = vld [vmem:[#allocation2 + $0x64] sm:$0xf] }
  0x93   :  { %1067 = vmatmul.bf16.gmra.mxu2 %v1916_v33  ;;  %224 = vst.msk [vmem:[#allocation2 + $0x68] sm:$0xf] %vm212_vm13, %v187_v39  ;;  %v1932_v25 = vor.u32 %v2177_v53, %v1931_v13  ;;  %v2085_v31 = vld [vmem:[#allocation2 + $0x68] sm:$0xf0]  ;;  %v54_v33 = vld [vmem:[#allocation2 + $0x80] sm:$0x1] }
  0x94   :  { %223 = vst.msk [vmem:[#allocation2 + $0x60] sm:$0xf] %vm212_vm13, %v185_v11  ;;  %v106_v29 = vsel %vm2592_vm9, 0, %v105_v38  ;;  %v2088_v36 = vor.u32 %v2234_v30, %v2085_v31  ;;  %v281_v39 = vrot.slane %v279_v57, 7 }
  0x95   :  { %v191_v32 = vpop.permute.xlu1 %190  ;;  %v2231_v3 = vld [vmem:[#allocation2 + $0x44] sm:$0xf0]  ;;  %107 = vst [vmem:[#allocation2 + $0x88] sm:$0x1] %v106_v29 }
  0x96   :  { %v462_v14 = vld [vmem:[#allocation2 + $0x58] sm:$0xf]  ;;  %226 = vst.msk [vmem:[#allocation2 + $0x78] sm:$0xf] %vm212_vm13, %v191_v32  ;;  %v2205_v44 = vld [vmem:[#allocation2 + $0x44] sm:$0xf0]  ;;  %v284_v11 = vor.u32 %v282_v58, %v281_v39 }
  0x97   :  { %v463_v48 = vsel %vm2718_vm15, %v2496_v18, %v462_v14  ;;  %v2067_v7 = vld [vmem:[#allocation2 + $0x40] sm:$0xf]  ;;  %v2236_v58 = vld [vmem:[#allocation2 + $0x74] sm:$0xf] }
  0x98   :  { %464 = vst [vmem:[#allocation2 + $0x58] sm:$0xf] %v463_v48  ;;  %v189_v6 = vpop.permute.xlu0 %188  ;;  %v2068_v12 = vor.u32 %v2231_v3, %v2067_v7  ;;  %v2075_v47 = vld [vmem:[#allocation2 + $0x50] sm:$0xf]  ;;  %v1811_v24 = vld [vmem:[#allocation2 + $0x40] sm:$0xf] }
  0x99   :  { %225 = vst.msk [vmem:[#allocation2 + $0x70] sm:$0xf] %vm212_vm13, %v189_v6  ;;  %v1939_v45 = vld [vmem:[#allocation2 + $0x40] sm:$0xf]  ;;  %v1812_v35 = vor.u32 %v2205_v44, %v1811_v24  ;;  %v2104_v6 = vor.u32 %v2238_v2, %v2101_v4 }
  0x9a   :  { %2163 = vmatmul.msk.bf16.gmra.mxu3 %vm763_vm6, %v2072_v46  ;;  %v465_v52 = vld [vmem:[#allocation2 + $0x68] sm:$0xf] }
  0x9b   :  { %v466_v61 = vsel %vm2718_vm15, %v427_v54, %v465_v52  ;;  %v311_v18 = vld [vmem:[#allocation2 + $0x60] sm:$0xf]  ;;  %v2179_v46 = vld [vmem:[#allocation2 + $0x44] sm:$0xf0]  ;;  %v2093_v52 = vld [vmem:[#allocation2 + $0x78] sm:$0xf0] }
  0x9c   :  { %467 = vst [vmem:[#allocation2 + $0x68] sm:$0xf] %v466_v61  ;;  %v312_v20 = vsel %vm2718_vm15, %v2500_v26, %v311_v18  ;;  %v2080_v26 = vor.u32 %v2232_v62, %v2077_v1  ;;  %v1940_v54 = vor.u32 %v2179_v46, %v1939_v45  ;;  %v2096_v0 = vor.u32 %v2236_v58, %v2093_v52  ;;  %v2107_v45 = vld [vmem:[#allocation2 + $0x90] sm:$0xf]  ;;  %v2241_v46 = vld [vmem:[#allocation2 + $0x94] sm:$0xf0] }
  0x9d   :  { %313 = vst [vmem:[#allocation2 + $0x60] sm:$0xf] %v312_v20  ;;  %v468_v16 = vld [vmem:[#allocation2 + $0x78] sm:$0xf]  ;;  %v1819_v20 = vld [vmem:[#allocation2 + $0x50] sm:$0xf] }
  0x9e   :  { %v469_v8 = vsel %vm2718_vm15, %v2543_v17, %v468_v16  ;;  %v55_v17 = vsel %vm2592_vm9, 0, %v54_v33 }
  0x9f   :  { %470 = vst [vmem:[#allocation2 + $0x78] sm:$0xf] %v469_v8  ;;  %v2233_v43 = vld [vmem:[#allocation2 + $0x54] sm:$0xf0] }
  0xa0   :  { %1375 = vmatmul.bf16.gmra.mxu1 %v2060_v37  ;;  %v314_v21 = vld [vmem:[#allocation2 + $0x70] sm:$0xf]  ;;  %56 = vst [vmem:[#allocation2 + $0x80] sm:$0x1] %v55_v17  ;;  %v2076_v14 = vor.u32 %v2233_v43, %v2075_v47  ;;  %v2181_v62 = vld [vmem:[#allocation2 + $0x54] sm:$0xf0] }
  0xa1   :  { %v315_v34 = vsel %vm2718_vm15, %v2555_v42, %v314_v21  ;;  %v195_v42 = vpop.permute.xlu0 %194  ;;  %227 = vst.msk [vmem:[#allocation2 + $0x80] sm:$0xf] %vm212_vm13, %v193_v27 }
  0xa2   :  { %801 = vmatmul.bf16.gmra.mxu0 %v1796_v22  ;;  %316 = vst [vmem:[#allocation2 + $0x70] sm:$0xf] %v315_v34  ;;  %v2207_v22 = vld [vmem:[#allocation2 + $0x54] sm:$0xf0] }
  0xa3   :  { %1072 = vmatmul.bf16.gmra.mxu2 %v1924_v49  ;;  %228 = vst.msk [vmem:[#allocation2 + $0x88] sm:$0xf] %vm212_vm13, %v195_v42  ;;  %v2235_v18 = vld [vmem:[#allocation2 + $0x64] sm:$0xf0]  ;;  %v1947_v49 = vld [vmem:[#allocation2 + $0x50] sm:$0xf]  ;;  %v1820_v1 = vor.u32 %v2207_v22, %v1819_v20 }
  0xa4   :  { %v2798_v50 = vpop.f32.mrf.mxu1  ;;  %v2083_v61 = vld [vmem:[#allocation2 + $0x60] sm:$0xf]  ;;  %v1948_v63 = vor.u32 %v2181_v62, %v1947_v49  ;;  %v2209_v9 = vld [vmem:[#allocation2 + $0x64] sm:$0xf0]  ;;  %v1789_v22 = vld [vmem:[#allocation2 + $0x18] sm:$0xf0] }
  0xa5   :  { %v2084_v41 = vor.u32 %v2235_v18, %v2083_v61  ;;  %v1827_v3 = vld [vmem:[#allocation2 + $0x60] sm:$0xf]  ;;  %v2198_v61 = vld [vmem:[#allocation2 + $0x14] sm:$0xf]  ;;  %v1917_v62 = vld [vmem:[#allocation2 + $0x18] sm:$0xf0] }
  0xa6   :  { %v2237_v7 = vld [vmem:[#allocation2 + $0x74] sm:$0xf0]  ;;  %v1955_v10 = vld [vmem:[#allocation2 + $0x60] sm:$0xf]  ;;  %v1828_v8 = vor.u32 %v2209_v9, %v1827_v3  ;;  %v2172_v49 = vld [vmem:[#allocation2 + $0x14] sm:$0xf] }
  0xa7   :  { %v2211_v38 = vld [vmem:[#allocation2 + $0x74] sm:$0xf0]  ;;  %v1920_v2 = vor.u32 %v2172_v49, %v1917_v62 }
  0xa8   :  { %v317_v51 = vld [vmem:[#allocation2 + $0x80] sm:$0xf]  ;;  %v2185_v42 = vld [vmem:[#allocation2 + $0x74] sm:$0xf0] }
  0xa9   :  { %v318_v37 = vsel %vm2718_vm15, %v284_v11, %v317_v51  ;;  %v1835_v17 = vld [vmem:[#allocation2 + $0x70] sm:$0xf] }
  0xaa   :  { %2164 = vmatmul.msk.bf16.gmra.mxu3 %vm763_vm6, %v2080_v26  ;;  %319 = vst [vmem:[#allocation2 + $0x80] sm:$0xf] %v318_v37  ;;  %v471_v55 = vld [vmem:[#allocation2 + $0x88] sm:$0xf]  ;;  %v2091_v26 = vld [vmem:[#allocation2 + $0x70] sm:$0xf]  ;;  %v1836_v47 = vor.u32 %v2211_v38, %v1835_v17  ;;  %v2108_v37 = vor.u32 %v2241_v46, %v2107_v45 }
  0xab   :  { %v472_v56 = vsel %vm2718_vm15, %v2596_v28, %v471_v55  ;;  %v2092_v53 = vor.u32 %v2237_v7, %v2091_v26  ;;  %v1963_v29 = vld [vmem:[#allocation2 + $0x70] sm:$0xf]  ;;  %v1805_v45 = vld [vmem:[#allocation2 + $0x38] sm:$0xf0] }
  0xac   :  { %v2809_v19 = vpop.f32.mrf.mxu1  ;;  %473 = vst [vmem:[#allocation2 + $0x88] sm:$0xf] %v472_v56  ;;  %v1964_v43 = vor.u32 %v2185_v42, %v1963_v29 }
  0xad   :  { %v2801_v15 = vpop.f32.mrf.mxu3 }
  0xb0   :  { %1380 = vmatmul.bf16.gmra.mxu1 %v2068_v12  ;;  %v2183_v12 = vld [vmem:[#allocation2 + $0x64] sm:$0xf0] }
  0xb1   :  { %v1956_v21 = vor.u32 %v2183_v12, %v1955_v10  ;;  %v2099_v33 = vld [vmem:[#allocation2 + $0x80] sm:$0xf]  ;;  %v2200_v10 = vld [vmem:[#allocation2 + $0x24] sm:$0xf]  ;;  %v1797_v12 = vld [vmem:[#allocation2 + $0x28] sm:$0xf0] }
  0xb2   :  { %806 = vmatmul.bf16.gmra.mxu0 %v1804_v23  ;;  %v2240_v23 = vld [vmem:[#allocation2 + $0x94] sm:$0xf] }
  0xb3   :  { %1077 = vmatmul.bf16.gmra.mxu2 %v1932_v25  ;;  %v2109_v25 = vld [vmem:[#allocation2 + $0x98] sm:$0xf0]  ;;  %v2239_v27 = vld [vmem:[#allocation2 + $0x84] sm:$0xf0] }
  0xb4   :  { %v2824_v48 = vpop.f32.mrf.mxu1  ;;  %v2112_v31 = vor.u32 %v2240_v23, %v2109_v25  ;;  %v2213_v51 = vld [vmem:[#allocation2 + $0x84] sm:$0xf0] }
  0xb5   :  { %v2813_v40 = vpop.f32.mrf.mxu3 }
  0xba   :  { %2165 = vmatmul.msk.bf16.gmra.mxu3 %vm763_vm6, %v2088_v36  ;;  %v2100_v36 = vor.u32 %v2239_v27, %v2099_v33 }
  0xbc   :  { %v2835_v60 = vpop.f32.mrf.mxu1 }
  0xbd   :  { %v2826_v57 = vpop.f32.mrf.mxu3 }
  0xc0   :  { %1385 = vmatmul.bf16.gmra.mxu1 %v2076_v14  ;;  %v1843_v14 = vld [vmem:[#allocation2 + $0x80] sm:$0xf] }
  0xc1   :  { %v1844_v55 = vor.u32 %v2213_v51, %v1843_v14 }
  0xc2   :  { %811 = vmatmul.bf16.gmra.mxu0 %v1812_v35  ;;  %v2170_v35 = vld [vmem:[#allocation2 + $0x4] sm:$0xf] }
  0xc3   :  { %1082 = vmatmul.bf16.gmra.mxu2 %v1940_v54  ;;  %v1909_v54 = vld [vmem:[#allocation2 + $0x8] sm:$0xf0] }
  0xc4   :  { %v2840_v32 = vpop.f32.mrf.mxu1  ;;  %v1912_v56 = vor.u32 %v2170_v35, %v1909_v54 }
  0xc5   :  { %v2833_v59 = vpop.f32.mrf.mxu3 }
  0xc8   :  { %v2862_v52 = vpop.f32.mrf.mxu2 }
  0xca   :  { %2166 = vmatmul.msk.bf16.gmra.mxu3 %vm763_vm6, %v2096_v0 }
  0xcc   :  { %v2845_v13 = vpop.f32.mrf.mxu1 }
  0xcd   :  { %v2838_v28 = vpop.f32.mrf.mxu3 }
  0xd0   :  { %1390 = vmatmul.bf16.gmra.mxu1 %v2084_v41  ;;  %v2867_v20 = vpop.f32.mrf.mxu2 }
  0xd2   :  { %816 = vmatmul.bf16.gmra.mxu0 %v1820_v1 }
  0xd3   :  { %1087 = vmatmul.bf16.gmra.mxu2 %v1948_v63  ;;  %v1792_v63 = vor.u32 %v2198_v61, %v1789_v22 }
  0xd4   :  { %v2849_v34 = vpop.f32.mrf.mxu1 }
  0xd5   :  { %v2842_v5 = vpop.f32.mrf.mxu3 }
  0xda   :  { %2167 = vmatmul.msk.bf16.gmra.mxu3 %vm763_vm6, %v2104_v6 }
  0xdc   :  { %v2856_v44 = vpop.f32.mrf.mxu1 }
  0xdd   :  { %v2847_v16 = vpop.f32.mrf.mxu3 }
  0xe0   :  { %1395 = vmatmul.bf16.gmra.mxu1 %v2092_v53  ;;  %v2174_v53 = vld [vmem:[#allocation2 + $0x24] sm:$0xf] }
  0xe2   :  { %821 = vmatmul.bf16.gmra.mxu0 %v1828_v8  ;;  %v1925_v8 = vld [vmem:[#allocation2 + $0x28] sm:$0xf0] }
  0xe3   :  { %1092 = vmatmul.bf16.gmra.mxu2 %v1956_v21  ;;  %v1928_v33 = vor.u32 %v2174_v53, %v1925_v8 }
  0xe4   :  { %v2860_v24 = vpop.f32.mrf.mxu1 }
  0xe5   :  { %v2851_v30 = vpop.f32.mrf.mxu3 }
  0xea   :  { %2168 = vmatmul.msk.bf16.gmra.mxu3 %vm763_vm6, %v2112_v31  ;;  %v1800_v31 = vor.u32 %v2200_v10, %v1797_v12 }
  0xec   :  { %v2865_v0 = vpop.f32.mrf.mxu1 }
  0xed   :  { %v2854_v39 = vpop.f32.mrf.mxu3 }
  0xf0   :  { %1400 = vmatmul.bf16.gmra.mxu1 %v2100_v36 }
  0xf2   :  { %826 = vmatmul.bf16.gmra.mxu0 %v1836_v47 }
  0xf3   :  { %1097 = vmatmul.bf16.gmra.mxu2 %v1964_v43  ;;  %v2202_v43 = vld [vmem:[#allocation2 + $0x34] sm:$0xf] }
  0xf4   :  { %v1808_v51 = vor.u32 %v2202_v43, %v1805_v45 }
  0xf5   :  { %v2858_v11 = vpop.f32.mrf.mxu3 }
  0xf6   :  { %3220 = vst [vmem:[#allocation3_spill] sm:$0xff] %v2858_v11 }
  0xfd   :  { %v1420_v58 = vpop.f32.mrf.mxu3 }
 0x100   :  { %1405 = vmatmul.bf16.gmra.mxu1 %v2108_v37 }
 0x102   :  { %831 = vmatmul.bf16.gmra.mxu0 %v1844_v55 }
 0x103   :  { %2017 = vmatmul.msk.bf16.vlgmr.msrb.gmra.mxu2 %vm763_vm6, %v1912_v56 }
 0x105   :  { %v1422_v18 = vpop.f32.mrf.mxu3 }
 0x10d   :  { %v1371_v41 = vpop.f32.mrf.mxu1  ;;  %v1425_v6 = vpop.f32.mrf.mxu3 }
 0x10e   :  { %v2869_v1 = vadd.f32 %v1420_v58, %v1371_v41 }
 0x10f   :  { %v2871_v4 = vpop.f32.mrf.mxu0 }
 0x112   :  { %1897 = vmatmul.msk.bf16.vlgmr.msrb.gmra.mxu0 %vm763_vm6, %v1792_v63 }
 0x113   :  { %2018 = vmatmul.msk.bf16.gmra.mxu2 %vm763_vm6, %v1920_v2 }
 0x115   :  { %v1373_v7 = vpop.f32.mrf.mxu1  ;;  %v1427_v17 = vpop.f32.mrf.mxu3 }
 0x116   :  { %v2875_v26 = vpop.f32.mrf.mxu2  ;;  %v2877_v3 = vadd.f32 %v1422_v18, %v1373_v7 }
 0x117   :  { %v2879_v9 = vpop.f32.mrf.mxu0 }
 0x11d   :  { %v1376_v23 = vpop.f32.mrf.mxu1  ;;  %v1430_v47 = vpop.f32.mrf.mxu3 }
 0x11e   :  { %v2881_v21 = vpop.f32.mrf.mxu2  ;;  %v2883_v25 = vadd.f32 %v1425_v6, %v1376_v23 }
 0x11f   :  { %v2885_v27 = vpop.f32.mrf.mxu0 }
 0x122   :  { %1898 = vmatmul.msk.bf16.gmra.mxu0 %vm763_vm6, %v1800_v31 }
 0x123   :  { %2019 = vmatmul.msk.bf16.gmra.mxu2 %vm763_vm6, %v1928_v33 }
 0x125   :  { %v1378_v29 = vpop.f32.mrf.mxu1  ;;  %v1432_v37 = vpop.f32.mrf.mxu3 }
 0x126   :  { %v2889_v38 = vpop.f32.mrf.mxu2  ;;  %v2891_v42 = vadd.f32 %v1427_v17, %v1378_v29 }
 0x127   :  { %v2893_v36 = vpop.f32.mrf.mxu0 }
 0x12d   :  { %v1381_v14 = vpop.f32.mrf.mxu1  ;;  %v1435_v18 = vpop.f32.mrf.mxu3 }
 0x12e   :  { %v2895_v46 = vpop.f32.mrf.mxu2  ;;  %v2897_v35 = vadd.f32 %v1430_v47, %v1381_v14 }
 0x12f   :  { %v2899_v54 = vpop.f32.mrf.mxu0 }
 0x132   :  { %1899 = vmatmul.msk.bf16.gmra.mxu0 %vm763_vm6, %v1808_v51  ;;  %vm1628_vm6 = vcmask 64512  }
 0x135   :  { %v1383_v56 = vpop.f32.mrf.mxu1 }
 0x136   :  { %v1078_v55 = vpop.f32.mrf.mxu2  ;;  %v2902_v58 = vadd.f32 %v1432_v37, %v1383_v56 }
 0x137   :  { %v2904_v61 = vpop.f32.mrf.mxu0 }
 0x138   :  { %3221 = vst [vmem:[#allocation4_spill] sm:$0xff] %v2902_v58 }
 0x13d   :  { %v1386_v49 = vpop.f32.mrf.mxu1 }
 0x13e   :  { %v1080_v22 = vpop.f32.mrf.mxu2  ;;  %v1436_v62 = vadd.f32 %v1435_v18, %v1386_v49  ;;  %v1437_v18 = vpop.f32.mrf.mxu3 }
 0x13f   :  { %v812_v41 = vpop.f32.mrf.mxu0 }
 0x140   :  { %v862_v63 = vadd.f32 %v2798_v50, %v812_v41 }
 0x142   :  { %v1079_v2 = vadd.f32 %v1078_v55, %v862_v63 }
 0x144   :  { %v1128_v6 = vadd.f32 %v2801_v15, %v1079_v2 }
 0x146   :  { %v1083_v7 = vpop.f32.mrf.mxu2  ;;  %v2908_v10 = vadd.f32 %v1436_v62, %v1128_v6  ;;  %v1440_v63 = vpop.f32.mrf.mxu3 }
 0x147   :  { %v814_v12 = vpop.f32.mrf.mxu0 }
 0x148   :  { %v864_v53 = vadd.f32 %v2809_v19, %v814_v12 }
 0x14a   :  { %v2911_v8 = vadd.f32 %v1080_v22, %v864_v53 }
 0x14e   :  { %v1085_v23 = vpop.f32.mrf.mxu2  ;;  %v2933_v53 = vpop.f32.mrf.mxu3 }
 0x14f   :  { %v817_v31 = vpop.f32.mrf.mxu0 }
 0x150   :  { %v867_v33 = vadd.f32 %v2824_v48, %v817_v31  ;;  %v1388_v48 = vpop.f32.mrf.mxu1 }
 0x152   :  { %v2914_v17 = vadd.f32 %v1083_v7, %v867_v33 }
 0x156   :  { %v1088_v29 = vpop.f32.mrf.mxu2 }
 0x157   :  { %v819_v47 = vpop.f32.mrf.mxu0 }
 0x158   :  { %v869_v50 = vadd.f32 %v2835_v60, %v819_v47  ;;  %v1391_v41 = vpop.f32.mrf.mxu1 }
 0x15a   :  { %v2917_v43 = vadd.f32 %v1085_v23, %v869_v50  ;;  %v1445_v50 = vpop.f32.mrf.mxu3 }
 0x15e   :  { %v1090_v15 = vpop.f32.mrf.mxu2 }
 0x15f   :  { %v822_v45 = vpop.f32.mrf.mxu0 }
 0x160   :  { %v872_v14 = vadd.f32 %v2840_v32, %v822_v45 }
 0x162   :  { %v2920_v51 = vadd.f32 %v1088_v29, %v872_v14  ;;  %v2946_v14 = vpop.f32.mrf.mxu3 }
 0x166   :  { %v1093_v19 = vpop.f32.mrf.mxu2 }
 0x167   :  { %v824_v37 = vpop.f32.mrf.mxu0 }
 0x168   :  { %v874_v55 = vadd.f32 %v2845_v13, %v824_v37  ;;  %v2931_v13 = vpop.f32.mrf.mxu1 }
 0x16a   :  { %v2923_v56 = vadd.f32 %v1090_v15, %v874_v55 }
 0x16e   :  { %v1095_v22 = vpop.f32.mrf.mxu2 }
 0x16f   :  { %v827_v49 = vpop.f32.mrf.mxu0 }
 0x170   :  { %v877_v60 = vadd.f32 %v2849_v34, %v827_v49  ;;  %v1396_v47 = vpop.f32.mrf.mxu1 }
 0x172   :  { %v2926_v62 = vadd.f32 %v1093_v19, %v877_v60  ;;  %v1588_v60 = vld [vmem:[%s3207_s3 + $0x70] sm:$0xff] }
 0x176   :  { %v1098_v2 = vpop.f32.mrf.mxu2 }
 0x177   :  { %v829_v32 = vpop.f32.mrf.mxu0 }
 0x178   :  { %v879_v6 = vadd.f32 %v2856_v44, %v829_v32  ;;  %v2944_v45 = vpop.f32.mrf.mxu1 }
 0x17a   :  { %v2929_v7 = vadd.f32 %v1095_v22, %v879_v6  ;;  %v2953_v22 = vpop.f32.mrf.mxu3 }
 0x17e   :  { %v2936_v31 = vpop.f32.mrf.mxu2 }
 0x17f   :  { %v832_v12 = vpop.f32.mrf.mxu0 }
 0x180   :  { %v882_v23 = vadd.f32 %v2860_v24, %v832_v12  ;;  %v1589_v24 = vld [vmem:[%s3207_s3 + $0x78] sm:$0xff]  ;;  %v2951_v55 = vpop.f32.mrf.mxu1  ;;  %v1586_v12 = vld [vmem:[%s3207_s3 + $0x60] sm:$0xff] }
 0x181   :  { %1590 = vmatpush.msra.mxu0 %v1589_v24  ;;  %v1585_v24 = vld [vmem:[%s3207_s3 + $0x58] sm:$0xff] }
 0x182   :  { %v2938_v34 = vadd.f32 %v1098_v2, %v882_v23  ;;  %v1587_v2 = vld [vmem:[%s3207_s3 + $0x68] sm:$0xff] }
 0x183   :  { %1591 = vmatpush.msra.mxu0 %v1588_v60 }
 0x185   :  { %1592 = vmatpush.msra.mxu0 %v1587_v2  ;;  %v1441_v2 = vadd.f32 %v1440_v63, %v1391_v41 }
 0x186   :  { %v1112_v29 = vpop.f32.mrf.mxu2 }
 0x187   :  { %v2940_v33 = vpop.f32.mrf.mxu0  ;;  %1593 = vmatpush.msra.mxu0 %v1586_v12 }
 0x188   :  { %v2970_v60 = vpop.f32.mrf.mxu1 }
 0x189   :  { %1594 = vmatpush.msra.mxu0 %v1585_v24 }
 0x18e   :  { %v2942_v44 = vpop.f32.mrf.mxu2 }
 0x18f   :  { %v846_v15 = vpop.f32.mrf.mxu0 }
 0x190   :  { %v847_v6 = vadd.f32 %v846_v15, %v2871_v4  ;;  %v1584_v15 = vld [vmem:[%s3207_s3 + $0x50] sm:$0xff] }
 0x191   :  { %1595 = vmatpush.msra.mxu0 %v1584_v15 }
 0x192   :  { %v1064_v4 = vadd.f32 %v2862_v52, %v847_v6  ;;  %v1582_v52 = vld [vmem:[%s3207_s3 + $0x40] sm:$0xff] }
 0x193   :  { %v2990_v6 = vld [vmem:[%s3206_s2] ss:$0 sm:$0xff] }
 0x194   :  { %v1113_v41 = vadd.f32 %v1112_v29, %v1064_v4 }
 0x196   :  { %v1117_v37 = vpop.f32.mrf.mxu2  ;;  %v1460_v29 = vadd.f32 %v2869_v1, %v1113_v41 }
 0x197   :  { %v848_v19 = vpop.f32.mrf.mxu0 }
 0x198   :  { %v849_v24 = vadd.f32 %v848_v19, %v2879_v9  ;;  %v1406_v19 = vpop.f32.mrf.mxu1 }
 0x19e   :  { %v1119_v11 = vpop.f32.mrf.mxu2 }
 0x19f   :  { %v851_v49 = vpop.f32.mrf.mxu0 }
 0x1a0   :  { %v852_v32 = vadd.f32 %v851_v49, %v2885_v27  ;;  %v2972_v27 = vpop.f32.mrf.mxu3  ;;  %v1133_v49 = vadd.f32 %v2826_v57, %v2914_v17  ;;  %v1130_v57 = vadd.f32 %v2813_v40, %v2911_v8  ;;  %v1438_v17 = vadd.f32 %v1437_v18, %v1388_v48  ;;  %v1580_v40 = vld [vmem:[%s3207_s3 + $0x30] sm:$0xff] }
 0x1a1   :  { %v3007_v8 = vadd.f32 %v2990_v6, %v2908_v10  ;;  %v1066_v48 = vadd.f32 %v2867_v20, %v849_v24 }
 0x1a2   :  { %v1069_v23 = vadd.f32 %v2875_v26, %v852_v32  ;;  %v1583_v26 = vld [vmem:[%s3207_s3 + $0x48] sm:$0xff] }
 0x1a3   :  { %1596 = vmatpush.msra.mxu0 %v1583_v26  ;;  %v1526_v15 = vmul.f32 %v3007_v8, %v3007_v8  ;;  %v1115_v26 = vadd.f32 %v2942_v44, %v1066_v48  ;;  %v1143_v44 = vadd.f32 %v2847_v16, %v2926_v62  ;;  %v1576_v16 = vld [vmem:[%s3207_s3 + $0x10] sm:$0xff]  ;;  %v1148_v62 = vadd.f32 %v2854_v39, %v2938_v34  ;;  %v1575_v39 = vld [vmem:[%s3207_s3 + $0x8] sm:$0xff]  ;;  %v1408_v48 = vpop.f32.mrf.mxu1 }
 0x1a4   :  { %v1118_v12 = vadd.f32 %v1117_v37, %v1069_v23  ;;  %v1138_v37 = vadd.f32 %v2838_v28, %v2920_v51  ;;  %v1446_v23 = vadd.f32 %v1445_v50, %v1396_v47 }
 0x1a5   :  { %1597 = vmatpush.msra.mxu0 %v1582_v52  ;;  %v1451_v52 = vadd.f32 %v2953_v22, %v2951_v55  ;;  %v884_v55 = vadd.f32 %v2865_v0, %v2940_v33  ;;  %v1140_v0 = vadd.f32 %v2842_v5, %v2923_v56  ;;  %v1574_v5 = vld [vmem:[%s3207_s3] sm:$0xff] }
 0x1a6   :  { %v1462_v9 = vadd.f32 %v2883_v25, %v1118_v12  ;;  %v1579_v25 = vld [vmem:[%s3207_s3 + $0x28] sm:$0xff]  ;;  %v1122_v50 = vpop.f32.mrf.mxu2  ;;  %v1470_v10 = vadd.f32 %v1446_v23, %v1138_v37 }
 0x1a7   :  { %v853_v58 = vpop.f32.mrf.mxu0  ;;  %v1472_v34 = vadd.f32 %v1451_v52, %v1143_v44 }
 0x1a8   :  { %v854_v32 = vadd.f32 %v853_v58, %v2893_v36  ;;  %v1581_v36 = vld [vmem:[%s3207_s3 + $0x38] sm:$0xff]  ;;  %v1468_v58 = vadd.f32 %v1441_v2, %v1133_v49  ;;  %v1455_v20 = vpop.f32.mrf.mxu3  ;;  %v3019_v4 = vadd.f32 %v2990_v6, %v1462_v9  ;;  %v1443_v49 = vadd.f32 %v2933_v53, %v2931_v13 }
 0x1a9   :  { %1598 = vmatpush.msra.mxu0 %v1581_v36  ;;  %v3034_v2 = vadd.f32 %v2990_v6, %v1460_v29  ;;  %v1135_v13 = vadd.f32 %v2833_v59, %v2917_v43  ;;  %v3049_v53 = vadd.f32 %v2990_v6, %v1470_v10  ;;  %v1461_v59 = vadd.f32 %v2877_v3, %v1115_v26 }
 0x1aa   :  { %v1071_v63 = vadd.f32 %v2881_v21, %v854_v32  ;;  %v1467_v21 = vadd.f32 %v1438_v17, %v1130_v57  ;;  %v3016_v51 = vadd.f32 %v2990_v6, %v1468_v58  ;;  %v1577_v32 = vld [vmem:[%s3207_s3 + $0x18] sm:$0xff]  ;;  %v1522_v57 = vmul.f32 %v3019_v4, %v3019_v4 }
 0x1ab   :  { %1599 = vmatpush.msra.mxu0 %v1580_v40  ;;  %v1520_v22 = vmul.f32 %v3034_v2, %v3034_v2  ;;  %v1448_v3 = vadd.f32 %v2946_v14, %v2944_v45  ;;  %v1469_v56 = vadd.f32 %v1443_v49, %v1135_v13  ;;  %v1101_v45 = vadd.f32 %v2936_v31, %v884_v55 }
 0x1ac   :  { %v1120_v47 = vadd.f32 %v1119_v11, %v1071_v63  ;;  %v3029_v11 = vadd.f32 %v2990_v6, %v1467_v21  ;;  %v1528_v12 = vmul.f32 %v3016_v51, %v3016_v51  ;;  %v3089_v14 = vadd.f32 %v2990_v6, %v1461_v59 }
 0x1ad   :  { %1600 = vmatpush.msra.mxu0 %v1579_v25  ;;  %v1536_v58 = vadd.f32 %v1522_v57, %v1520_v22  ;;  %v1530_v40 = vmul.f32 %v3049_v53, %v3049_v53  ;;  %v1145_v31 = vadd.f32 %v2851_v30, %v2929_v7  ;;  %v1453_v25 = vadd.f32 %v2972_v27, %v2970_v60  ;;  %v3223_v30 = vld [vmem:[#allocation3_spill] sm:$0xff] }
 0x1ae   :  { %v1463_v24 = vadd.f32 %v2891_v42, %v1120_v47  ;;  %v1456_v42 = vadd.f32 %v1455_v20, %v1406_v19  ;;  %v1124_v9 = vpop.f32.mrf.mxu2  ;;  %v3222_v20 = vld [vmem:[#allocation4_spill] sm:$0xff]  ;;  %v1150_v7 = vadd.f32 %v3223_v30, %v1101_v45  ;;  %v1521_v27 = vmul.f32 %v3089_v14, %v3089_v14 }
 0x1af   :  { %v856_v18 = vpop.f32.mrf.mxu0  ;;  %v3121_v44 = vadd.f32 %v2990_v6, %v1469_v56 }
 0x1b0   :  { %v857_v28 = vadd.f32 %v856_v18, %v2899_v54  ;;  %v1578_v54 = vld [vmem:[%s3207_s3 + $0x20] sm:$0xff]  ;;  %v3078_v33 = vadd.f32 %v2990_v6, %v1463_v24  ;;  %v1474_v23 = vadd.f32 %v1456_v42, %v1148_v62  ;;  %v1457_v18 = vpop.f32.mrf.mxu3  ;;  %v1473_v24 = vadd.f32 %v1453_v25, %v1145_v31 }
 0x1b1   :  { %1601 = vmatpush.msra.mxu0 %v1578_v54  ;;  %v1627_v54 = vld [vmem:[%s3208_s4] sm:$0xff]  ;;  %v1458_v60 = vadd.f32 %v1457_v18, %v1408_v48 }
 0x1b2   :  { %v1074_v1 = vadd.f32 %v2889_v38, %v857_v28  ;;  %v3095_v28 = vadd.f32 %v2990_v6, %v1472_v34  ;;  %v1523_v47 = vmul.f32 %v3078_v33, %v3078_v33  ;;  %v3109_v26 = vadd.f32 %v2990_v6, %v1474_v23  ;;  %1647 = vmatpush.msra.mxu2 %v1627_v54 }
 0x1b3   :  { %1602 = vmatpush.msra.mxu0 %v1577_v32  ;;  %v1507_v49 = vadd.f32 %v3078_v33, %v3089_v14  ;;  %v1475_v59 = vadd.f32 %v1458_v60, %v1150_v7 }
 0x1b4   :  { %v1123_v38 = vadd.f32 %v1122_v50, %v1074_v1  ;;  %v1471_v50 = vadd.f32 %v1448_v3, %v1140_v0  ;;  %v1532_v52 = vmul.f32 %v3095_v28, %v3095_v28  ;;  %v1549_v13 = vadd.f32 %v1523_v47, %v1521_v27 }
 0x1b5   :  { %1603 = vmatpush.msra.mxu0 %v1576_v16  ;;  %v1534_v55 = vmul.f32 %v3109_v26, %v3109_v26  ;;  %v3141_v0 = vadd.f32 %v2990_v6, %v1473_v24 }
 0x1b6   :  { %v1464_v17 = vadd.f32 %v2897_v35, %v1123_v38  ;;  %v1494_v35 = vadd.f32 %v3019_v4, %v3034_v2  ;;  %v3132_v42 = vadd.f32 %v2990_v6, %v1471_v50 }
 0x1b7   :  { %v858_v43 = vpop.f32.mrf.mxu0  ;;  %1604 = vmatpush.msra.mxu0 %v1575_v39  ;;  %v1529_v39 = vmul.f32 %v3121_v44, %v3121_v44  ;;  %v1533_v45 = vmul.f32 %v3141_v0, %v3141_v0 }
 0x1b8   :  { %v3067_v41 = vadd.f32 %v2990_v6, %v1464_v17  ;;  %v859_v36 = vadd.f32 %v858_v43, %v2904_v61 }
 0x1b9   :  { %1605 = vmatpush.msra.mxu0 %v1574_v5 }
 0x1ba   :  { %v1495_v63 = vadd.f32 %v1494_v35, %v3067_v41  ;;  %v1524_v61 = vmul.f32 %v3067_v41, %v3067_v41  ;;  %v1076_v37 = vadd.f32 %v2895_v46, %v859_v36 }
 0x1bc   :  { %v1496_v46 = vadd.f32 %v1495_v63, %v3007_v8  ;;  %v1537_v21 = vadd.f32 %v1536_v58, %v1524_v61  ;;  %v1125_v29 = vadd.f32 %v1124_v9, %v1076_v37  ;;  %v1531_v61 = vmul.f32 %v3132_v42, %v3132_v42 }
 0x1bd   :  { %v3147_v37 = vadd.f32 %v2990_v6, %v1475_v59 }
 0x1be   :  { %v1497_v10 = vadd.f32 %v1496_v46, %v3016_v51  ;;  %v1538_v19 = vadd.f32 %v1537_v21, %v1526_v15  ;;  %v1465_v1 = vadd.f32 %v3222_v20, %v1125_v29 }
 0x1bf   :  { %v1535_v46 = vmul.f32 %v3147_v37, %v3147_v37 }
 0x1c0   :  { %v1498_v15 = vadd.f32 %v1497_v10, %v3049_v53  ;;  %v1539_v38 = vadd.f32 %v1538_v19, %v1528_v12  ;;  %v3118_v32 = vadd.f32 %v2990_v6, %v1465_v1  ;;  %v1527_v12 = vmul.f32 %v3029_v11, %v3029_v11 }
 0x1c2   :  { %v1508_v57 = vadd.f32 %v1507_v49, %v3118_v32  ;;  %v1525_v17 = vmul.f32 %v3118_v32, %v3118_v32  ;;  %v1499_v16 = vadd.f32 %v1498_v15, %v3095_v28  ;;  %v1540_v62 = vadd.f32 %v1539_v38, %v1530_v40 }
 0x1c4   :  { %v1509_v43 = vadd.f32 %v1508_v57, %v3029_v11  ;;  %v1550_v22 = vadd.f32 %v1549_v13, %v1525_v17  ;;  %v1500_v35 = vadd.f32 %v1499_v16, %v3109_v26  ;;  %v1541_v36 = vadd.f32 %v1540_v62, %v1532_v52 }
 0x1c6   :  { %v1510_v3 = vadd.f32 %v1509_v43, %v3121_v44  ;;  %v1551_v34 = vadd.f32 %v1550_v22, %v1527_v12  ;;  %v1501_v58 = vrot.slane %v1500_v35, 4  ;;  %v1542_v63 = vadd.f32 %v1541_v36, %v1534_v55 }
 0x1c8   :  { %v1511_v5 = vadd.f32 %v1510_v3, %v3132_v42  ;;  %v1552_v56 = vadd.f32 %v1551_v34, %v1529_v39  ;;  %v1543_v23 = vrot.slane %v1542_v63, 4  ;;  %v1502_v9 = vadd.f32 %v1501_v58, %v1500_v35 }
 0x1ca   :  { %v1512_v40 = vadd.f32 %v1511_v5, %v3141_v0  ;;  %v1544_v48 = vadd.f32 %v1543_v23, %v1542_v63  ;;  %v1553_v18 = vadd.f32 %v1552_v56, %v1531_v61  ;;  %v1503_v6 = vrot.slane %v1502_v9, 2  ;;  %v2312_v5 = vld [vmem:[%s3206_s2 + $0x1] ss:$0 sm:$0xff] }
 0x1cc   :  { %v1513_v21 = vadd.f32 %v1512_v40, %v3147_v37  ;;  %v1554_v29 = vadd.f32 %v1553_v18, %v1533_v45  ;;  %v1545_v25 = vrot.slane %v1544_v48, 2  ;;  %v1504_v19 = vadd.f32 %v1503_v6, %v1502_v9  ;;  %v2313_v9 = vld [vmem:[%s3206_s2 + $0x2] ss:$0 sm:$0xff] }
 0x1ce   :  { %v1514_v31 = vrot.slane %v1513_v21, 4  ;;  %v1555_v47 = vadd.f32 %v1554_v29, %v1535_v46  ;;  %v1546_v1 = vadd.f32 %v1545_v25, %v1544_v48  ;;  %v1505_v60 = vrot.slane %v1504_v19, 1 }
 0x1d0   :  { %v1515_v50 = vadd.f32 %v1514_v31, %v1513_v21  ;;  %v1556_v10 = vrot.slane %v1555_v47, 4  ;;  %v1547_v49 = vrot.slane %v1546_v1, 1  ;;  %v1506_v24 = vadd.f32 %v1505_v60, %v1504_v19 }
 0x1d2   :  { %v1516_v20 = vrot.slane %v1515_v50, 2  ;;  %v1557_v54 = vadd.f32 %v1556_v10, %v1555_v47  ;;  %v1548_v13 = vadd.f32 %v1547_v49, %v1546_v1 }
 0x1d4   :  { %v1517_v30 = vadd.f32 %v1516_v20, %v1515_v50  ;;  %v1558_v7 = vrot.slane %v1557_v54, 2 }
 0x1d6   :  { %v1518_v27 = vrot.slane %v1517_v30, 1  ;;  %v1559_v15 = vadd.f32 %v1558_v7, %v1557_v54 }
 0x1d8   :  { %v1519_v38 = vadd.f32 %v1518_v27, %v1517_v30  ;;  %v1560_v52 = vrot.slane %v1559_v15, 1 }
 0x1da   :  { %v1561_v57 = vadd.f32 %v1560_v52, %v1559_v15  ;;  %v1565_v17 = vsel %vm1564_vm0, %v1519_v38, %v1506_v24 }
 0x1dc   :  { %v1570_v16 = vsel %vm1569_vm1, %v1561_v57, %v1548_v13 }
 0x1dd   :  { %v1573_v62 = vsel %vm1572_vm2, %v1565_v17, %v1570_v16 }
 0x1de   :  { %1606 = vmatmul.f32.vlgmr.msra.gmra.mxu0 %v1573_v62 }
 0x25b   :  { %v1607_v12 = vpop.f32.mrf.mxu0 }
 0x25c   :  { %v1610_v55 = vmul.f32 %v1607_v12, %v1607_v12 }
 0x25e   :  { %v1612_v59 = vrot.slane %v1610_v55, 6 }
 0x260   :  { %v1614_v43 = vsub.f32 %v1607_v12, %v1612_v59 }
 0x262   :  { %v1615_v22 = vadd.f32 1e-05, %v1614_v43 }
 0x264   :  { %2314 = vrsqrt.f32 %v1615_v22  ;;  %vm1622_vm4 = vweird.f32 %v1615_v22 }
 0x26a   :  { %v2315_v35 = vpop.eup %2314 }
 0x26b   :  { %v1617_v36 = vmul.f32 %v2315_v35, %v1615_v22  ;;  %vm1623_vm3 = vweird.f32 %v2315_v35 }
 0x26c   :  { %vm1624_vm5 = vmor %vm1622_vm4, %vm1623_vm3 }
 0x26d   :  { %v1618_v39 = vmul.f32 %v2315_v35, %v1617_v36 }
 0x26f   :  { %v1619_v3 = vmul.f32 0.5, %v1618_v39 }
 0x271   :  { %v1620_v34 = vsub.f32 1.5, %v1619_v3 }
 0x273   :  { %v1621_v58 = vmul.f32 %v2315_v35, %v1620_v34 }
 0x275   :  { %v1625_v63 = vsel %vm1624_vm5, %v2315_v35, %v1621_v58 }
 0x276   :  { %v1626_v61 = vsel %vm1572_vm2, %v1607_v12, %v1625_v63 }
 0x277   :  { %2169 = vmatmul.msk.f32.vlgmr.msra.gmra.mxu2 %vm1628_vm6, %v1626_v61 }
 0x2fa   :  { %v1649_v56 = vpop.f32.mrf.mxu2 }
 0x2fb   :  { %v1654_v23 = vmul.f32 %v2312_v5, %v1649_v56 }
 0x2fd   :  { %v1657_v45 = vrot.slane %v1654_v23, 2  ;;  %1662 = vst [vmem:[#allocation1] sm:$0xff] %v1654_v23 }
 0x2ff   :  { %v1659_v40 = vmul.f32 %v1657_v45, %v1649_v56 }
 0x301   :  { %v1661_v48 = vsub.f32 %v2313_v9, %v1659_v40 }
 0x303   :  { %v1688_v18 = vrot.slane %v1661_v48, 1  ;;  %v1689_v31 = vperm.slane %v1661_v48, 0 }
 0x304   :  { %v1664_v46 = vld [vmem:[#allocation1 + $0x2] ss:$9 sm:$0xff] }
 0x305   :  { %v1666_v21 = vld [vmem:[#allocation1 + $0x3] ss:$9 sm:$0xff]  ;;  %v1667_v29 = vperm.slane %v1664_v46, 0  ;;  %v1690_v25 = vperm.slane %v1688_v18, 0 }
 0x306   :  { %v1668_v6 = vperm.slane %v1666_v21, 0 }
 0x307   :  { %v1671_v47 = vmul.f32 %v1667_v29, %v3034_v2  ;;  %v1673_v10 = vmul.f32 %v1667_v29, %v3019_v4  ;;  %v1675_v20 = vmul.f32 %v1667_v29, %v3067_v41  ;;  %v1677_v54 = vmul.f32 %v1667_v29, %v3007_v8 }
 0x308   :  { %v1672_v50 = vmul.f32 %v1668_v6, %v3089_v14  ;;  %v1674_v19 = vmul.f32 %v1668_v6, %v3078_v33  ;;  %v1676_v1 = vmul.f32 %v1668_v6, %v3118_v32  ;;  %v1678_v30 = vmul.f32 %v1668_v6, %v3029_v11 }
 0x309   :  { %v1679_v7 = vmul.f32 %v1667_v29, %v3016_v51  ;;  %v1680_v60 = vmul.f32 %v1668_v6, %v3121_v44  ;;  %v1681_v2 = vmul.f32 %v1667_v29, %v3049_v53  ;;  %v1682_v14 = vmul.f32 %v1668_v6, %v3132_v42 }
 0x30a   :  { %v1683_v4 = vmul.f32 %v1667_v29, %v3095_v28  ;;  %v1684_v33 = vmul.f32 %v1668_v6, %v3141_v0  ;;  %v1685_v41 = vmul.f32 %v1667_v29, %v3109_v26  ;;  %v1686_v32 = vmul.f32 %v1668_v6, %v3147_v37 }
 0x30b   :  { %v1693_v27 = vadd.f32 %v1689_v31, %v1671_v47  ;;  %v1694_v8 = vadd.f32 %v1690_v25, %v1672_v50  ;;  %v1695_v49 = vadd.f32 %v1689_v31, %v1673_v10  ;;  %v1696_v11 = vadd.f32 %v1690_v25, %v1674_v19 }
 0x30c   :  { %v1697_v15 = vadd.f32 %v1689_v31, %v1675_v20  ;;  %v1698_v51 = vadd.f32 %v1690_v25, %v1676_v1  ;;  %v1699_v38 = vadd.f32 %v1689_v31, %v1677_v54  ;;  %v1700_v44 = vadd.f32 %v1690_v25, %v1678_v30 }
 0x30d   :  { %v1701_v52 = vadd.f32 %v1689_v31, %v1679_v7  ;;  %v1702_v53 = vadd.f32 %v1690_v25, %v1680_v60  ;;  %v1703_v24 = vadd.f32 %v1689_v31, %v1681_v2  ;;  %v1704_v42 = vadd.f32 %v1690_v25, %v1682_v14 }
 0x30e   :  { %v1705_v13 = vadd.f32 %v1689_v31, %v1683_v4  ;;  %v1706_v28 = vadd.f32 %v1690_v25, %v1684_v33  ;;  %v1707_v57 = vadd.f32 %v1689_v31, %v1685_v41  ;;  %v1708_v0 = vadd.f32 %v1690_v25, %v1686_v32 }
 0x30f   :  { %v1709_v17 = vmax.f32 %v1693_v27, 0.0  ;;  %v1710_v26 = vmax.f32 %v1694_v8, 0.0  ;;  %v1711_v16 = vmax.f32 %v1695_v49, 0.0  ;;  %v1712_v37 = vmax.f32 %v1696_v11, 0.0 }
 0x310   :  { %v1713_v62 = vmax.f32 %v1697_v15, 0.0  ;;  %v1714_v12 = vmax.f32 %v1698_v51, 0.0  ;;  %v1715_v55 = vmax.f32 %v1699_v38, 0.0  ;;  %v1716_v59 = vmax.f32 %v1700_v44, 0.0 }
 0x311   :  { %v1717_v43 = vmax.f32 %v1701_v52, 0.0  ;;  %v1718_v22 = vmax.f32 %v1702_v53, 0.0  ;;  %v1719_v35 = vmax.f32 %v1703_v24, 0.0  ;;  %v1720_v36 = vmax.f32 %v1704_v42, 0.0 }
 0x312   :  { %v1721_v39 = vmax.f32 %v1705_v13, 0.0  ;;  %v1722_v3 = vmax.f32 %v1706_v28, 0.0  ;;  %v2257_v34 = vpack.c.bf16 %v1710_v26, %v1709_v17  ;;  %v2262_v58 = vpack.c.bf16 %v1712_v37, %v1711_v16 }
 0x313   :  { %v2267_v63 = vpack.c.bf16 %v1714_v12, %v1713_v62  ;;  %v1723_v61 = vmax.f32 %v1707_v57, 0.0  ;;  %v1724_v5 = vmax.f32 %v1708_v0, 0.0  ;;  %v2272_v56 = vpack.c.bf16 %v1716_v59, %v1715_v55 }
 0x314   :  { %2258 = vst [vmem:[%s3209_s5] sm:$0xff] %v2257_v34   ;;  %v2277_v23 = vpack.c.bf16 %v1718_v22, %v1717_v43  ;;  %v2282_v45 = vpack.c.bf16 %v1720_v36, %v1719_v35  ;;  %v2287_v9 = vpack.c.bf16 %v1722_v3, %v1721_v39 }
 0x315   :  { %2294 = vst [vmem:[%s3209_s5 + $0x8] sm:$0xff] %v2262_v58   ;;  %v2292_v40 = vpack.c.bf16 %v1724_v5, %v1723_v61 }
 0x316   :  { %2295 = vst [vmem:[%s3209_s5 + $0x10] sm:$0xff] %v2267_v63  }
 0x317   :  { %2296 = vst [vmem:[%s3209_s5 + $0x18] sm:$0xff] %v2272_v56  }
 0x318   :  { %2297 = vst [vmem:[%s3209_s5 + $0x20] sm:$0xff] %v2277_v23  }
 0x319   :  { %2298 = vst [vmem:[%s3209_s5 + $0x28] sm:$0xff] %v2282_v45  }
 0x31a   :  { %2299 = vst [vmem:[%s3209_s5 + $0x30] sm:$0xff] %v2287_v9  }
 0x31b   :  { %2300 = vst [vmem:[%s3209_s5 + $0x38] sm:$0xff] %v2292_v40  }

// kernel: conv_block_3d.3
= control target key start
LH: loop header
LB: loop body
LE: loop exit
PB: predicated region body
PF: predicated region fallthrough
CT: control target
= control target key end

     0   :  { %vm31_vm0 = vcmask 1040384   ;;  %vm32_vm1 = vsmask.f32 256  ;;  %v40_v1 = vld [vmem:[#allocation2 + $0x48] sm:$0x1]  ;;  %vm229_vm2 = vcmask 1043456   ;;  %s4103_s1 = inlined_call_operand.vmem [shape: bf16[3,384,128], index: 1, kind: input, shape index: {}]   ;;  %s4104_s0 = inlined_call_operand.vmem [shape: bf16[8,16,128], index: 0, kind: input, shape index: {}]   ;;  %s4105_s2 = inlined_call_operand.vmem [shape: f32[3,128], index: 2, kind: input, shape index: {}]   ;;  %s4106_s3 = inlined_call_operand.vmem [shape: f32[128,8], index: 3, kind: input, shape index: {}]   ;;  %s4107_s4 = inlined_call_operand.vmem [shape: f32[8,128], index: 4, kind: input, shape index: {}]   ;;  %s4108_s5 = inlined_call_operand.vmem [shape: f32[8,16,128], index: 5, kind: output, shape index: {}]  }
   0x1   :  { %v3011_v0 = vld [vmem:[%s4103_s1 + $0xf8] sm:$0xff]  ;;  %v3010_v2 = vld [vmem:[%s4103_s1 + $0xf0] sm:$0xff]  ;;  %vm3143_vm3 = vmand %vm31_vm0, %vm32_vm1  ;;  %vm230_vm4 = vsmask.f32 7938  ;;  %vm58_vm6 = vcmask 1043459   ;;  %vm2078_vm11 = vcmask 1041409  }
   0x2   :  { %3076 = vmatpush.bf16.msra.mxu1 %v3011_v0  ;;  %3077 = vmatpush.bf16.msra.mxu2 %v3011_v0  ;;  %v91_v4 = vld [vmem:[#allocation2 + $0x54] sm:$0x1]  ;;  %v3150_v5 = vld [vmem:[%s4104_s0 + $0x10] sm:$0xf]  ;;  %v3009_v6 = vld [vmem:[%s4103_s1 + $0xe8] sm:$0xff]  ;;  %v41_v7 = vsel %vm3143_vm3, 0, %v40_v1 }
   0x3   :  { %3078 = vmatpush.bf16.msra.mxu3 %v3011_v0  ;;  %907 = vmatpush.bf16.msra.mxu0 %v3011_v0  ;;  %v92_v8 = vsel %vm3143_vm3, 0, %v91_v4  ;;  %v3162_v9 = vld [vmem:[%s4104_s0 + $0x14] sm:$0xf]  ;;  %v180_v10 = vshrl.u32 %v3150_v5, 16  ;;  %v183_v11 = vshll.u32 %v3150_v5, 16  ;;  %v3008_v26 = vld [vmem:[%s4103_s1 + $0xe0] sm:$0xff]  ;;  %vm3198_vm5 = vmand %vm229_vm2, %vm230_vm4 }
   0x4   :  { %42 = vst [vmem:[#allocation2 + $0x48] sm:$0x1] %v41_v7  ;;  %v337_v12 = vshrl.u32 %v3162_v9, 16  ;;  %v340_v13 = vshll.u32 %v3162_v9, 16  ;;  %v49_v14 = vld [vmem:[#allocation2 + $0x90] sm:$0x1] }
   0x5   :  { %93 = vst [vmem:[#allocation2 + $0x54] sm:$0x1] %v92_v8  ;;  %v182_v15 = vrot.slane %v180_v10, 7  ;;  %v50_v16 = vsel %vm3143_vm3, 0, %v49_v14  ;;  %v100_v17 = vld [vmem:[#allocation2 + $0x9c] sm:$0x1] }
   0x6   :  { %3079 = vmatpush.bf16.msra.mxu1 %v3010_v2  ;;  %3080 = vmatpush.bf16.msra.mxu2 %v3010_v2  ;;  %v339_v18 = vrot.slane %v337_v12, 7  ;;  %153 = vst [vmem:[#allocation2 + $0x4c] sm:$0xf] %v3150_v5  ;;  %v101_v19 = vsel %vm3143_vm3, 0, %v100_v17  ;;  %v3180_v20 = vld [vmem:[%s4104_s0 + $0x28] sm:$0xf] }
   0x7   :  { %3081 = vmatpush.bf16.msra.mxu3 %v3010_v2  ;;  %908 = vmatpush.bf16.msra.mxu0 %v3010_v2  ;;  %154 = vst [vmem:[#allocation2 + $0x58] sm:$0xf] %v3162_v9  ;;  %v3186_v21 = vld [vmem:[%s4104_s0 + $0x2c] sm:$0xf]  ;;  %v201_v22 = vshrl.u32 %v3180_v20, 16  ;;  %v185_v23 = vor.u32 %v183_v11, %v182_v15  ;;  %v204_v24 = vshll.u32 %v3180_v20, 16 }
   0x8   :  { %51 = vst [vmem:[#allocation2 + $0x90] sm:$0x1] %v50_v16  ;;  %v358_v25 = vshrl.u32 %v3186_v21, 16  ;;  %v342_v28 = vor.u32 %v340_v13, %v339_v18  ;;  %v361_v30 = vshll.u32 %v3186_v21, 16  ;;  %v3007_v32 = vld [vmem:[%s4103_s1 + $0xd8] sm:$0xff]  ;;  %v3006_v53 = vld [vmem:[%s4103_s1 + $0xd0] sm:$0xff] }
   0x9   :  { %102 = vst [vmem:[#allocation2 + $0x9c] sm:$0x1] %v101_v19  ;;  %v203_v29 = vrot.slane %v201_v22, 7  ;;  %v46_v37 = vld [vmem:[#allocation2 + $0x78] sm:$0x1]  ;;  %v3005_v0 = vld [vmem:[%s4103_s1 + $0xc8] sm:$0xff] }
   0xa   :  { %3082 = vmatpush.bf16.msra.mxu1 %v3009_v6  ;;  %3083 = vmatpush.bf16.msra.mxu2 %v3009_v6  ;;  %v360_v31 = vrot.slane %v358_v25, 7  ;;  %159 = vst [vmem:[#allocation2 + $0x94] sm:$0xf] %v3180_v20  ;;  %v97_v38 = vld [vmem:[#allocation2 + $0x84] sm:$0x1]  ;;  %v47_v41 = vsel %vm3143_vm3, 0, %v46_v37 }
   0xb   :  { %3084 = vmatpush.bf16.msra.mxu3 %v3009_v6  ;;  %909 = vmatpush.bf16.msra.mxu0 %v3009_v6  ;;  %v238_v33 = vld [vmem:[#allocation2 + $0x48] sm:$0xf]  ;;  %160 = vst [vmem:[#allocation2 + $0xa0] sm:$0xf] %v3186_v21  ;;  %v206_v36 = vor.u32 %v204_v24, %v203_v29  ;;  %v98_v42 = vsel %vm3143_vm3, 0, %v97_v38  ;;  %v3004_v8 = vld [vmem:[%s4103_s1 + $0xc0] sm:$0xff] }
   0xc   :  { %v239_v34 = vsel %vm3198_vm5, %v185_v23, %v238_v33  ;;  %v392_v35 = vld [vmem:[#allocation2 + $0x54] sm:$0xf]  ;;  %v363_v40 = vor.u32 %v361_v30, %v360_v31  ;;  %v3229_v43 = vld [vmem:[%s4104_s0 + $0x20] sm:$0xf]  ;;  %v3234_v44 = vld [vmem:[%s4104_s0 + $0x24] sm:$0xf] }
   0xd   :  { %240 = vst [vmem:[#allocation2 + $0x48] sm:$0xf] %v239_v34  ;;  %v393_v39 = vsel %vm3198_vm5, %v342_v28, %v392_v35  ;;  %v194_v45 = vshrl.u32 %v3229_v43, 16  ;;  %v197_v47 = vshll.u32 %v3229_v43, 16  ;;  %v351_v48 = vshrl.u32 %v3234_v44, 16  ;;  %v3027_v19 = vld [vmem:[%s4103_s1 + $0x178] sm:$0xff] }
   0xe   :  { %3085 = vmatpush.bf16.msra.mxu1 %v3008_v26  ;;  %3086 = vmatpush.bf16.msra.mxu2 %v3008_v26  ;;  %394 = vst [vmem:[#allocation2 + $0x54] sm:$0xf] %v393_v39  ;;  %v354_v52 = vshll.u32 %v3234_v44, 16  ;;  %v34_v56 = vld [vmem:[#allocation2 + $0x18] sm:$0x1]  ;;  %v2963_v33 = vld [vmem:[%s4103_s1 + $0x38] sm:$0xff] }
   0xf   :  { %3087 = vmatpush.bf16.msra.mxu3 %v3008_v26  ;;  %910 = vmatpush.bf16.msra.mxu0 %v3008_v26  ;;  %v247_v46 = vld [vmem:[#allocation2 + $0x90] sm:$0xf]  ;;  %48 = vst [vmem:[#allocation2 + $0x78] sm:$0x1] %v47_v41  ;;  %v196_v51 = vrot.slane %v194_v45, 7  ;;  %v353_v55 = vrot.slane %v351_v48, 7 }
  0x10   :  { %v248_v49 = vsel %vm3198_vm5, %v206_v36, %v247_v46  ;;  %v401_v50 = vld [vmem:[#allocation2 + $0x9c] sm:$0xf]  ;;  %99 = vst [vmem:[#allocation2 + $0x84] sm:$0x1] %v98_v42  ;;  %v35_v57 = vsel %vm3143_vm3, 0, %v34_v56  ;;  %v3019_v37 = vld [vmem:[%s4103_s1 + $0x138] sm:$0xff] }
  0x11   :  { %249 = vst [vmem:[#allocation2 + $0x90] sm:$0xf] %v248_v49  ;;  %v402_v54 = vsel %vm3198_vm5, %v363_v40, %v401_v50  ;;  %v85_v58 = vld [vmem:[#allocation2 + $0x24] sm:$0x1]  ;;  %v199_v59 = vor.u32 %v197_v47, %v196_v51  ;;  %v3261_v61 = vld [vmem:[%s4104_s0] sm:$0xf]  ;;  %v356_v62 = vor.u32 %v354_v52, %v353_v55 }
  0x12   :  { %3088 = vmatpush.bf16.msra.mxu1 %v3007_v32  ;;  %3089 = vmatpush.bf16.msra.mxu2 %v3007_v32  ;;  %403 = vst [vmem:[#allocation2 + $0x9c] sm:$0xf] %v402_v54  ;;  %v86_v60 = vsel %vm3143_vm3, 0, %v85_v58  ;;  %v3269_v63 = vld [vmem:[%s4104_s0 + $0x4] sm:$0xf]  ;;  %v166_v1 = vshrl.u32 %v3261_v61, 16 }
  0x13   :  { %3090 = vmatpush.bf16.msra.mxu3 %v3007_v32  ;;  %911 = vmatpush.bf16.msra.mxu0 %v3007_v32  ;;  %157 = vst [vmem:[#allocation2 + $0x7c] sm:$0xf] %v3229_v43  ;;  %v169_v2 = vshll.u32 %v3261_v61, 16  ;;  %v323_v6 = vshrl.u32 %v3269_v63, 16  ;;  %v326_v7 = vshll.u32 %v3269_v63, 16  ;;  %v3026_v42 = vld [vmem:[%s4103_s1 + $0x170] sm:$0xff] }
  0x14   :  { %158 = vst [vmem:[#allocation2 + $0x88] sm:$0xf] %v3234_v44  ;;  %v2333_v14 = vld [vmem:[#allocation2 + $0x48] sm:$0xf]  ;;  %v168_v18 = vrot.slane %v166_v1, 7  ;;  %v3057_v43 = vld [vmem:[%s4103_s1 + $0x1a8] sm:$0xff] }
  0x15   :  { %36 = vst [vmem:[#allocation2 + $0x18] sm:$0x1] %v35_v57  ;;  %v2987_v15 = vld [vmem:[#allocation2 + $0x50] sm:$0xf0]  ;;  %v325_v28 = vrot.slane %v323_v6, 7  ;;  %v3018_v50 = vld [vmem:[%s4103_s1 + $0x130] sm:$0xff] }
  0x16   :  { %3091 = vmatpush.bf16.msra.mxu1 %v3006_v53  ;;  %3092 = vmatpush.bf16.msra.mxu2 %v3006_v53  ;;  %v244_v4 = vld [vmem:[#allocation2 + $0x78] sm:$0xf]  ;;  %87 = vst [vmem:[#allocation2 + $0x24] sm:$0x1] %v86_v60  ;;  %v171_v31 = vor.u32 %v169_v2, %v168_v18  ;;  %v43_v32 = vld [vmem:[#allocation2 + $0x60] sm:$0x1]  ;;  %v2334_v40 = vor.u32 %v2987_v15, %v2333_v14 }
  0x17   :  { %3093 = vmatpush.bf16.msra.mxu3 %v3006_v53  ;;  %912 = vmatpush.bf16.msra.mxu0 %v3006_v53  ;;  %v245_v16 = vsel %vm3198_vm5, %v199_v59, %v244_v4  ;;  %v398_v17 = vld [vmem:[#allocation2 + $0x84] sm:$0xf]  ;;  %149 = vst [vmem:[#allocation2 + $0x1c] sm:$0xf] %v3261_v61  ;;  %v328_v34 = vor.u32 %v326_v7, %v325_v28  ;;  %v44_v35 = vsel %vm3143_vm3, 0, %v43_v32  ;;  %v2971_v57 = vld [vmem:[%s4103_s1 + $0x78] sm:$0xff] }
  0x18   :  { %v2369_v23 = vld [vmem:[#allocation2 + $0x90] sm:$0xf]  ;;  %246 = vst [vmem:[#allocation2 + $0x78] sm:$0xf] %v245_v16  ;;  %v399_v26 = vsel %vm3198_vm5, %v356_v62, %v398_v17  ;;  %v94_v36 = vld [vmem:[#allocation2 + $0x6c] sm:$0x1] }
  0x19   :  { %v2996_v29 = vld [vmem:[#allocation2 + $0x98] sm:$0xf0]  ;;  %400 = vst [vmem:[#allocation2 + $0x84] sm:$0xf] %v399_v26  ;;  %v95_v38 = vsel %vm3143_vm3, 0, %v94_v36  ;;  %v2962_v58 = vld [vmem:[%s4103_s1 + $0x30] sm:$0xff] }
  0x1a   :  { %3094 = vmatpush.bf16.msra.mxu1 %v3005_v0  ;;  %3095 = vmatpush.bf16.msra.mxu2 %v3005_v0  ;;  %150 = vst [vmem:[#allocation2 + $0x28] sm:$0xf] %v3269_v63  ;;  %v3311_v39 = vld [vmem:[%s4104_s0 + $0x18] sm:$0xf]  ;;  %v2370_v41 = vor.u32 %v2996_v29, %v2369_v23  ;;  %v3319_v49 = vld [vmem:[%s4104_s0 + $0x1c] sm:$0xf] }
  0x1b   :  { %3096 = vmatpush.bf16.msra.mxu3 %v3005_v0  ;;  %913 = vmatpush.bf16.msra.mxu0 %v3005_v0  ;;  %45 = vst [vmem:[#allocation2 + $0x60] sm:$0x1] %v44_v35  ;;  %v187_v54 = vshrl.u32 %v3311_v39, 16  ;;  %v190_v55 = vshll.u32 %v3311_v39, 16  ;;  %v344_v56 = vshrl.u32 %v3319_v49, 16  ;;  %v347_v60 = vshll.u32 %v3319_v49, 16 }
  0x1c   :  { %v232_v46 = vld [vmem:[#allocation2 + $0x18] sm:$0xf]  ;;  %96 = vst [vmem:[#allocation2 + $0x6c] sm:$0x1] %v95_v38  ;;  %v52_v62 = vld [vmem:[#allocation2 + $0xa8] sm:$0x1] }
  0x1d   :  { %v233_v51 = vsel %vm3198_vm5, %v171_v31, %v232_v46  ;;  %v386_v53 = vld [vmem:[#allocation2 + $0x24] sm:$0xf]  ;;  %v189_v4 = vrot.slane %v187_v54, 7  ;;  %v346_v14 = vrot.slane %v344_v56, 7  ;;  %155 = vst [vmem:[#allocation2 + $0x64] sm:$0xf] %v3311_v39 }
  0x1e   :  { %3097 = vmatpush.bf16.msra.mxu1 %v3004_v8  ;;  %3098 = vmatpush.bf16.msra.mxu2 %v3004_v8  ;;  %234 = vst [vmem:[#allocation2 + $0x18] sm:$0xf] %v233_v51  ;;  %v387_v59 = vsel %vm3198_vm5, %v328_v34, %v386_v53  ;;  %v3025_v15 = vld [vmem:[%s4103_s1 + $0x168] sm:$0xff]  ;;  %v53_v17 = vsel %vm3143_vm3, 0, %v52_v62  ;;  %v103_v28 = vld [vmem:[#allocation2 + $0xb4] sm:$0x1] }
  0x1f   :  { %3099 = vmatpush.bf16.msra.mxu3 %v3004_v8  ;;  %v2357_v0 = vld [vmem:[#allocation2 + $0x78] sm:$0xf]  ;;  %388 = vst [vmem:[#allocation2 + $0x24] sm:$0xf] %v387_v59  ;;  %914 = vmatpush.bf16.msra.mxu0 %v3004_v8  ;;  %v3017_v18 = vld [vmem:[%s4103_s1 + $0x128] sm:$0xff]  ;;  %v192_v8 = vor.u32 %v190_v55, %v189_v4  ;;  %v349_v26 = vor.u32 %v347_v60, %v346_v14  ;;  %v104_v32 = vsel %vm3143_vm3, 0, %v103_v28 }
  0x20   :  { %v2993_v16 = vld [vmem:[#allocation2 + $0x80] sm:$0xf0]  ;;  %156 = vst [vmem:[#allocation2 + $0x70] sm:$0xf] %v3319_v49  ;;  %v3362_v29 = vld [vmem:[%s4104_s0 + $0x30] sm:$0xf] }
  0x21   :  { %925 = vmatmul.bf16.vlgmr.msra.gmra.mxu1 %v2334_v40  ;;  %v2358_v23 = vor.u32 %v2993_v16, %v2357_v0  ;;  %54 = vst [vmem:[#allocation2 + $0xa8] sm:$0x1] %v53_v17  ;;  %v3372_v36 = vld [vmem:[%s4104_s0 + $0x34] sm:$0xf]  ;;  %v2969_v4 = vld [vmem:[%s4103_s1 + $0x68] sm:$0xff]  ;;  %v256_v14 = vrot.slane %v166_v1, 4 }
  0x22   :  { %1005 = vmatpush.bf16.msrb.mxu2 %v3027_v19  ;;  %956 = vmatpush.bf16.msrb.mxu1 %v3019_v37  ;;  %v2961_v19 = vld [vmem:[%s4103_s1 + $0x28] sm:$0xff]  ;;  %105 = vst [vmem:[#allocation2 + $0xb4] sm:$0x1] %v104_v32  ;;  %v3024_v37 = vld [vmem:[%s4103_s1 + $0x160] sm:$0xff]  ;;  %v2970_v46 = vld [vmem:[%s4103_s1 + $0x70] sm:$0xff]  ;;  %v368_v53 = vshll.u32 %v3372_v36, 16 }
  0x23   :  { %1326 = vmatpush.bf16.msrb.mxu3 %v2963_v33  ;;  %1375 = vmatpush.bf16.msrb.mxu0 %v2971_v57  ;;  %v241_v31 = vld [vmem:[#allocation2 + $0x60] sm:$0xf]  ;;  %v208_v33 = vshrl.u32 %v3362_v29, 16  ;;  %v395_v35 = vld [vmem:[#allocation2 + $0x6c] sm:$0xf]  ;;  %v411_v57 = vrot.slane %v326_v7, 5 }
  0x24   :  { %940 = vmatmul.bf16.vlgmr.msra.gmra.mxu3 %v2370_v41  ;;  %v242_v34 = vsel %vm3198_vm5, %v192_v8, %v241_v31  ;;  %935 = vmatmul.bf16.vlgmr.msra.gmra.mxu2 %v2358_v23  ;;  %v396_v38 = vsel %vm3198_vm5, %v349_v26, %v395_v35  ;;  %v211_v41 = vshll.u32 %v3362_v29, 16  ;;  %161 = vst [vmem:[#allocation2 + $0xac] sm:$0xf] %v3362_v29  ;;  %v2960_v7 = vld [vmem:[%s4103_s1 + $0x20] sm:$0xff]  ;;  %vm59_vm7 = vsmask.f32 7950 }
  0x25   :  { %243 = vst [vmem:[#allocation2 + $0x60] sm:$0xf] %v242_v34  ;;  %v210_v40 = vrot.slane %v208_v33, 7  ;;  %v2309_v51 = vld [vmem:[#allocation2 + $0x18] sm:$0xf]  ;;  %v3015_v61 = vld [vmem:[%s4103_s1 + $0x118] sm:$0xff]  ;;  %vm3419_vm9 = vmand %vm58_vm6, %vm59_vm7 }
  0x26   :  { %1006 = vmatpush.bf16.msrb.mxu2 %v3026_v42  ;;  %957 = vmatpush.bf16.msrb.mxu1 %v3018_v50  ;;  %v365_v42 = vshrl.u32 %v3372_v36, 16  ;;  %v257_v50 = vrot.slane %v169_v2, 5  ;;  %397 = vst [vmem:[#allocation2 + $0x6c] sm:$0xf] %v396_v38  ;;  %v3016_v2 = vld [vmem:[%s4103_s1 + $0x120] sm:$0xff]  ;;  %v3073_v44 = vld [vmem:[%s4103_s1 + $0x228] sm:$0xff] }
  0x27   :  { %1327 = vmatpush.bf16.msrb.mxu3 %v2962_v58  ;;  %v2981_v58 = vld [vmem:[#allocation2 + $0x20] sm:$0xf0]  ;;  %v213_v59 = vor.u32 %v211_v41, %v210_v40  ;;  %1376 = vmatpush.bf16.msrb.mxu0 %v2970_v46  ;;  %162 = vst [vmem:[#allocation2 + $0xb8] sm:$0xf] %v3372_v36  ;;  %v61_v17 = vld [vmem:[#allocation2 + $0x20] sm:$0x8] }
  0x28   :  { %v367_v62 = vrot.slane %v365_v42, 7  ;;  %v2310_v0 = vor.u32 %v2981_v58, %v2309_v51  ;;  %vm296_vm8 = vsmask.f32 3328  ;;  %v109_v23 = vld [vmem:[#allocation2 + $0x2c] sm:$0x8]  ;;  %v258_v8 = vor.u32 %v257_v50, %v256_v14  ;;  %v2968_v32 = vld [vmem:[%s4103_s1 + $0x60] sm:$0xff] }
  0x29   :  { %v404_v63 = vld [vmem:[#allocation2 + $0xb4] sm:$0xf]  ;;  %v62_v28 = vsel %vm3419_vm9, 0, %v61_v17  ;;  %v3022_v46 = vld [vmem:[%s4103_s1 + $0x150] sm:$0xff]  ;;  %v3465_v14 = vld [vmem:[%s4104_s0 + $0xc] sm:$0xf] }
  0x2a   :  { %1007 = vmatpush.bf16.msrb.mxu2 %v3025_v15  ;;  %958 = vmatpush.bf16.msrb.mxu1 %v3017_v18  ;;  %v3023_v15 = vld [vmem:[%s4103_s1 + $0x158] sm:$0xff]  ;;  %v370_v16 = vor.u32 %v368_v53, %v367_v62  ;;  %v410_v18 = vrot.slane %v323_v6, 4  ;;  %v3437_v38 = vrot.slane %v258_v8, 4  ;;  %v3014_v58 = vld [vmem:[%s4103_s1 + $0x110] sm:$0xff]  ;;  %63 = vst [vmem:[#allocation2 + $0x20] sm:$0x8] %v62_v28  ;;  %vm3487_vm10 = vmand %vm229_vm2, %vm296_vm8 }
  0x2b   :  { %1328 = vmatpush.bf16.msrb.mxu3 %v2961_v19  ;;  %915 = vmatmul.bf16.vlgmr.msra.gmra.mxu0 %v2310_v0  ;;  %v250_v19 = vld [vmem:[#allocation2 + $0xa8] sm:$0xf]  ;;  %v2959_v6 = vld [vmem:[%s4103_s1 + $0x18] sm:$0xff]  ;;  %v3021_v17 = vld [vmem:[%s4103_s1 + $0x148] sm:$0xff]  ;;  %152 = vst [vmem:[#allocation2 + $0x40] sm:$0xf] %v3465_v14 }
  0x2c   :  { %v251_v26 = vsel %vm3198_vm5, %v213_v59, %v250_v19  ;;  %1377 = vmatpush.bf16.msrb.mxu0 %v2969_v4  ;;  %v412_v31 = vor.u32 %v411_v57, %v410_v18  ;;  %v2345_v34 = vld [vmem:[#allocation2 + $0x60] sm:$0xf]  ;;  %v405_v35 = vsel %vm3198_vm5, %v370_v16, %v404_v63  ;;  %v2967_v51 = vld [vmem:[%s4103_s1 + $0x58] sm:$0xff]  ;;  %v2958_v59 = vld [vmem:[%s4103_s1 + $0x10] sm:$0xff]  ;;  %v330_v18 = vshrl.u32 %v3465_v14, 16 }
  0x2d   :  { %252 = vst [vmem:[#allocation2 + $0xa8] sm:$0xf] %v251_v26  ;;  %v2990_v40 = vld [vmem:[#allocation2 + $0x68] sm:$0xf0]  ;;  %v37_v62 = vld [vmem:[#allocation2 + $0x30] sm:$0x1] }
  0x2e   :  { %1008 = vmatpush.bf16.msrb.mxu2 %v3024_v37  ;;  %959 = vmatpush.bf16.msrb.mxu1 %v3016_v2  ;;  %v110_v37 = vsel %vm3419_vm9, 0, %v109_v23  ;;  %406 = vst [vmem:[#allocation2 + $0xb4] sm:$0xf] %v405_v35  ;;  %v3442_v50 = vrot.slane %v412_v31, 4  ;;  %v2346_v57 = vor.u32 %v2990_v40, %v2345_v34  ;;  %v88_v2 = vld [vmem:[#allocation2 + $0x3c] sm:$0x1] }
  0x2f   :  { %1329 = vmatpush.bf16.msrb.mxu3 %v2960_v7  ;;  %111 = vst [vmem:[#allocation2 + $0x2c] sm:$0x8] %v110_v37  ;;  %v38_v0 = vsel %vm3143_vm3, 0, %v37_v62  ;;  %v89_v7 = vsel %vm3143_vm3, 0, %v88_v2  ;;  %v3460_v4 = vld [vmem:[%s4104_s0 + $0x8] sm:$0xf] }
  0x30   :  { %1378 = vmatpush.bf16.msrb.mxu0 %v2968_v32  ;;  %39 = vst [vmem:[#allocation2 + $0x30] sm:$0x1] %v38_v0  ;;  %v176_v16 = vshll.u32 %v3460_v4, 16  ;;  %v333_v19 = vshll.u32 %v3465_v14, 16  ;;  %v3013_v23 = vld [vmem:[%s4103_s1 + $0x108] sm:$0xff]  ;;  %v332_v32 = vrot.slane %v330_v18, 7 }
  0x31   :  { %930 = vmatmul.bf16.gmra.mxu1 %v2346_v57  ;;  %90 = vst [vmem:[#allocation2 + $0x3c] sm:$0x1] %v89_v7  ;;  %v106_v63 = vld [vmem:[#allocation2 + $0xcc] sm:$0x1]  ;;  %v3501_v40 = vld [vmem:[%s4104_s0 + $0x38] sm:$0xf] }
  0x32   :  { %1009 = vmatpush.bf16.msrb.mxu2 %v3023_v15  ;;  %960 = vmatpush.bf16.msrb.mxu1 %v3015_v61  ;;  %v173_v15 = vshrl.u32 %v3460_v4, 16  ;;  %v55_v61 = vld [vmem:[#allocation2 + $0xc0] sm:$0x1]  ;;  %151 = vst [vmem:[#allocation2 + $0x34] sm:$0xf] %v3460_v4  ;;  %v107_v34 = vsel %vm3143_vm3, 0, %v106_v63 }
  0x33   :  { %1330 = vmatpush.bf16.msrb.mxu3 %v2959_v6  ;;  %v56_v26 = vsel %vm3143_vm3, 0, %v55_v61  ;;  %v2957_v6 = vld [vmem:[%s4103_s1 + $0x8] sm:$0xff]  ;;  %v3020_v57 = vld [vmem:[%s4103_s1 + $0x140] sm:$0xff]  ;;  %108 = vst [vmem:[#allocation2 + $0xcc] sm:$0x1] %v107_v34  ;;  %v215_v0 = vshrl.u32 %v3501_v40, 16 }
  0x34   :  { %v175_v8 = vrot.slane %v173_v15, 7  ;;  %v2381_v31 = vld [vmem:[#allocation2 + $0xa8] sm:$0xf]  ;;  %1379 = vmatpush.bf16.msrb.mxu0 %v2967_v51  ;;  %57 = vst [vmem:[#allocation2 + $0xc0] sm:$0x1] %v56_v26  ;;  %v335_v51 = vor.u32 %v333_v19, %v332_v32  ;;  %v218_v7 = vshll.u32 %v3501_v40, 16 }
  0x35   :  { %v2999_v35 = vld [vmem:[#allocation2 + $0xb0] sm:$0xf0]  ;;  %v298_v3 = vld [vmem:[#allocation2 + $0x20] sm:$0xf]  ;;  %163 = vst [vmem:[#allocation2 + $0xc4] sm:$0xf] %v3501_v40 }
  0x36   :  { %1010 = vmatpush.bf16.msrb.mxu2 %v3022_v46  ;;  %961 = vmatpush.bf16.msrb.mxu1 %v3014_v58  ;;  %v178_v37 = vor.u32 %v176_v16, %v175_v8  ;;  %v2382_v46 = vor.u32 %v2999_v35, %v2381_v31  ;;  %v3511_v58 = vld [vmem:[%s4104_s0 + $0x3c] sm:$0xf]  ;;  %v299_v62 = vsel %vm3487_vm10, %v3437_v38, %v298_v3  ;;  %v450_v2 = vld [vmem:[#allocation2 + $0x2c] sm:$0xf]  ;;  %v2965_v31 = vld [vmem:[%s4103_s1 + $0x48] sm:$0xff]  ;;  %v414_v4 = vrot.slane %v330_v18, 4 }
  0x37   :  { %1331 = vmatpush.bf16.msrb.mxu3 %v2958_v59  ;;  %v3012_v59 = vld [vmem:[%s4103_s1 + $0x100] sm:$0xff]  ;;  %v372_v61 = vshrl.u32 %v3511_v58, 16  ;;  %v2966_v8 = vld [vmem:[%s4103_s1 + $0x50] sm:$0xff]  ;;  %300 = vst [vmem:[#allocation2 + $0x20] sm:$0xf] %v299_v62  ;;  %v451_v26 = vsel %vm3487_vm10, %v3442_v50, %v450_v2  ;;  %v375_v38 = vshll.u32 %v3511_v58, 16 }
  0x38   :  { %945 = vmatmul.bf16.gmra.mxu3 %v2382_v46  ;;  %v235_v63 = vld [vmem:[#allocation2 + $0x30] sm:$0xf]  ;;  %452 = vst [vmem:[#allocation2 + $0x2c] sm:$0xf] %v451_v26  ;;  %v389_v34 = vld [vmem:[#allocation2 + $0x3c] sm:$0xf]  ;;  %1380 = vmatpush.bf16.msrb.mxu0 %v2966_v8 }
  0x39   :  { %v236_v32 = vsel %vm3198_vm5, %v178_v37, %v235_v63  ;;  %v374_v35 = vrot.slane %v372_v61, 7  ;;  %v390_v50 = vsel %vm3198_vm5, %v335_v51, %v389_v34  ;;  %v2980_v46 = vld [vmem:[#allocation2 + $0x1c] sm:$0xf]  ;;  %v2311_v3 = vld [vmem:[#allocation2 + $0x24] sm:$0xf0]  ;;  %v261_v26 = vrot.slane %v176_v16, 5 }
  0x3a   :  { %1011 = vmatpush.bf16.msrb.mxu2 %v3021_v17  ;;  %962 = vmatpush.bf16.msrb.mxu1 %v3013_v23  ;;  %v217_v17 = vrot.slane %v215_v0, 7  ;;  %237 = vst [vmem:[#allocation2 + $0x30] sm:$0xf] %v236_v32  ;;  %v2956_v62 = vld [vmem:[%s4103_s1] sm:$0xff]  ;;  %v407_v32 = vld [vmem:[#allocation2 + $0xcc] sm:$0xf] }
  0x3b   :  { %1332 = vmatpush.bf16.msrb.mxu3 %v2957_v6  ;;  %391 = vst [vmem:[#allocation2 + $0x3c] sm:$0xf] %v390_v50  ;;  %v377_v37 = vor.u32 %v375_v38, %v374_v35  ;;  %v64_v2 = vld [vmem:[#allocation2 + $0x38] sm:$0x8]  ;;  %v260_v6 = vrot.slane %v173_v15, 4  ;;  %v415_v27 = vrot.slane %v333_v19, 5 }
  0x3c   :  { %v220_v23 = vor.u32 %v218_v7, %v217_v17  ;;  %v253_v51 = vld [vmem:[#allocation2 + $0xc0] sm:$0xf]  ;;  %v65_v8 = vsel %vm3419_vm9, 0, %v64_v2  ;;  %164 = vst [vmem:[#allocation2 + $0xd0] sm:$0xf] %v3511_v58  ;;  %1381 = vmatpush.bf16.msrb.mxu0 %v2965_v31  ;;  %v2964_v16 = vld [vmem:[%s4103_s1 + $0x40] sm:$0xff] }
  0x3d   :  { %v112_v34 = vld [vmem:[#allocation2 + $0x44] sm:$0x8]  ;;  %v408_v15 = vsel %vm3198_vm5, %v377_v37, %v407_v32  ;;  %66 = vst [vmem:[#allocation2 + $0x38] sm:$0x8] %v65_v8  ;;  %v262_v50 = vor.u32 %v261_v26, %v260_v6  ;;  %v3067_v18 = vld [vmem:[%s4103_s1 + $0x1f8] sm:$0xff]  ;;  %v264_v6 = vrot.slane %v180_v10, 4 }
  0x3e   :  { %1012 = vmatpush.bf16.msrb.mxu2 %v3020_v57  ;;  %963 = vmatpush.bf16.msrb.mxu1 %v3012_v59  ;;  %v254_v63 = vsel %vm3198_vm5, %v220_v23, %v253_v51  ;;  %v2314_v57 = vor.u32 %v2980_v46, %v2311_v3  ;;  %v113_v17 = vsel %vm3419_vm9, 0, %v112_v34  ;;  %v3059_v59 = vld [vmem:[%s4103_s1 + $0x1b8] sm:$0xff]  ;;  %v2317_v35 = vld [vmem:[#allocation2 + $0x20] sm:$0xf]  ;;  %409 = vst [vmem:[#allocation2 + $0xcc] sm:$0xf] %v408_v15 }
  0x3f   :  { %1333 = vmatpush.bf16.msrb.mxu3 %v2956_v62  ;;  %255 = vst [vmem:[#allocation2 + $0xc0] sm:$0xf] %v254_v63  ;;  %v2982_v31 = vld [vmem:[#allocation2 + $0x28] sm:$0xf0]  ;;  %v416_v23 = vor.u32 %v415_v27, %v414_v4  ;;  %v3106_v62 = vmov 0   ;;  %v2979_v14 = vld [vmem:[%s4103_s1 + $0xb8] sm:$0xff] }
  0x40   :  { %v2318_v46 = vor.u32 %v2982_v31, %v2317_v35  ;;  %114 = vst [vmem:[#allocation2 + $0x44] sm:$0x8] %v113_v17  ;;  %1382 = vmatpush.bf16.msrb.mxu0 %v2964_v16  ;;  %v3075_v2 = vld [vmem:[%s4103_s1 + $0x238] sm:$0xff]  ;;  %v263_v51 = vrot.slane %v262_v50, 4  ;;  %v265_v8 = vrot.slane %v183_v11, 5  ;;  %v418_v32 = vrot.slane %v337_v12, 4 }
  0x41   :  { %v2321_v3 = vld [vmem:[#allocation2 + $0x30] sm:$0xf]  ;;  %964 = vmatmul.bf16.vlgmr.msrb.gmra.mxu1 %v2314_v57  ;;  %21 = vst [vmem:[#allocation2] sm:$0xff] %v3106_v62  ;;  %v417_v63 = vrot.slane %v416_v23, 4  ;;  %v419_v10 = vrot.slane %v340_v13, 5  ;;  %v3058_v31 = vld [vmem:[%s4103_s1 + $0x1b0] sm:$0xff] }
  0x42   :  { %1827 = vmatpush.bf16.msra.mxu2 %v3059_v59  ;;  %v2984_v37 = vld [vmem:[#allocation2 + $0x38] sm:$0xf0]  ;;  %23 = vst [vmem:[#allocation2 + $0xc] sm:$0xff] %v3106_v62  ;;  %1424 = vmatpush.bf16.msra.mxu1 %v2979_v14  ;;  %v67_v15 = vld [vmem:[#allocation2 + $0x50] sm:$0x8]  ;;  %v266_v57 = vor.u32 %v265_v8, %v264_v6  ;;  %v3074_v23 = vld [vmem:[%s4103_s1 + $0x230] sm:$0xff] }
  0x43   :  { %1013 = vmatmul.bf16.vlgmr.msrb.gmra.mxu2 %v2318_v46  ;;  %v2322_v19 = vor.u32 %v2984_v37, %v2321_v3  ;;  %1876 = vmatpush.bf16.msra.mxu3 %v3067_v18  ;;  %22 = vst [vmem:[#allocation2 + $0x8] sm:$0xf] %v3106_v62  ;;  %v115_v5 = vld [vmem:[#allocation2 + $0x5c] sm:$0x8]  ;;  %v420_v59 = vor.u32 %v419_v10, %v418_v32  ;;  %v68_v35 = vsel %vm3419_vm9, 0, %v67_v15  ;;  %v3066_v46 = vld [vmem:[%s4103_s1 + $0x1f0] sm:$0xff] }
  0x44   :  { %24 = vst [vmem:[#allocation2 + $0x14] sm:$0xf] %v3106_v62  ;;  %1925 = vmatpush.bf16.msra.mxu0 %v3075_v2  ;;  %v301_v4 = vld [vmem:[#allocation2 + $0x38] sm:$0xf]  ;;  %v2983_v9 = vld [vmem:[#allocation2 + $0x34] sm:$0xf] }
  0x45   :  { %920 = vmatmul.bf16.gmra.mxu0 %v2322_v19  ;;  %v3002_v34 = vld [vmem:[#allocation2 + $0xc8] sm:$0xf0]  ;;  %26 = vst [vmem:[#allocation2 + $0xd8] sm:$0xff] %v3106_v62  ;;  %v302_v11 = vsel %vm3487_vm10, %v263_v51, %v301_v4  ;;  %v116_v13 = vsel %vm3419_vm9, 0, %v115_v5  ;;  %v2323_v27 = vld [vmem:[#allocation2 + $0x3c] sm:$0xf0] }
  0x46   :  { %v2393_v26 = vld [vmem:[#allocation2 + $0xc0] sm:$0xf]  ;;  %27 = vst [vmem:[#allocation2 + $0xe0] sm:$0xf] %v3106_v62  ;;  %1828 = vmatpush.bf16.msra.mxu2 %v3058_v31  ;;  %v2978_v3 = vld [vmem:[%s4103_s1 + $0xb0] sm:$0xff]  ;;  %v268_v37 = vrot.slane %v187_v54, 4 }
  0x47   :  { %v2394_v17 = vor.u32 %v3002_v34, %v2393_v26  ;;  %v453_v16 = vld [vmem:[#allocation2 + $0x44] sm:$0xf]  ;;  %28 = vst [vmem:[#allocation2 + $0xe4] sm:$0xff] %v3106_v62  ;;  %v70_v14 = vld [vmem:[#allocation2 + $0x68] sm:$0x8]  ;;  %v269_v2 = vrot.slane %v190_v55, 5  ;;  %1877 = vmatpush.bf16.msra.mxu3 %v3066_v46  ;;  %1425 = vmatpush.bf16.msra.mxu1 %v2978_v3 }
  0x48   :  { %303 = vst [vmem:[#allocation2 + $0x38] sm:$0xf] %v302_v11  ;;  %v454_v12 = vsel %vm3487_vm10, %v417_v63, %v453_v16  ;;  %v2932_v50 = vld [vmem:[#allocation2 + $0x4] sm:$0xf]  ;;  %v118_v19 = vld [vmem:[#allocation2 + $0x74] sm:$0x8]  ;;  %1926 = vmatpush.bf16.msra.mxu0 %v3074_v23 }
  0x49   :  { %950 = vmatmul.bf16.gmra.mxu3 %v2394_v17  ;;  %455 = vst [vmem:[#allocation2 + $0x44] sm:$0xf] %v454_v12  ;;  %v2503_v18 = vld [vmem:[#allocation2 + $0xc] sm:$0xf0]  ;;  %v422_v6 = vrot.slane %v344_v56, 4  ;;  %v71_v51 = vsel %vm3419_vm9, 0, %v70_v14  ;;  %v270_v39 = vor.u32 %v269_v2, %v268_v37 }
  0x4a   :  { %29 = vst [vmem:[#allocation2 + $0xec] sm:$0xf] %v3106_v62  ;;  %v2326_v62 = vor.u32 %v2983_v9, %v2323_v27  ;;  %v119_v8 = vsel %vm3419_vm9, 0, %v118_v19  ;;  %v423_v54 = vrot.slane %v347_v60, 5  ;;  %v2501_v63 = vld [vmem:[#allocation2] sm:$0xf]  ;;  %v2506_v56 = vor.u32 %v2932_v50, %v2503_v18  ;;  %1829 = vmatpush.bf16.msra.mxu2 %v3057_v43 }
  0x4b   :  { %69 = vst [vmem:[#allocation2 + $0x50] sm:$0x8] %v68_v35  ;;  %v267_v32 = vrot.slane %v266_v57, 4  ;;  %v421_v34 = vrot.slane %v420_v59, 4  ;;  %v73_v10 = vld [vmem:[#allocation2 + $0x80] sm:$0x8] }
  0x4c   :  { %117 = vst [vmem:[#allocation2 + $0x5c] sm:$0x8] %v116_v13  ;;  %v424_v15 = vor.u32 %v423_v54, %v422_v6  ;;  %v2933_v4 = vld [vmem:[#allocation2 + $0x8] sm:$0xf0]  ;;  %v74_v5 = vsel %vm3419_vm9, 0, %v73_v10  ;;  %v271_v16 = vrot.slane %v270_v39, 4  ;;  %1927 = vmatpush.bf16.msra.mxu0 %v3073_v44 }
  0x4d   :  { %72 = vst [vmem:[#allocation2 + $0x68] sm:$0x8] %v71_v51  ;;  %v121_v49 = vld [vmem:[#allocation2 + $0x8c] sm:$0x8]  ;;  %v2502_v12 = vor.u32 %v2933_v4, %v2501_v63  ;;  %v272_v27 = vrot.slane %v194_v45, 4  ;;  %v273_v31 = vrot.slane %v197_v47, 5 }
  0x4e   :  { %120 = vst [vmem:[#allocation2 + $0x74] sm:$0x8] %v119_v8  ;;  %v122_v59 = vsel %vm3419_vm9, 0, %v121_v49  ;;  %v425_v9 = vrot.slane %v424_v15, 4  ;;  %v426_v46 = vrot.slane %v351_v48, 4  ;;  %v427_v3 = vrot.slane %v354_v52, 5 }
  0x4f   :  { %v2329_v26 = vld [vmem:[#allocation2 + $0x38] sm:$0xf]  ;;  %75 = vst [vmem:[#allocation2 + $0x80] sm:$0x8] %v74_v5  ;;  %v3065_v45 = vld [vmem:[%s4103_s1 + $0x1e8] sm:$0xff]  ;;  %v274_v48 = vor.u32 %v273_v31, %v272_v27  ;;  %v2975_v29 = vld [vmem:[%s4103_s1 + $0x98] sm:$0xff] }
  0x50   :  { %v2985_v55 = vld [vmem:[#allocation2 + $0x40] sm:$0xf0]  ;;  %123 = vst [vmem:[#allocation2 + $0x8c] sm:$0x8] %v122_v59  ;;  %v428_v37 = vor.u32 %v427_v3, %v426_v46  ;;  %v2335_v14 = vld [vmem:[#allocation2 + $0x54] sm:$0xf0]  ;;  %1878 = vmatpush.bf16.msra.mxu3 %v3065_v45 }
  0x51   :  { %v2330_v17 = vor.u32 %v2985_v55, %v2329_v26  ;;  %969 = vmatmul.bf16.gmra.mxu1 %v2326_v62  ;;  %v2977_v47 = vld [vmem:[%s4103_s1 + $0xa8] sm:$0xff]  ;;  %v2986_v62 = vld [vmem:[#allocation2 + $0x4c] sm:$0xf]  ;;  %v275_v19 = vrot.slane %v274_v48, 4  ;;  %v2935_v8 = vld [vmem:[#allocation2 + $0x1c] sm:$0xf] }
  0x52   :  { %v304_v60 = vld [vmem:[#allocation2 + $0x50] sm:$0xf]  ;;  %1426 = vmatpush.bf16.msra.mxu1 %v2977_v47  ;;  %v429_v2 = vrot.slane %v428_v37, 4  ;;  %v2338_v26 = vor.u32 %v2986_v62, %v2335_v14  ;;  %v2515_v63 = vld [vmem:[#allocation2 + $0x24] sm:$0xf0]  ;;  %v2976_v20 = vld [vmem:[%s4103_s1 + $0xa0] sm:$0xff] }
  0x53   :  { %1018 = vmatmul.bf16.gmra.mxu2 %v2330_v17  ;;  %v305_v57 = vsel %vm3487_vm10, %v267_v32, %v304_v60  ;;  %v456_v11 = vld [vmem:[#allocation2 + $0x5c] sm:$0xf]  ;;  %v2518_v55 = vor.u32 %v2935_v8, %v2515_v63  ;;  %v124_v15 = vld [vmem:[#allocation2 + $0xa4] sm:$0x8]  ;;  %v2513_v10 = vld [vmem:[#allocation2 + $0x18] sm:$0xf] }
  0x54   :  { %306 = vst [vmem:[#allocation2 + $0x50] sm:$0xf] %v305_v57  ;;  %v457_v35 = vsel %vm3487_vm10, %v421_v34, %v456_v11  ;;  %v307_v13 = vld [vmem:[#allocation2 + $0x68] sm:$0xf]  ;;  %v2936_v17 = vld [vmem:[#allocation2 + $0x20] sm:$0xf0] }
  0x55   :  { %1383 = vmatmul.bf16.vlgmr.msrb.gmra.mxu0 %v2506_v56  ;;  %458 = vst [vmem:[#allocation2 + $0x5c] sm:$0xf] %v457_v35  ;;  %v308_v50 = vsel %vm3487_vm10, %v271_v16, %v307_v13  ;;  %v459_v18 = vld [vmem:[#allocation2 + $0x74] sm:$0xf]  ;;  %v76_v56 = vld [vmem:[#allocation2 + $0x98] sm:$0x8]  ;;  %v2514_v49 = vor.u32 %v2936_v17, %v2513_v10 }
  0x56   :  { %309 = vst [vmem:[#allocation2 + $0x68] sm:$0xf] %v308_v50  ;;  %v460_v23 = vsel %vm3487_vm10, %v425_v9, %v459_v18  ;;  %v310_v52 = vld [vmem:[#allocation2 + $0x80] sm:$0xf]  ;;  %v77_v4 = vsel %vm3419_vm9, 0, %v76_v56  ;;  %v125_v5 = vsel %vm3419_vm9, 0, %v124_v15  ;;  %1427 = vmatpush.bf16.msra.mxu1 %v2976_v20 }
  0x57   :  { %461 = vst [vmem:[#allocation2 + $0x74] sm:$0xf] %v460_v23  ;;  %v311_v54 = vsel %vm3487_vm10, %v275_v19, %v310_v52  ;;  %v462_v32 = vld [vmem:[#allocation2 + $0x8c] sm:$0xf]  ;;  %v276_v60 = vrot.slane %v201_v22, 4  ;;  %v277_v57 = vrot.slane %v204_v24, 5 }
  0x58   :  { %312 = vst [vmem:[#allocation2 + $0x80] sm:$0xf] %v311_v54  ;;  %v463_v34 = vsel %vm3487_vm10, %v429_v2, %v462_v32  ;;  %v430_v11 = vrot.slane %v358_v25, 4  ;;  %v431_v16 = vrot.slane %v361_v30, 5  ;;  %v3064_v35 = vld [vmem:[%s4103_s1 + $0x1e0] sm:$0xff]  ;;  %v280_v2 = vrot.slane %v208_v33, 4 }
  0x59   :  { %1334 = vmatmul.bf16.vlgmr.msrb.gmra.mxu3 %v2502_v12  ;;  %464 = vst [vmem:[#allocation2 + $0x8c] sm:$0xf] %v463_v34  ;;  %v278_v59 = vor.u32 %v277_v57, %v276_v60  ;;  %v3056_v12 = vld [vmem:[%s4103_s1 + $0x1a0] sm:$0xff]  ;;  %v2989_v30 = vld [vmem:[#allocation2 + $0x64] sm:$0xf]  ;;  %v435_v8 = vrot.slane %v368_v53, 5 }
  0x5a   :  { %78 = vst [vmem:[#allocation2 + $0x98] sm:$0x8] %v77_v4  ;;  %v432_v22 = vor.u32 %v431_v16, %v430_v11  ;;  %v3072_v21 = vld [vmem:[%s4103_s1 + $0x220] sm:$0xff]  ;;  %v2347_v9 = vld [vmem:[#allocation2 + $0x6c] sm:$0xf0]  ;;  %1830 = vmatpush.bf16.msra.mxu2 %v3056_v12  ;;  %1879 = vmatpush.bf16.msra.mxu3 %v3064_v35  ;;  %v3054_v1 = vld [vmem:[%s4103_s1 + $0x190] sm:$0xff] }
  0x5b   :  { %v2341_v6 = vld [vmem:[#allocation2 + $0x50] sm:$0xf]  ;;  %126 = vst [vmem:[#allocation2 + $0xa4] sm:$0x8] %v125_v5  ;;  %v279_v24 = vrot.slane %v278_v59, 4  ;;  %1928 = vmatpush.bf16.msra.mxu0 %v3072_v21  ;;  %v2350_v3 = vor.u32 %v2989_v30, %v2347_v9  ;;  %1428 = vmatpush.bf16.msra.mxu1 %v2975_v29  ;;  %v285_v21 = vrot.slane %v218_v7, 5 }
  0x5c   :  { %v2988_v51 = vld [vmem:[#allocation2 + $0x58] sm:$0xf0]  ;;  %v433_v13 = vrot.slane %v432_v22, 4  ;;  %v2938_v23 = vld [vmem:[#allocation2 + $0x34] sm:$0xf]  ;;  %v284_v22 = vrot.slane %v215_v0, 4 }
  0x5d   :  { %v2342_v39 = vor.u32 %v2988_v51, %v2341_v6  ;;  %v2353_v50 = vld [vmem:[#allocation2 + $0x68] sm:$0xf]  ;;  %v2527_v43 = vld [vmem:[#allocation2 + $0x3c] sm:$0xf0]  ;;  %v79_v48 = vld [vmem:[#allocation2 + $0xb0] sm:$0x8] }
  0x5e   :  { %v2991_v18 = vld [vmem:[#allocation2 + $0x70] sm:$0xf0]  ;;  %v2530_v47 = vor.u32 %v2938_v23, %v2527_v43  ;;  %v127_v44 = vld [vmem:[#allocation2 + $0xbc] sm:$0x8]  ;;  %v2525_v52 = vld [vmem:[#allocation2 + $0x30] sm:$0xf]  ;;  %v286_v0 = vor.u32 %v285_v21, %v284_v22 }
  0x5f   :  { %v2354_v45 = vor.u32 %v2991_v18, %v2353_v50  ;;  %v2939_v37 = vld [vmem:[#allocation2 + $0x38] sm:$0xf0]  ;;  %v80_v62 = vsel %vm3419_vm9, 0, %v79_v48  ;;  %v128_v14 = vsel %vm3419_vm9, 0, %v127_v44  ;;  %v281_v6 = vrot.slane %v211_v41, 5  ;;  %v3055_v54 = vld [vmem:[%s4103_s1 + $0x198] sm:$0xff] }
  0x60   :  { %81 = vst [vmem:[#allocation2 + $0xb0] sm:$0x8] %v80_v62  ;;  %v2526_v19 = vor.u32 %v2939_v37, %v2525_v52  ;;  %v434_v51 = vrot.slane %v365_v42, 4  ;;  %v3071_v41 = vld [vmem:[%s4103_s1 + $0x218] sm:$0xff]  ;;  %v2992_v53 = vld [vmem:[#allocation2 + $0x7c] sm:$0xf]  ;;  %1831 = vmatpush.bf16.msra.mxu2 %v3055_v54 }
  0x61   :  { %974 = vmatmul.bf16.gmra.mxu1 %v2338_v26  ;;  %v313_v25 = vld [vmem:[#allocation2 + $0x98] sm:$0xf]  ;;  %129 = vst [vmem:[#allocation2 + $0xbc] sm:$0x8] %v128_v14  ;;  %v3063_v26 = vld [vmem:[%s4103_s1 + $0x1d8] sm:$0xff]  ;;  %v282_v33 = vor.u32 %v281_v6, %v280_v2  ;;  %1929 = vmatpush.bf16.msra.mxu0 %v3071_v41  ;;  %v3062_v30 = vld [vmem:[%s4103_s1 + $0x1d0] sm:$0xff] }
  0x62   :  { %v314_v27 = vsel %vm3487_vm10, %v279_v24, %v313_v25  ;;  %v465_v31 = vld [vmem:[#allocation2 + $0xa4] sm:$0xf]  ;;  %v436_v42 = vor.u32 %v435_v8, %v434_v51  ;;  %v2359_v63 = vld [vmem:[#allocation2 + $0x84] sm:$0xf0]  ;;  %1880 = vmatpush.bf16.msra.mxu3 %v3063_v26  ;;  %v2941_v17 = vld [vmem:[#allocation2 + $0x4c] sm:$0xf] }
  0x63   :  { %1023 = vmatmul.bf16.gmra.mxu2 %v2342_v39  ;;  %315 = vst [vmem:[#allocation2 + $0x98] sm:$0xf] %v314_v27  ;;  %v466_v46 = vsel %vm3487_vm10, %v433_v13, %v465_v31  ;;  %v283_v32 = vrot.slane %v282_v33, 4  ;;  %v2365_v39 = vld [vmem:[#allocation2 + $0x80] sm:$0xf]  ;;  %v2362_v10 = vor.u32 %v2992_v53, %v2359_v63  ;;  %v438_v24 = vrot.slane %v372_v61, 4 }
  0x64   :  { %467 = vst [vmem:[#allocation2 + $0xa4] sm:$0xf] %v466_v46  ;;  %v437_v34 = vrot.slane %v436_v42, 4  ;;  %v2539_v4 = vld [vmem:[#allocation2 + $0x54] sm:$0xf0]  ;;  %v439_v25 = vrot.slane %v375_v38, 5  ;;  %1832 = vmatpush.bf16.msra.mxu2 %v3054_v1 }
  0x65   :  { %1388 = vmatmul.bf16.gmra.mxu0 %v2518_v55  ;;  %v2994_v55 = vld [vmem:[#allocation2 + $0x88] sm:$0xf0]  ;;  %v2542_v60 = vor.u32 %v2941_v17, %v2539_v4  ;;  %v82_v57 = vld [vmem:[#allocation2 + $0xc8] sm:$0x8]  ;;  %v130_v11 = vld [vmem:[#allocation2 + $0xd4] sm:$0x8] }
  0x66   :  { %v2537_v16 = vld [vmem:[#allocation2 + $0x48] sm:$0xf]  ;;  %v2942_v59 = vld [vmem:[#allocation2 + $0x50] sm:$0xf0]  ;;  %v83_v12 = vsel %vm3419_vm9, 0, %v82_v57  ;;  %v131_v35 = vsel %vm3419_vm9, 0, %v130_v11  ;;  %v440_v61 = vor.u32 %v439_v25, %v438_v24  ;;  %1881 = vmatpush.bf16.msra.mxu3 %v3062_v30 }
  0x67   :  { %v316_v36 = vld [vmem:[#allocation2 + $0xb0] sm:$0xf]  ;;  %84 = vst [vmem:[#allocation2 + $0xc8] sm:$0x8] %v83_v12  ;;  %v2538_v20 = vor.u32 %v2942_v59, %v2537_v16  ;;  %v2974_v40 = vld [vmem:[%s4103_s1 + $0x90] sm:$0xff]  ;;  %v287_v13 = vrot.slane %v286_v0, 4 }
  0x68   :  { %v317_v56 = vsel %vm3487_vm10, %v283_v32, %v316_v36  ;;  %v468_v15 = vld [vmem:[#allocation2 + $0xbc] sm:$0xf]  ;;  %132 = vst [vmem:[#allocation2 + $0xd4] sm:$0x8] %v131_v35  ;;  %v3070_v7 = vld [vmem:[%s4103_s1 + $0x210] sm:$0xff]  ;;  %1429 = vmatpush.bf16.msra.mxu1 %v2974_v40  ;;  %v441_v27 = vrot.slane %v440_v61, 4 }
  0x69   :  { %1339 = vmatmul.bf16.gmra.mxu3 %v2514_v49  ;;  %318 = vst [vmem:[#allocation2 + $0xb0] sm:$0xf] %v317_v56  ;;  %v469_v5 = vsel %vm3487_vm10, %v437_v34, %v468_v15  ;;  %v2366_v49 = vor.u32 %v2994_v55, %v2365_v39  ;;  %v2995_v38 = vld [vmem:[#allocation2 + $0x94] sm:$0xf]  ;;  %v2371_v9 = vld [vmem:[#allocation2 + $0x9c] sm:$0xf0]  ;;  %1930 = vmatpush.bf16.msra.mxu0 %v3070_v7 }
  0x6a   :  { %470 = vst [vmem:[#allocation2 + $0xbc] sm:$0xf] %v469_v5  ;;  %v2377_v50 = vld [vmem:[#allocation2 + $0x98] sm:$0xf]  ;;  %v2944_v23 = vld [vmem:[#allocation2 + $0x64] sm:$0xf] }
  0x6b   :  { %v2997_v18 = vld [vmem:[#allocation2 + $0xa0] sm:$0xf0]  ;;  %v2551_v43 = vld [vmem:[#allocation2 + $0x6c] sm:$0xf0]  ;;  %v2549_v44 = vld [vmem:[#allocation2 + $0x60] sm:$0xf] }
  0x6c   :  { %v2554_v48 = vor.u32 %v2944_v23, %v2551_v43  ;;  %v2945_v52 = vld [vmem:[#allocation2 + $0x68] sm:$0xf0]  ;;  %v3053_v62 = vld [vmem:[%s4103_s1 + $0x188] sm:$0xff]  ;;  %v2947_v26 = vld [vmem:[#allocation2 + $0x7c] sm:$0xf]  ;;  %vm2086_vm12 = vcmask 1041408  }
  0x6d   :  { %v2550_v37 = vor.u32 %v2945_v52, %v2549_v44  ;;  %v3061_v14 = vld [vmem:[%s4103_s1 + $0x1c8] sm:$0xff]  ;;  %v2998_v28 = vld [vmem:[#allocation2 + $0xac] sm:$0xf]  ;;  %1833 = vmatpush.bf16.msra.mxu2 %v3053_v62  ;;  %v2563_v29 = vld [vmem:[#allocation2 + $0x84] sm:$0xf0]  ;;  %vm2142_vm0 = vcmask 64512  }
  0x6e   :  { %v319_v58 = vld [vmem:[#allocation2 + $0xc8] sm:$0xf]  ;;  %1882 = vmatpush.bf16.msra.mxu3 %v3061_v14  ;;  %v2973_v2 = vld [vmem:[%s4103_s1 + $0x88] sm:$0xff]  ;;  %v2566_v36 = vor.u32 %v2947_v26, %v2563_v29  ;;  %v2561_v42 = vld [vmem:[#allocation2 + $0x78] sm:$0xf] }
  0x6f   :  { %v471_v31 = vld [vmem:[#allocation2 + $0xd4] sm:$0xf]  ;;  %v320_v46 = vsel %vm3487_vm10, %v287_v13, %v319_v58  ;;  %v3069_v6 = vld [vmem:[%s4103_s1 + $0x208] sm:$0xff]  ;;  %1430 = vmatpush.bf16.msra.mxu1 %v2973_v2  ;;  %v2972_v63 = vld [vmem:[%s4103_s1 + $0x80] sm:$0xff] }
  0x70   :  { %321 = vst [vmem:[#allocation2 + $0xc8] sm:$0xf] %v320_v46  ;;  %v2389_v51 = vld [vmem:[#allocation2 + $0xb0] sm:$0xf]  ;;  %1931 = vmatpush.bf16.msra.mxu0 %v3069_v6  ;;  %v2948_v53 = vld [vmem:[#allocation2 + $0x80] sm:$0xf0] }
  0x71   :  { %979 = vmatmul.bf16.gmra.mxu1 %v2350_v3  ;;  %v2374_v3 = vor.u32 %v2995_v38, %v2371_v9  ;;  %v3000_v8 = vld [vmem:[#allocation2 + $0xb8] sm:$0xf0]  ;;  %v2562_v32 = vor.u32 %v2948_v53, %v2561_v42  ;;  %v3001_v15 = vld [vmem:[#allocation2 + $0xc4] sm:$0xf]  ;;  %v2575_v57 = vld [vmem:[#allocation2 + $0x9c] sm:$0xf0] }
  0x72   :  { %v2390_v41 = vor.u32 %v3000_v8, %v2389_v51  ;;  %v3052_v55 = vld [vmem:[%s4103_s1 + $0x180] sm:$0xff]  ;;  %v2573_v22 = vld [vmem:[#allocation2 + $0x90] sm:$0xf]  ;;  %v2509_v40 = vld [vmem:[#allocation2 + $0x8] sm:$0xf] }
  0x73   :  { %1028 = vmatmul.bf16.gmra.mxu2 %v2354_v45  ;;  %v472_v45 = vsel %vm3487_vm10, %v441_v27, %v471_v31  ;;  %1431 = vmatpush.bf16.msra.mxu1 %v2972_v63  ;;  %v3060_v56 = vld [vmem:[%s4103_s1 + $0x1c0] sm:$0xff]  ;;  %v2934_v0 = vld [vmem:[#allocation2 + $0x10] sm:$0xf0]  ;;  %v2741_v58 = vld [vmem:[#allocation2 + $0x30] sm:$0xf] }
  0x74   :  { %473 = vst [vmem:[#allocation2 + $0xd4] sm:$0xf] %v472_v45  ;;  %1834 = vmatpush.bf16.msra.mxu2 %v3052_v55  ;;  %1883 = vmatpush.bf16.msra.mxu3 %v3060_v56  ;;  %v3068_v16 = vld [vmem:[%s4103_s1 + $0x200] sm:$0xff]  ;;  %v2953_v38 = vld [vmem:[#allocation2 + $0xac] sm:$0xf]  ;;  %v2510_v13 = vor.u32 %v2934_v0, %v2509_v40 }
  0x75   :  { %1393 = vmatmul.bf16.gmra.mxu0 %v2530_v47  ;;  %v2378_v47 = vor.u32 %v2997_v18, %v2377_v50  ;;  %v2951_v21 = vld [vmem:[#allocation2 + $0x98] sm:$0xf0]  ;;  %v2587_v9 = vld [vmem:[#allocation2 + $0xb4] sm:$0xf0]  ;;  %v2954_v23 = vld [vmem:[#allocation2 + $0xb0] sm:$0xf0] }
  0x76   :  { %1932 = vmatpush.bf16.msra.mxu0 %v3068_v16  ;;  %v2574_v24 = vor.u32 %v2951_v21, %v2573_v22  ;;  %v3029_v61 = vld [vmem:[#allocation2 + $0x38] sm:$0xf0]  ;;  %v2590_v18 = vor.u32 %v2953_v38, %v2587_v9  ;;  %v2521_v62 = vld [vmem:[#allocation2 + $0x20] sm:$0xf]  ;;  %v2937_v14 = vld [vmem:[#allocation2 + $0x28] sm:$0xf0] }
  0x77   :  { %v2401_v17 = vld [vmem:[#allocation2 + $0xc8] sm:$0xf]  ;;  %v2742_v50 = vor.u32 %v3029_v61, %v2741_v58  ;;  %v3032_v2 = vld [vmem:[#allocation2 + $0x50] sm:$0xf0]  ;;  %v2522_v51 = vor.u32 %v2937_v14, %v2521_v62  ;;  %v2749_v8 = vld [vmem:[#allocation2 + $0x38] sm:$0xf] }
  0x78   :  { %v3028_v63 = vld [vmem:[#allocation2 + $0x34] sm:$0xf]  ;;  %v2761_v21 = vld [vmem:[#allocation2 + $0x50] sm:$0xf]  ;;  %v2777_v14 = vld [vmem:[#allocation2 + $0x78] sm:$0xf] }
  0x79   :  { %1344 = vmatmul.bf16.gmra.mxu3 %v2526_v19  ;;  %v2383_v19 = vld [vmem:[#allocation2 + $0xb4] sm:$0xf0] }
  0x7a   :  { %v2386_v54 = vor.u32 %v2998_v28, %v2383_v19  ;;  %v2753_v19 = vld [vmem:[#allocation2 + $0x48] sm:$0xf] }
  0x7b   :  { %v3003_v4 = vld [vmem:[#allocation2 + $0xd0] sm:$0xf0] }
  0x7c   :  { %v2402_v59 = vor.u32 %v3003_v4, %v2401_v17 }
  0x81   :  { %984 = vmatmul.bf16.gmra.mxu1 %v2362_v10  ;;  %v2395_v10 = vld [vmem:[#allocation2 + $0xcc] sm:$0xf0] }
  0x83   :  { %1033 = vmatmul.bf16.gmra.mxu2 %v2366_v49  ;;  %v2398_v49 = vor.u32 %v3001_v15, %v2395_v10 }
  0x85   :  { %1398 = vmatmul.bf16.gmra.mxu0 %v2542_v60  ;;  %v2950_v60 = vld [vmem:[#allocation2 + $0x94] sm:$0xf] }
  0x86   :  { %v2578_v35 = vor.u32 %v2950_v60, %v2575_v57  ;;  %v2940_v60 = vld [vmem:[#allocation2 + $0x40] sm:$0xf0] }
  0x89   :  { %1349 = vmatmul.bf16.gmra.mxu3 %v2538_v20 }
  0x91   :  { %989 = vmatmul.bf16.gmra.mxu1 %v2374_v3  ;;  %v2585_v3 = vld [vmem:[#allocation2 + $0xa8] sm:$0xf] }
  0x92   :  { %v2586_v45 = vor.u32 %v2954_v23, %v2585_v3 }
  0x93   :  { %1038 = vmatmul.bf16.gmra.mxu2 %v2378_v47 }
  0x95   :  { %1403 = vmatmul.bf16.gmra.mxu0 %v2554_v48 }
  0x99   :  { %1354 = vmatmul.bf16.gmra.mxu3 %v2550_v37 }
  0x9e   :  { %v3752_v33 = vpop.f32.mrf.mxu1 }
  0xa1   :  { %994 = vmatmul.bf16.gmra.mxu1 %v2386_v54  ;;  %v3030_v54 = vld [vmem:[#allocation2 + $0x40] sm:$0xf0] }
  0xa2   :  { %v2750_v42 = vor.u32 %v3030_v54, %v2749_v8 }
  0xa3   :  { %1043 = vmatmul.bf16.gmra.mxu2 %v2390_v41 }
  0xa5   :  { %1408 = vmatmul.bf16.gmra.mxu0 %v2566_v36  ;;  %v2754_v36 = vor.u32 %v3032_v2, %v2753_v19  ;;  %v3038_v19 = vld [vmem:[#allocation2 + $0x80] sm:$0xf0] }
  0xa6   :  { %v3759_v39 = vpop.f32.mrf.mxu1 }
  0xa7   :  { %v3757_v34 = vpop.f32.mrf.mxu3  ;;  %v3774_v20 = vpop.f32.mrf.mxu2 }
  0xa8   :  { %v916_v5 = vpop.f32.mrf.mxu0 }
  0xa9   :  { %1359 = vmatmul.bf16.gmra.mxu3 %v2562_v32  ;;  %v2743_v32 = vld [vmem:[#allocation2 + $0x3c] sm:$0xf0] }
  0xaa   :  { %v2746_v56 = vor.u32 %v3028_v63, %v2743_v32  ;;  %v2767_v63 = vld [vmem:[#allocation2 + $0x6c] sm:$0xf0] }
  0xae   :  { %v3767_v11 = vpop.f32.mrf.mxu1 }
  0xaf   :  { %v3772_v12 = vpop.f32.mrf.mxu3  ;;  %v3780_v7 = vpop.f32.mrf.mxu2 }
  0xb0   :  { %v918_v1 = vpop.f32.mrf.mxu0 }
  0xb1   :  { %999 = vmatmul.bf16.gmra.mxu1 %v2398_v49  ;;  %v2533_v49 = vld [vmem:[#allocation2 + $0x38] sm:$0xf] }
  0xb2   :  { %v2534_v22 = vor.u32 %v2940_v60, %v2533_v49  ;;  %v2557_v60 = vld [vmem:[#allocation2 + $0x68] sm:$0xf] }
  0xb3   :  { %1048 = vmatmul.bf16.gmra.mxu2 %v2402_v59  ;;  %v2765_v59 = vld [vmem:[#allocation2 + $0x60] sm:$0xf] }
  0xb5   :  { %1413 = vmatmul.bf16.gmra.mxu0 %v2578_v35  ;;  %v3035_v35 = vld [vmem:[#allocation2 + $0x68] sm:$0xf0] }
  0xb6   :  { %v3776_v25 = vpop.f32.mrf.mxu1  ;;  %v2766_v38 = vor.u32 %v3035_v35, %v2765_v59  ;;  %v2789_v35 = vld [vmem:[#allocation2 + $0x90] sm:$0xf] }
  0xb9   :  { %1364 = vmatmul.bf16.gmra.mxu3 %v2574_v24  ;;  %v3033_v24 = vld [vmem:[#allocation2 + $0x58] sm:$0xf0] }
  0xba   :  { %v2762_v9 = vor.u32 %v3033_v24, %v2761_v21  ;;  %v2785_v24 = vld [vmem:[#allocation2 + $0x80] sm:$0xf] }
  0xbb   :  { %v3778_v30 = vpop.f32.mrf.mxu3 }
  0xbe   :  { %v965_v27 = vpop.f32.mrf.mxu1 }
  0xbf   :  { %v966_v31 = vadd.f32 %v965_v27, %v916_v5  ;;  %v3031_v27 = vld [vmem:[#allocation2 + $0x4c] sm:$0xf] }
  0xc1   :  { %1432 = vmatmul.bf16.vlgmr.msra.gmra.mxu1 %v2510_v13 }
  0xc2   :  { %v921_v46 = vpop.f32.mrf.mxu0 }
  0xc3   :  { %v3782_v43 = vpop.f32.mrf.mxu3  ;;  %1835 = vmatmul.bf16.vlgmr.msra.gmra.mxu2 %v2742_v50 }
  0xc5   :  { %1418 = vmatmul.bf16.gmra.mxu0 %v2590_v18 }
  0xc6   :  { %v1014_v47 = vpop.f32.mrf.mxu2  ;;  %v967_v44 = vpop.f32.mrf.mxu1 }
  0xc7   :  { %v1015_v48 = vadd.f32 %v1014_v47, %v966_v31  ;;  %v968_v52 = vadd.f32 %v967_v44, %v918_v1  ;;  %v2755_v31 = vld [vmem:[#allocation2 + $0x54] sm:$0xf0]  ;;  %v2545_v44 = vld [vmem:[#allocation2 + $0x50] sm:$0xf] }
  0xc9   :  { %1369 = vmatmul.bf16.gmra.mxu3 %v2586_v45 }
  0xca   :  { %v923_v37 = vpop.f32.mrf.mxu0 }
  0xcc   :  { %v3784_v28 = vpop.f32.mrf.mxu3 }
  0xce   :  { %v1016_v6 = vpop.f32.mrf.mxu2  ;;  %v970_v29 = vpop.f32.mrf.mxu1 }
  0xcf   :  { %v1017_v26 = vadd.f32 %v1016_v6, %v968_v52  ;;  %v971_v41 = vadd.f32 %v970_v29, %v921_v46  ;;  %v2758_v46 = vor.u32 %v3031_v27, %v2755_v31  ;;  %v2943_v52 = vld [vmem:[#allocation2 + $0x58] sm:$0xf0]  ;;  %v2773_v6 = vld [vmem:[#allocation2 + $0x68] sm:$0xf] }
  0xd0   :  { %v2546_v2 = vor.u32 %v2943_v52, %v2545_v44  ;;  %v2779_v31 = vld [vmem:[#allocation2 + $0x84] sm:$0xf0]  ;;  %v2949_v44 = vld [vmem:[#allocation2 + $0x88] sm:$0xf0] }
  0xd1   :  { %1437 = vmatmul.bf16.gmra.mxu1 %v2522_v51  ;;  %v3036_v51 = vld [vmem:[#allocation2 + $0x70] sm:$0xf0] }
  0xd2   :  { %v1384_v53 = vpop.f32.mrf.mxu0 }
  0xd3   :  { %1840 = vmatmul.bf16.gmra.mxu2 %v2754_v36  ;;  %v2778_v36 = vor.u32 %v3038_v19, %v2777_v14  ;;  %v2801_v14 = vld [vmem:[#allocation2 + $0xa8] sm:$0xf]  ;;  %v3044_v19 = vld [vmem:[#allocation2 + $0xb0] sm:$0xf0] }
  0xd4   :  { %v3786_v55 = vpop.f32.mrf.mxu3 }
  0xd5   :  { %1933 = vmatmul.bf16.vlgmr.msra.gmra.mxu0 %v2750_v42 }
  0xd6   :  { %v1019_v15 = vpop.f32.mrf.mxu2  ;;  %v972_v10 = vpop.f32.mrf.mxu1 }
  0xd7   :  { %v1020_v17 = vadd.f32 %v1019_v15, %v971_v41  ;;  %v973_v4 = vadd.f32 %v972_v10, %v923_v37 }
  0xd9   :  { %1884 = vmatmul.bf16.vlgmr.msra.gmra.mxu3 %v2746_v56 }
  0xda   :  { %v1386_v5 = vpop.f32.mrf.mxu0 }
  0xdc   :  { %v1335_v57 = vpop.f32.mrf.mxu3 }
  0xdd   :  { %v1336_v16 = vadd.f32 %v1335_v57, %v1015_v48  ;;  %v2946_v57 = vld [vmem:[#allocation2 + $0x70] sm:$0xf0] }
  0xde   :  { %v1021_v1 = vpop.f32.mrf.mxu2  ;;  %v975_v40 = vpop.f32.mrf.mxu1  ;;  %v2558_v21 = vor.u32 %v2946_v57, %v2557_v60 }
  0xdf   :  { %v3788_v0 = vadd.f32 %v1384_v53, %v1336_v16  ;;  %v1022_v58 = vadd.f32 %v1021_v1, %v973_v4  ;;  %v976_v61 = vadd.f32 %v975_v40, %v3752_v33  ;;  %v3034_v53 = vld [vmem:[#allocation2 + $0x64] sm:$0xf]  ;;  %v3039_v1 = vld [vmem:[#allocation2 + $0x88] sm:$0xf0] }
  0xe0   :  { %v2770_v15 = vor.u32 %v3034_v53, %v2767_v63  ;;  %v3040_v53 = vld [vmem:[#allocation2 + $0x94] sm:$0xf]  ;;  %v2791_v63 = vld [vmem:[#allocation2 + $0x9c] sm:$0xf0] }
  0xe1   :  { %1442 = vmatmul.bf16.gmra.mxu1 %v2534_v22  ;;  %v3041_v22 = vld [vmem:[#allocation2 + $0x98] sm:$0xf0] }
  0xe2   :  { %v1389_v13 = vpop.f32.mrf.mxu0 }
  0xe3   :  { %1845 = vmatmul.bf16.gmra.mxu2 %v2766_v38 }
  0xe4   :  { %v1337_v50 = vpop.f32.mrf.mxu3 }
  0xe5   :  { %v1338_v18 = vadd.f32 %v1337_v50, %v1017_v26  ;;  %1938 = vmatmul.bf16.gmra.mxu0 %v2762_v9  ;;  %v2790_v9 = vor.u32 %v3041_v22, %v2789_v35 }
  0xe6   :  { %v1024_v3 = vpop.f32.mrf.mxu2  ;;  %v977_v23 = vpop.f32.mrf.mxu1 }
  0xe7   :  { %v3791_v45 = vadd.f32 %v1386_v5, %v1338_v18  ;;  %v1025_v47 = vadd.f32 %v1024_v3, %v976_v61  ;;  %v978_v48 = vadd.f32 %v977_v23, %v3759_v39  ;;  %v2774_v39 = vor.u32 %v3036_v51, %v2773_v6  ;;  %v2797_v6 = vld [vmem:[#allocation2 + $0x98] sm:$0xf]  ;;  %v3042_v51 = vld [vmem:[#allocation2 + $0xa0] sm:$0xf0] }
  0xe9   :  { %1889 = vmatmul.bf16.gmra.mxu3 %v2758_v46 }
  0xea   :  { %v1391_v33 = vpop.f32.mrf.mxu0 }
  0xec   :  { %v1340_v37 = vpop.f32.mrf.mxu3 }
  0xed   :  { %v1341_v62 = vadd.f32 %v1340_v37, %v1020_v17 }
  0xee   :  { %v1026_v8 = vpop.f32.mrf.mxu2  ;;  %v980_v54 = vpop.f32.mrf.mxu1 }
  0xef   :  { %v3794_v26 = vadd.f32 %v1389_v13, %v1341_v62  ;;  %v1027_v29 = vadd.f32 %v1026_v8, %v978_v48  ;;  %v981_v41 = vadd.f32 %v980_v54, %v3767_v11  ;;  %v2786_v13 = vor.u32 %v3039_v1, %v2785_v24  ;;  %v3047_v24 = vld [vmem:[#allocation2 + $0xc8] sm:$0xf0] }
  0xf1   :  { %1447 = vmatmul.bf16.gmra.mxu1 %v2546_v2 }
  0xf2   :  { %v1394_v42 = vpop.f32.mrf.mxu0 }
  0xf3   :  { %1850 = vmatmul.bf16.gmra.mxu2 %v2778_v36  ;;  %v2802_v36 = vor.u32 %v3044_v19, %v2801_v14  ;;  %v2955_v14 = vld [vmem:[#allocation2 + $0xb8] sm:$0xf0] }
  0xf4   :  { %v1342_v32 = vpop.f32.mrf.mxu3 }
  0xf5   :  { %v1343_v56 = vadd.f32 %v1342_v32, %v1022_v58  ;;  %1943 = vmatmul.bf16.gmra.mxu0 %v2774_v39  ;;  %v2798_v39 = vor.u32 %v3042_v51, %v2797_v6  ;;  %v2825_v51 = vld [vmem:[#allocation2 + $0xd8] sm:$0xf] }
  0xf6   :  { %v1029_v10 = vpop.f32.mrf.mxu2  ;;  %v982_v17 = vpop.f32.mrf.mxu1 }
  0xf7   :  { %v3797_v4 = vadd.f32 %v1391_v33, %v1343_v56  ;;  %v1030_v5 = vadd.f32 %v1029_v10, %v981_v41  ;;  %v983_v49 = vadd.f32 %v982_v17, %v3776_v25  ;;  %v3037_v25 = vld [vmem:[#allocation2 + $0x7c] sm:$0xf]  ;;  %v2569_v33 = vld [vmem:[#allocation2 + $0x80] sm:$0xf] }
  0xf8   :  { %v2782_v46 = vor.u32 %v3037_v25, %v2779_v31  ;;  %v2570_v2 = vor.u32 %v2949_v44, %v2569_v33 }
  0xf9   :  { %1894 = vmatmul.bf16.gmra.mxu3 %v2770_v15  ;;  %v2794_v15 = vor.u32 %v3040_v53, %v2791_v63 }
  0xfa   :  { %v1396_v11 = vpop.f32.mrf.mxu0 }
  0xfc   :  { %v1345_v16 = vpop.f32.mrf.mxu3 }
  0xfd   :  { %v1346_v59 = vadd.f32 %v1345_v16, %v1025_v47  ;;  %v2581_v16 = vld [vmem:[#allocation2 + $0x98] sm:$0xf] }
  0xfe   :  { %v1031_v40 = vpop.f32.mrf.mxu2  ;;  %v985_v58 = vpop.f32.mrf.mxu1 }
  0xff   :  { %v3800_v61 = vadd.f32 %v1394_v42, %v1346_v59  ;;  %v1032_v38 = vadd.f32 %v1031_v40, %v983_v49  ;;  %v986_v10 = vadd.f32 %v985_v58, %v3774_v20  ;;  %v2952_v59 = vld [vmem:[#allocation2 + $0xa0] sm:$0xf0]  ;;  %v2809_v40 = vld [vmem:[#allocation2 + $0xb0] sm:$0xf] }
 0x100   :  { %v2582_v1 = vor.u32 %v2952_v59, %v2581_v16 }
 0x101   :  { %1452 = vmatmul.bf16.gmra.mxu1 %v2558_v21  ;;  %v2813_v21 = vld [vmem:[#allocation2 + $0xc0] sm:$0xf] }
 0x102   :  { %v1399_v27 = vpop.f32.mrf.mxu0 }
 0x103   :  { %1855 = vmatmul.bf16.gmra.mxu2 %v2790_v9 }
 0x104   :  { %v1347_v50 = vpop.f32.mrf.mxu3 }
 0x105   :  { %v1348_v18 = vadd.f32 %v1347_v50, %v1027_v29  ;;  %1948 = vmatmul.bf16.gmra.mxu0 %v2786_v13  ;;  %v3043_v50 = vld [vmem:[#allocation2 + $0xac] sm:$0xf] }
 0x106   :  { %v1034_v3 = vpop.f32.mrf.mxu2  ;;  %v987_v23 = vpop.f32.mrf.mxu1 }
 0x107   :  { %v3802_v47 = vadd.f32 %v1396_v11, %v1348_v18  ;;  %v988_v37 = vadd.f32 %v987_v23, %v3780_v7  ;;  %v1035_v57 = vadd.f32 %v1034_v3, %v986_v10  ;;  %v2803_v18 = vld [vmem:[#allocation2 + $0xb4] sm:$0xf0] }
 0x108   :  { %v2806_v23 = vor.u32 %v3043_v50, %v2803_v18 }
 0x109   :  { %1899 = vmatmul.bf16.gmra.mxu3 %v2782_v46 }
 0x10a   :  { %v1401_v48 = vpop.f32.mrf.mxu0 }
 0x10c   :  { %v1350_v52 = vpop.f32.mrf.mxu3 }
 0x10d   :  { %v1351_v62 = vadd.f32 %v1350_v52, %v1030_v5 }
 0x10e   :  { %v1036_v8 = vpop.f32.mrf.mxu2  ;;  %v990_v54 = vpop.f32.mrf.mxu1 }
 0x10f   :  { %v3805_v29 = vadd.f32 %v1399_v27, %v1351_v62  ;;  %v1037_v41 = vadd.f32 %v1036_v8, %v988_v37  ;;  %v991_v7 = vadd.f32 %v990_v54, %v3757_v34  ;;  %v2814_v27 = vor.u32 %v3047_v24, %v2813_v21  ;;  %v2593_v62 = vld [vmem:[#allocation2 + $0xb0] sm:$0xf]  ;;  %v3050_v8 = vld [vmem:[#allocation2 + $0xe0] sm:$0xf0]  ;;  %v2821_v54 = vld [vmem:[#allocation2 + $0xc8] sm:$0xf] }
 0x110   :  { %v2826_v63 = vor.u32 %v3050_v8, %v2825_v51  ;;  %v2833_v21 = vld [vmem:[#allocation2 + $0xe0] sm:$0xf]  ;;  %v3051_v24 = vld [vmem:[#allocation2 + $0xe8] sm:$0xf0]  ;;  %v2103_v8 = vld [vmem:[%s4106_s3 + $0x78] sm:$0xff] }
 0x111   :  { %1457 = vmatmul.bf16.gmra.mxu1 %v2570_v2 }
 0x112   :  { %v1404_v42 = vpop.f32.mrf.mxu0  ;;  %2104 = vmatpush.msrb.mxu1 %v2103_v8 }
 0x113   :  { %1860 = vmatmul.bf16.gmra.mxu2 %v2802_v36 }
 0x114   :  { %v1352_v32 = vpop.f32.mrf.mxu3 }
 0x115   :  { %v1353_v56 = vadd.f32 %v1352_v32, %v1032_v38  ;;  %1953 = vmatmul.bf16.gmra.mxu0 %v2798_v39  ;;  %v3045_v38 = vld [vmem:[#allocation2 + $0xb8] sm:$0xf0] }
 0x116   :  { %v1039_v17 = vpop.f32.mrf.mxu2  ;;  %v992_v5 = vpop.f32.mrf.mxu1  ;;  %v2810_v25 = vor.u32 %v3045_v38, %v2809_v40 }
 0x117   :  { %v3809_v49 = vadd.f32 %v1401_v48, %v1353_v56  ;;  %v1040_v11 = vadd.f32 %v1039_v17, %v991_v7  ;;  %v993_v22 = vadd.f32 %v992_v5, %v3772_v12  ;;  %v3046_v56 = vld [vmem:[#allocation2 + $0xc4] sm:$0xf] }
 0x119   :  { %1904 = vmatmul.bf16.gmra.mxu3 %v2794_v15  ;;  %v2815_v15 = vld [vmem:[#allocation2 + $0xcc] sm:$0xf0] }
 0x11a   :  { %v1406_v60 = vpop.f32.mrf.mxu0  ;;  %v2818_v5 = vor.u32 %v3046_v56, %v2815_v15 }
 0x11c   :  { %v1355_v35 = vpop.f32.mrf.mxu3 }
 0x11d   :  { %v1356_v34 = vadd.f32 %v1355_v35, %v1035_v57 }
 0x11e   :  { %v1041_v20 = vpop.f32.mrf.mxu2  ;;  %v995_v58 = vpop.f32.mrf.mxu1 }
 0x11f   :  { %v3812_v9 = vadd.f32 %v1404_v42, %v1356_v34  ;;  %v1042_v13 = vadd.f32 %v1041_v20, %v993_v22  ;;  %v996_v12 = vadd.f32 %v995_v58, %v3778_v30  ;;  %v2594_v30 = vor.u32 %v2955_v14, %v2593_v62 }
 0x120   :  { %v2834_v58 = vor.u32 %v3051_v24, %v2833_v21 }
 0x121   :  { %1462 = vmatmul.bf16.gmra.mxu1 %v2582_v1 }
 0x122   :  { %v1409_v31 = vpop.f32.mrf.mxu0 }
 0x123   :  { %1865 = vmatmul.bf16.gmra.mxu2 %v2814_v27  ;;  %v3049_v27 = vld [vmem:[#allocation2 + $0xdc] sm:$0xf] }
 0x124   :  { %v1357_v46 = vpop.f32.mrf.mxu3 }
 0x125   :  { %v1358_v3 = vadd.f32 %v1357_v46, %v1037_v41  ;;  %1958 = vmatmul.bf16.gmra.mxu0 %v2810_v25  ;;  %v3048_v41 = vld [vmem:[#allocation2 + $0xd0] sm:$0xf0]  ;;  %v2827_v25 = vld [vmem:[#allocation2 + $0xe4] sm:$0xf0] }
 0x126   :  { %v1044_v48 = vpop.f32.mrf.mxu2  ;;  %v997_v33 = vpop.f32.mrf.mxu1  ;;  %v2822_v32 = vor.u32 %v3048_v41, %v2821_v54  ;;  %v2830_v18 = vor.u32 %v3049_v27, %v2827_v25 }
 0x127   :  { %v3815_v44 = vadd.f32 %v1406_v60, %v1358_v3  ;;  %v1045_v52 = vadd.f32 %v1044_v48, %v996_v12  ;;  %v998_v2 = vadd.f32 %v997_v33, %v3782_v43 }
 0x129   :  { %1909 = vmatmul.bf16.gmra.mxu3 %v2806_v23 }
 0x12a   :  { %v1411_v37 = vpop.f32.mrf.mxu0 }
 0x12c   :  { %v1360_v19 = vpop.f32.mrf.mxu3 }
 0x12d   :  { %v1361_v6 = vadd.f32 %v1360_v19, %v1040_v11 }
 0x12e   :  { %v1046_v36 = vpop.f32.mrf.mxu2  ;;  %v1000_v39 = vpop.f32.mrf.mxu1 }
 0x12f   :  { %v3818_v42 = vadd.f32 %v1409_v31, %v1361_v6  ;;  %v1047_v53 = vadd.f32 %v1046_v36, %v998_v2  ;;  %v1001_v43 = vadd.f32 %v1000_v39, %v3784_v28 }
 0x131   :  { %1467 = vmatmul.bf16.gmra.mxu1 %v2594_v30 }
 0x132   :  { %v1414_v7 = vpop.f32.mrf.mxu0 }
 0x133   :  { %1870 = vmatmul.bf16.gmra.mxu2 %v2826_v63  ;;  %v2102_v63 = vld [vmem:[%s4106_s3 + $0x70] sm:$0xff] }
 0x134   :  { %v1362_v10 = vpop.f32.mrf.mxu3  ;;  %2105 = vmatpush.msrb.mxu1 %v2102_v63 }
 0x135   :  { %v1363_v17 = vadd.f32 %v1362_v10, %v1042_v13  ;;  %1963 = vmatmul.bf16.gmra.mxu0 %v2822_v32 }
 0x136   :  { %v1049_v11 = vpop.f32.mrf.mxu2  ;;  %v1002_v60 = vpop.f32.mrf.mxu1 }
 0x137   :  { %v3821_v57 = vadd.f32 %v1411_v37, %v1363_v17  ;;  %v1050_v16 = vadd.f32 %v1049_v11, %v1001_v43  ;;  %v1003_v22 = vadd.f32 %v1002_v60, %v3786_v55 }
 0x139   :  { %1914 = vmatmul.bf16.gmra.mxu3 %v2818_v5  ;;  %v2101_v5 = vld [vmem:[%s4106_s3 + $0x68] sm:$0xff] }
 0x13a   :  { %v1416_v59 = vpop.f32.mrf.mxu0  ;;  %2106 = vmatpush.msrb.mxu1 %v2101_v5 }
 0x13c   :  { %v1365_v35 = vpop.f32.mrf.mxu3 }
 0x13d   :  { %v1366_v34 = vadd.f32 %v1365_v35, %v1045_v52 }
 0x13e   :  { %v1051_v1 = vpop.f32.mrf.mxu2  ;;  %v1433_v40 = vpop.f32.mrf.mxu1 }
 0x13f   :  { %v3824_v28 = vadd.f32 %v1414_v7, %v1366_v34  ;;  %v1052_v38 = vadd.f32 %v1051_v1, %v1003_v22  ;;  %v1434_v20 = vadd.f32 %v1433_v40, %v3788_v0  ;;  %v2100_v34 = vld [vmem:[%s4106_s3 + $0x60] sm:$0xff] }
 0x140   :  { %2107 = vmatpush.msrb.mxu1 %v2100_v34 }
 0x142   :  { %v1419_v13 = vpop.f32.mrf.mxu0 }
 0x144   :  { %v1367_v31 = vpop.f32.mrf.mxu3 }
 0x145   :  { %v1368_v50 = vadd.f32 %v1367_v31, %v1047_v53  ;;  %1968 = vmatmul.bf16.gmra.mxu0 %v2834_v58  ;;  %v2099_v58 = vld [vmem:[%s4106_s3 + $0x58] sm:$0xff] }
 0x146   :  { %v1435_v46 = vpop.f32.mrf.mxu1  ;;  %v1836_v55 = vpop.f32.mrf.mxu2  ;;  %2108 = vmatpush.msrb.mxu1 %v2099_v58 }
 0x147   :  { %v3827_v12 = vadd.f32 %v1416_v59, %v1368_v50  ;;  %v1436_v3 = vadd.f32 %v1435_v46, %v3791_v45 }
 0x149   :  { %1919 = vmatmul.bf16.gmra.mxu3 %v2830_v18  ;;  %v2098_v18 = vld [vmem:[%s4106_s3 + $0x50] sm:$0xff] }
 0x14a   :  { %v1421_v23 = vpop.f32.mrf.mxu0  ;;  %2109 = vmatpush.msrb.mxu1 %v2098_v18 }
 0x14c   :  { %v1370_v48 = vpop.f32.mrf.mxu3 }
 0x14d   :  { %v1371_v33 = vadd.f32 %v1370_v48, %v1050_v16 }
 0x14e   :  { %v1438_v52 = vpop.f32.mrf.mxu1  ;;  %v1838_v0 = vpop.f32.mrf.mxu2 }
 0x14f   :  { %v3830_v37 = vadd.f32 %v1419_v13, %v1371_v33  ;;  %v1439_v62 = vadd.f32 %v1438_v52, %v3794_v26 }
 0x152   :  { %v1934_v14 = vpop.f32.mrf.mxu0 }
 0x154   :  { %v1372_v19 = vpop.f32.mrf.mxu3 }
 0x155   :  { %v1373_v2 = vadd.f32 %v1372_v19, %v1052_v38 }
 0x156   :  { %v1440_v6 = vpop.f32.mrf.mxu1  ;;  %v1841_v51 = vpop.f32.mrf.mxu2 }
 0x157   :  { %v3836_v45 = vadd.f32 %v1421_v23, %v1373_v2  ;;  %v1441_v30 = vadd.f32 %v1440_v6, %v3797_v4 }
 0x15a   :  { %v1936_v54 = vpop.f32.mrf.mxu0 }
 0x15c   :  { %v1885_v41 = vpop.f32.mrf.mxu3 }
 0x15d   :  { %v1886_v36 = vadd.f32 %v1885_v41, %v1836_v55 }
 0x15e   :  { %v1443_v53 = vpop.f32.mrf.mxu1  ;;  %v1843_v26 = vpop.f32.mrf.mxu2 }
 0x15f   :  { %v1935_v39 = vadd.f32 %v1934_v14, %v1886_v36  ;;  %v1444_v32 = vadd.f32 %v1443_v53, %v3800_v61  ;;  %v2095_v53 = vld [vmem:[%s4106_s3 + $0x38] sm:$0xff] }
 0x161   :  { %v3843_v7 = vadd.f32 %v1935_v39, %v1434_v20 }
 0x162   :  { %v1939_v56 = vpop.f32.mrf.mxu0 }
 0x164   :  { %v1887_v15 = vpop.f32.mrf.mxu3 }
 0x165   :  { %v1888_v10 = vadd.f32 %v1887_v15, %v1838_v0  ;;  %v2097_v0 = vld [vmem:[%s4106_s3 + $0x48] sm:$0xff] }
 0x166   :  { %v1445_v43 = vpop.f32.mrf.mxu1  ;;  %v1846_v17 = vpop.f32.mrf.mxu2  ;;  %2110 = vmatpush.msrb.mxu1 %v2097_v0 }
 0x167   :  { %v1937_v4 = vadd.f32 %v1936_v54, %v1888_v10  ;;  %v1446_v11 = vadd.f32 %v1445_v43, %v3802_v47 }
 0x169   :  { %v3849_v60 = vadd.f32 %v1937_v4, %v1436_v3 }
 0x16a   :  { %v1941_v16 = vpop.f32.mrf.mxu0 }
 0x16c   :  { %v1890_v61 = vpop.f32.mrf.mxu3 }
 0x16d   :  { %v1891_v59 = vadd.f32 %v1890_v61, %v1841_v51 }
 0x16e   :  { %v1448_v22 = vpop.f32.mrf.mxu1  ;;  %v1848_v24 = vpop.f32.mrf.mxu2 }
 0x16f   :  { %v1940_v35 = vadd.f32 %v1939_v56, %v1891_v59  ;;  %v1449_v21 = vadd.f32 %v1448_v22, %v3805_v29  ;;  %v2094_v56 = vld [vmem:[%s4106_s3 + $0x30] sm:$0xff]  ;;  %v2092_v59 = vld [vmem:[%s4106_s3 + $0x20] sm:$0xff] }
 0x171   :  { %v3855_v1 = vadd.f32 %v1940_v35, %v1439_v62 }
 0x172   :  { %v1944_v40 = vpop.f32.mrf.mxu0 }
 0x174   :  { %v1892_v47 = vpop.f32.mrf.mxu3 }
 0x175   :  { %v1893_v38 = vadd.f32 %v1892_v47, %v1843_v26 }
 0x176   :  { %v1851_v25 = vpop.f32.mrf.mxu2  ;;  %v3865_v3 = vpop.f32.mrf.mxu1 }
 0x177   :  { %v1942_v20 = vadd.f32 %v1941_v16, %v1893_v38 }
 0x179   :  { %v3860_v13 = vadd.f32 %v1942_v20, %v1441_v30  ;;  %v2096_v30 = vld [vmem:[%s4106_s3 + $0x40] sm:$0xff] }
 0x17a   :  { %v1946_v27 = vpop.f32.mrf.mxu0  ;;  %2111 = vmatpush.msrb.mxu1 %v2096_v30  ;;  %v3899_v20 = vld [vmem:[%s4105_s2] ss:$0 sm:$0xff] }
 0x17c   :  { %v1895_v31 = vpop.f32.mrf.mxu3  ;;  %2112 = vmatpush.msrb.mxu1 %v2095_v53 }
 0x17d   :  { %v1896_v50 = vadd.f32 %v1895_v31, %v1846_v17  ;;  %v2093_v17 = vld [vmem:[%s4106_s3 + $0x28] sm:$0xff] }
 0x17e   :  { %v1853_v48 = vpop.f32.mrf.mxu2  ;;  %v1453_v2 = vpop.f32.mrf.mxu1  ;;  %2113 = vmatpush.msrb.mxu1 %v2094_v56 }
 0x17f   :  { %v1945_v29 = vadd.f32 %v1944_v40, %v1896_v50  ;;  %v3905_v50 = vadd.f32 %v3899_v20, %v3855_v1  ;;  %v2090_v1 = vld [vmem:[%s4106_s3 + $0x10] sm:$0xff] }
 0x180   :  { %2114 = vmatpush.msrb.mxu1 %v2093_v17 }
 0x181   :  { %v1978_v46 = vadd.f32 %v1945_v29, %v1444_v32  ;;  %v1454_v29 = vadd.f32 %v1453_v2, %v3812_v9  ;;  %v2089_v9 = vld [vmem:[%s4106_s3 + $0x8] sm:$0xff] }
 0x182   :  { %v1949_v55 = vpop.f32.mrf.mxu0  ;;  %2115 = vmatpush.msrb.mxu1 %v2092_v59 }
 0x183   :  { %v3917_v0 = vadd.f32 %v3899_v20, %v1978_v46 }
 0x184   :  { %v1897_v23 = vpop.f32.mrf.mxu3 }
 0x185   :  { %v1898_v33 = vadd.f32 %v1897_v23, %v1848_v24  ;;  %v2091_v24 = vld [vmem:[%s4106_s3 + $0x18] sm:$0xff] }
 0x186   :  { %v1856_v51 = vpop.f32.mrf.mxu2  ;;  %v3877_v39 = vpop.f32.mrf.mxu1  ;;  %2116 = vmatpush.msrb.mxu1 %v2091_v24 }
 0x187   :  { %v1947_v52 = vadd.f32 %v1946_v27, %v1898_v33  ;;  %v3910_v33 = vadd.f32 %v3899_v20, %v3843_v7 }
 0x188   :  { %2117 = vmatpush.msrb.mxu1 %v2090_v1 }
 0x189   :  { %v3870_v62 = vadd.f32 %v1947_v52, %v1446_v11  ;;  %v3914_v52 = vadd.f32 %v3899_v20, %v3849_v60  ;;  %v2036_v60 = vmul.f32 %v3905_v50, %v3905_v50 }
 0x18a   :  { %v3872_v14 = vpop.f32.mrf.mxu0  ;;  %2118 = vmatpush.msrb.mxu1 %v2089_v9 }
 0x18b   :  { %v2035_v53 = vmul.f32 %v3914_v52, %v3914_v52 }
 0x18c   :  { %v1900_v19 = vpop.f32.mrf.mxu3 }
 0x18d   :  { %v1901_v6 = vadd.f32 %v1900_v19, %v1851_v25 }
 0x18e   :  { %v1858_v26 = vpop.f32.mrf.mxu2  ;;  %v1458_v15 = vpop.f32.mrf.mxu1 }
 0x18f   :  { %v1950_v8 = vadd.f32 %v1949_v55, %v1901_v6 }
 0x191   :  { %v1980_v54 = vadd.f32 %v1950_v8, %v1449_v21 }
 0x192   :  { %v1954_v41 = vpop.f32.mrf.mxu0 }
 0x193   :  { %v3929_v46 = vadd.f32 %v3899_v20, %v1980_v54  ;;  %v3942_v54 = vadd.f32 %v3899_v20, %v3860_v13  ;;  %v1456_v13 = vadd.f32 %v3877_v39, %v3815_v44  ;;  %v3965_v44 = vadd.f32 %v3899_v20, %v3870_v62 }
 0x194   :  { %v1902_v36 = vpop.f32.mrf.mxu3 }
 0x195   :  { %v1903_v18 = vadd.f32 %v1902_v36, %v1853_v48  ;;  %v1459_v48 = vadd.f32 %v1458_v15, %v3818_v42  ;;  %v2034_v36 = vmul.f32 %v3910_v33, %v3910_v33  ;;  %v2008_v15 = vadd.f32 %v3905_v50, %v3910_v33 }
 0x196   :  { %v1861_v10 = vpop.f32.mrf.mxu2  ;;  %v3888_v5 = vpop.f32.mrf.mxu1  ;;  %v2040_v17 = vmul.f32 %v3929_v46, %v3929_v46  ;;  %v2039_v1 = vmul.f32 %v3965_v44, %v3965_v44 }
 0x197   :  { %v1952_v8 = vadd.f32 %v3872_v14, %v1903_v18  ;;  %v1451_v14 = vadd.f32 %v3865_v3, %v3809_v49  ;;  %v2009_v59 = vadd.f32 %v2008_v15, %v3917_v0 }
 0x19a   :  { %v1956_v63 = vpop.f32.mrf.mxu0 }
 0x19c   :  { %v1905_v32 = vpop.f32.mrf.mxu3 }
 0x19d   :  { %v1906_v40 = vadd.f32 %v1905_v32, %v1856_v51  ;;  %v2088_v51 = vld [vmem:[%s4106_s3] sm:$0xff] }
 0x19e   :  { %v1863_v11 = vpop.f32.mrf.mxu2  ;;  %v1463_v22 = vpop.f32.mrf.mxu1  ;;  %2119 = vmatpush.msrb.mxu1 %v2088_v51 }
 0x19f   :  { %v1955_v27 = vadd.f32 %v1954_v41, %v1906_v40  ;;  %v1464_v30 = vadd.f32 %v1463_v22, %v3824_v28  ;;  %v1461_v22 = vadd.f32 %v3888_v5, %v3821_v57  ;;  %v2037_v40 = vmul.f32 %v3942_v54, %v3942_v54 }
 0x1a1   :  { %v1982_v19 = vadd.f32 %v1955_v27, %v1454_v29 }
 0x1a2   :  { %v1959_v43 = vpop.f32.mrf.mxu0 }
 0x1a3   :  { %v3949_v28 = vadd.f32 %v3899_v20, %v1982_v19 }
 0x1a4   :  { %v1907_v4 = vpop.f32.mrf.mxu3 }
 0x1a5   :  { %v1908_v7 = vadd.f32 %v1907_v4, %v1858_v26  ;;  %v2038_v26 = vmul.f32 %v3917_v0, %v3917_v0  ;;  %v2042_v39 = vmul.f32 %v3949_v28, %v3949_v28 }
 0x1a6   :  { %v1866_v34 = vpop.f32.mrf.mxu2  ;;  %v3901_v58 = vpop.f32.mrf.mxu1 }
 0x1a7   :  { %v1957_v32 = vadd.f32 %v1956_v63, %v1908_v7  ;;  %v1466_v29 = vadd.f32 %v3901_v58, %v3827_v12  ;;  %v2063_v7 = vadd.f32 %v2037_v40, %v2035_v53 }
 0x1aa   :  { %v1961_v61 = vpop.f32.mrf.mxu0 }
 0x1ac   :  { %v1910_v16 = vpop.f32.mrf.mxu3 }
 0x1ad   :  { %v1911_v38 = vadd.f32 %v1910_v16, %v1861_v10  ;;  %v2050_v10 = vadd.f32 %v2036_v60, %v2034_v36  ;;  %v2021_v16 = vadd.f32 %v3942_v54, %v3914_v52 }
 0x1ae   :  { %v1868_v25 = vpop.f32.mrf.mxu2  ;;  %v1468_v4 = vpop.f32.mrf.mxu1 }
 0x1af   :  { %v1960_v55 = vadd.f32 %v1959_v43, %v1911_v38  ;;  %v1469_v18 = vadd.f32 %v1468_v4, %v3830_v37 }
 0x1b1   :  { %v1984_v42 = vadd.f32 %v1960_v55, %v1459_v48 }
 0x1b2   :  { %v1964_v21 = vpop.f32.mrf.mxu0 }
 0x1b3   :  { %v3958_v49 = vadd.f32 %v3899_v20, %v1984_v42 }
 0x1b4   :  { %v1912_v35 = vpop.f32.mrf.mxu3 }
 0x1b5   :  { %v1913_v41 = vadd.f32 %v1912_v35, %v1863_v11  ;;  %v1981_v11 = vadd.f32 %v1952_v8, %v1451_v14  ;;  %v2051_v35 = vadd.f32 %v2050_v10, %v2038_v26  ;;  %v2044_v57 = vmul.f32 %v3958_v49, %v3958_v49 }
 0x1b6   :  { %v1871_v63 = vpop.f32.mrf.mxu2 }
 0x1b7   :  { %v1962_v3 = vadd.f32 %v1961_v61, %v1913_v41  ;;  %v2052_v27 = vadd.f32 %v2051_v35, %v2040_v17  ;;  %v2064_v41 = vadd.f32 %v2063_v7, %v2039_v1 }
 0x1b9   :  { %v1985_v5 = vadd.f32 %v1962_v3, %v1461_v22  ;;  %v2053_v9 = vadd.f32 %v2052_v27, %v2042_v39 }
 0x1ba   :  { %v1966_v23 = vpop.f32.mrf.mxu0 }
 0x1bb   :  { %v2054_v60 = vadd.f32 %v2053_v9, %v2044_v57  ;;  %v4001_v51 = vadd.f32 %v3899_v20, %v1985_v5 }
 0x1bc   :  { %v1915_v47 = vpop.f32.mrf.mxu3 }
 0x1bd   :  { %v1916_v31 = vadd.f32 %v1915_v47, %v1866_v34  ;;  %v1983_v34 = vadd.f32 %v1957_v32, %v1456_v13  ;;  %v2010_v47 = vadd.f32 %v2009_v59, %v3929_v46  ;;  %v2045_v17 = vmul.f32 %v4001_v51, %v4001_v51 }
 0x1be   :  { %v1873_v14 = vpop.f32.mrf.mxu2 }
 0x1bf   :  { %v1965_v2 = vadd.f32 %v1964_v21, %v1916_v31  ;;  %v2011_v31 = vadd.f32 %v2010_v47, %v3949_v28  ;;  %v3992_v48 = vadd.f32 %v3899_v20, %v1983_v34 }
 0x1c1   :  { %v1986_v56 = vadd.f32 %v1965_v2, %v1464_v30  ;;  %v2012_v12 = vadd.f32 %v2011_v31, %v3958_v49  ;;  %v2022_v2 = vadd.f32 %v2021_v16, %v3965_v44  ;;  %v1470_v30 = vpop.f32.mrf.mxu1  ;;  %v2043_v53 = vmul.f32 %v3992_v48, %v3992_v48 }
 0x1c2   :  { %v1969_v21 = vpop.f32.mrf.mxu0  ;;  %v1471_v3 = vadd.f32 %v1470_v30, %v3836_v45 }
 0x1c3   :  { %v3972_v61 = vadd.f32 %v3899_v20, %v1986_v56 }
 0x1c4   :  { %v1917_v6 = vpop.f32.mrf.mxu3 }
 0x1c5   :  { %v1918_v43 = vadd.f32 %v1917_v6, %v1868_v25  ;;  %v3978_v25 = vadd.f32 %v3899_v20, %v1981_v11  ;;  %v2046_v19 = vmul.f32 %v3972_v61, %v3972_v61  ;;  %v2013_v8 = vadd.f32 %v2012_v12, %v3972_v61 }
 0x1c7   :  { %v1967_v38 = vadd.f32 %v1966_v23, %v1918_v43  ;;  %v2141_v23 = vld [vmem:[%s4107_s4] sm:$0xff]  ;;  %v2041_v6 = vmul.f32 %v3978_v25, %v3978_v25  ;;  %v2023_v36 = vadd.f32 %v2022_v2, %v3978_v25  ;;  %v2055_v26 = vadd.f32 %v2054_v60, %v2046_v19 }
 0x1c8   :  { %2161 = vmatpush.msrb.mxu2 %v2141_v23 }
 0x1c9   :  { %v1987_v37 = vadd.f32 %v1967_v38, %v1466_v29  ;;  %v2065_v4 = vadd.f32 %v2064_v41, %v2041_v6  ;;  %v2024_v43 = vadd.f32 %v2023_v36, %v3992_v48 }
 0x1ca   :  { %v1971_v11 = vpop.f32.mrf.mxu0 }
 0x1cb   :  { %v4011_v56 = vadd.f32 %v3899_v20, %v1987_v37  ;;  %v2066_v35 = vadd.f32 %v2065_v4, %v2043_v53  ;;  %v2025_v39 = vadd.f32 %v2024_v43, %v4001_v51 }
 0x1cc   :  { %v1920_v24 = vpop.f32.mrf.mxu3 }
 0x1cd   :  { %v1921_v62 = vadd.f32 %v1920_v24, %v1871_v63  ;;  %v2047_v22 = vmul.f32 %v4011_v56, %v4011_v56  ;;  %v2067_v24 = vadd.f32 %v2066_v35, %v2045_v17  ;;  %v2026_v40 = vadd.f32 %v2025_v39, %v4011_v56  ;;  %v3102_v39 = vld [vmem:[%s4105_s2 + $0x1] ss:$0 sm:$0xff] }
 0x1cf   :  { %v1970_v55 = vadd.f32 %v1969_v21, %v1921_v62  ;;  %v2068_v45 = vadd.f32 %v2067_v24, %v2047_v22  ;;  %v3103_v24 = vld [vmem:[%s4105_s2 + $0x2] ss:$0 sm:$0xff] }
 0x1d1   :  { %v1988_v58 = vadd.f32 %v1970_v55, %v1469_v18 }
 0x1d3   :  { %v4005_v42 = vadd.f32 %v3899_v20, %v1988_v58 }
 0x1d4   :  { %v1922_v32 = vpop.f32.mrf.mxu3 }
 0x1d5   :  { %v2014_v15 = vadd.f32 %v2013_v8, %v4005_v42  ;;  %v2048_v10 = vmul.f32 %v4005_v42, %v4005_v42  ;;  %v1923_v13 = vadd.f32 %v1922_v32, %v1873_v14 }
 0x1d7   :  { %v2015_v63 = vrot.slane %v2014_v15, 4  ;;  %v2056_v16 = vadd.f32 %v2055_v26, %v2048_v10  ;;  %v1972_v59 = vadd.f32 %v1971_v11, %v1923_v13 }
 0x1d9   :  { %v2057_v34 = vrot.slane %v2056_v16, 4  ;;  %v1989_v21 = vadd.f32 %v1972_v59, %v1471_v3  ;;  %v2016_v47 = vadd.f32 %v2015_v63, %v2014_v15 }
 0x1db   :  { %v2058_v38 = vadd.f32 %v2057_v34, %v2056_v16  ;;  %v4025_v62 = vadd.f32 %v3899_v20, %v1989_v21  ;;  %v2017_v5 = vrot.slane %v2016_v47, 2 }
 0x1dd   :  { %v2027_v27 = vadd.f32 %v2026_v40, %v4025_v62  ;;  %v2049_v57 = vmul.f32 %v4025_v62, %v4025_v62  ;;  %v2059_v18 = vrot.slane %v2058_v38, 2  ;;  %v2018_v19 = vadd.f32 %v2017_v5, %v2016_v47 }
 0x1df   :  { %v2028_v31 = vrot.slane %v2027_v27, 4  ;;  %v2069_v29 = vadd.f32 %v2068_v45, %v2049_v57  ;;  %v2060_v7 = vadd.f32 %v2059_v18, %v2058_v38  ;;  %v2019_v20 = vrot.slane %v2018_v19, 1 }
 0x1e1   :  { %v2029_v55 = vadd.f32 %v2028_v31, %v2027_v27  ;;  %v2070_v23 = vrot.slane %v2069_v29, 4  ;;  %v2061_v2 = vrot.slane %v2060_v7, 1  ;;  %v2020_v30 = vadd.f32 %v2019_v20, %v2018_v19 }
 0x1e3   :  { %v2030_v1 = vrot.slane %v2029_v55, 2  ;;  %v2071_v9 = vadd.f32 %v2070_v23, %v2069_v29  ;;  %v2062_v41 = vadd.f32 %v2061_v2, %v2060_v7 }
 0x1e5   :  { %v2031_v12 = vadd.f32 %v2030_v1, %v2029_v55  ;;  %v2072_v37 = vrot.slane %v2071_v9, 2 }
 0x1e7   :  { %v2032_v58 = vrot.slane %v2031_v12, 1  ;;  %v2073_v6 = vadd.f32 %v2072_v37, %v2071_v9 }
 0x1e9   :  { %v2033_v60 = vadd.f32 %v2032_v58, %v2031_v12  ;;  %v2074_v8 = vrot.slane %v2073_v6, 1 }
 0x1eb   :  { %v2075_v36 = vadd.f32 %v2074_v8, %v2073_v6  ;;  %v2079_v53 = vsel %vm2078_vm11, %v2033_v60, %v2020_v30 }
 0x1ed   :  { %v2084_v26 = vsel %vm58_vm6, %v2075_v36, %v2062_v41 }
 0x1ee   :  { %v2087_v14 = vsel %vm2086_vm12, %v2079_v53, %v2084_v26 }
 0x1ef   :  { %2120 = vmatmul.f32.vlgmr.msrb.gmra.mxu1 %v2087_v14 }
 0x26c   :  { %v2121_v32 = vpop.f32.mrf.mxu1 }
 0x26d   :  { %v2124_v15 = vmul.f32 %v2121_v32, %v2121_v32 }
 0x26f   :  { %v2126_v10 = vrot.slane %v2124_v15, 6 }
 0x271   :  { %v2128_v13 = vsub.f32 %v2121_v32, %v2126_v10 }
 0x273   :  { %v2129_v4 = vadd.f32 1e-05, %v2128_v13 }
 0x275   :  { %3104 = vrsqrt.f32 %v2129_v4  ;;  %vm2136_vm14 = vweird.f32 %v2129_v4 }
 0x27b   :  { %v3105_v43 = vpop.eup %3104 }
 0x27c   :  { %v2131_v17 = vmul.f32 %v3105_v43, %v2129_v4  ;;  %vm2137_vm13 = vweird.f32 %v3105_v43 }
 0x27d   :  { %vm2138_vm15 = vmor %vm2136_vm14, %vm2137_vm13 }
 0x27e   :  { %v2132_v11 = vmul.f32 %v3105_v43, %v2131_v17 }
 0x280   :  { %v2133_v3 = vmul.f32 0.5, %v2132_v11 }
 0x282   :  { %v2134_v63 = vsub.f32 1.5, %v2133_v3 }
 0x284   :  { %v2135_v16 = vmul.f32 %v3105_v43, %v2134_v63 }
 0x286   :  { %v2139_v59 = vsel %vm2138_vm15, %v3105_v43, %v2135_v16 }
 0x287   :  { %v2140_v35 = vsel %vm2086_vm12, %v2121_v32, %v2139_v59 }
 0x288   :  { %2931 = vmatmul.msk.f32.vlgmr.msrb.gmra.mxu2 %vm2142_vm0, %v2140_v35 }
 0x30b   :  { %v2163_v22 = vpop.f32.mrf.mxu2 }
 0x30c   :  { %v2168_v34 = vmul.f32 %v3102_v39, %v2163_v22 }
 0x30e   :  { %v2171_v21 = vrot.slane %v2168_v34, 2  ;;  %2176 = vst [vmem:[#allocation1] sm:$0xff] %v2168_v34 }
 0x310   :  { %v2173_v40 = vmul.f32 %v2171_v21, %v2163_v22 }
 0x312   :  { %v2175_v47 = vsub.f32 %v3103_v24, %v2173_v40 }
 0x314   :  { %v2202_v5 = vrot.slane %v2175_v47, 1  ;;  %v2203_v1 = vperm.slane %v2175_v47, 0 }
 0x315   :  { %v2178_v38 = vld [vmem:[#allocation1 + $0x2] ss:$9 sm:$0xff] }
 0x316   :  { %v2180_v45 = vld [vmem:[#allocation1 + $0x3] ss:$9 sm:$0xff]  ;;  %v2181_v27 = vperm.slane %v2178_v38, 0  ;;  %v2204_v9 = vperm.slane %v2202_v5, 0 }
 0x317   :  { %v2182_v57 = vperm.slane %v2180_v45, 0 }
 0x318   :  { %v2185_v31 = vmul.f32 %v2181_v27, %v3910_v33  ;;  %v2187_v18 = vmul.f32 %v2181_v27, %v3905_v50  ;;  %v2189_v23 = vmul.f32 %v2181_v27, %v3917_v0  ;;  %v2191_v7 = vmul.f32 %v2181_v27, %v3929_v46 }
 0x319   :  { %v2186_v29 = vmul.f32 %v2182_v57, %v3914_v52  ;;  %v2188_v55 = vmul.f32 %v2182_v57, %v3942_v54  ;;  %v2190_v19 = vmul.f32 %v2182_v57, %v3965_v44  ;;  %v2192_v58 = vmul.f32 %v2182_v57, %v3978_v25 }
 0x31a   :  { %v2207_v12 = vadd.f32 %v2203_v1, %v2185_v31  ;;  %v2209_v20 = vadd.f32 %v2203_v1, %v2187_v18  ;;  %v2193_v52 = vmul.f32 %v2181_v27, %v3949_v28  ;;  %v2211_v2 = vadd.f32 %v2203_v1, %v2189_v23 }
 0x31b   :  { %v2208_v37 = vadd.f32 %v2204_v9, %v2186_v29  ;;  %v2210_v33 = vadd.f32 %v2204_v9, %v2188_v55  ;;  %v2194_v50 = vmul.f32 %v2182_v57, %v3992_v48  ;;  %v2195_v54 = vmul.f32 %v2181_v27, %v3958_v49 }
 0x31c   :  { %v2212_v0 = vadd.f32 %v2204_v9, %v2190_v19  ;;  %v2213_v6 = vadd.f32 %v2203_v1, %v2191_v7  ;;  %v2223_v60 = vmax.f32 %v2207_v12, 0.0  ;;  %v2225_v44 = vmax.f32 %v2209_v20, 0.0 }
 0x31d   :  { %v2224_v8 = vmax.f32 %v2208_v37, 0.0  ;;  %v2196_v46 = vmul.f32 %v2182_v57, %v4001_v51  ;;  %v2214_v30 = vadd.f32 %v2204_v9, %v2192_v58  ;;  %v2226_v41 = vmax.f32 %v2210_v33, 0.0 }
 0x31e   :  { %v2197_v36 = vmul.f32 %v2181_v27, %v3972_v61  ;;  %v2215_v25 = vadd.f32 %v2203_v1, %v2193_v52  ;;  %v2227_v53 = vmax.f32 %v2211_v2, 0.0  ;;  %2239 = vst [vmem:[%s4108_s5] sm:$0xff] %v2223_v60  ;;  %v2198_v28 = vmul.f32 %v2182_v57, %v4011_v56 }
 0x31f   :  { %v2216_v49 = vadd.f32 %v2204_v9, %v2194_v50  ;;  %v2228_v48 = vmax.f32 %v2212_v0, 0.0  ;;  %2240 = vst [vmem:[%s4108_s5 + $0x8] sm:$0xff] %v2224_v8  ;;  %v2199_v51 = vmul.f32 %v2181_v27, %v4005_v42  ;;  %v2217_v26 = vadd.f32 %v2203_v1, %v2195_v54 }
 0x320   :  { %v2229_v14 = vmax.f32 %v2213_v6, 0.0  ;;  %2241 = vst [vmem:[%s4108_s5 + $0x10] sm:$0xff] %v2225_v44  ;;  %v2200_v61 = vmul.f32 %v2182_v57, %v4025_v62  ;;  %v2218_v32 = vadd.f32 %v2204_v9, %v2196_v46  ;;  %v2230_v15 = vmax.f32 %v2214_v30, 0.0 }
 0x321   :  { %2242 = vst [vmem:[%s4108_s5 + $0x18] sm:$0xff] %v2226_v41  ;;  %v2219_v56 = vadd.f32 %v2203_v1, %v2197_v36  ;;  %v2231_v10 = vmax.f32 %v2215_v25, 0.0  ;;  %v2220_v42 = vadd.f32 %v2204_v9, %v2198_v28  ;;  %v2232_v13 = vmax.f32 %v2216_v49, 0.0 }
 0x322   :  { %2243 = vst [vmem:[%s4108_s5 + $0x20] sm:$0xff] %v2227_v53  ;;  %v2221_v4 = vadd.f32 %v2203_v1, %v2199_v51  ;;  %v2233_v62 = vmax.f32 %v2217_v26, 0.0  ;;  %v2222_v43 = vadd.f32 %v2204_v9, %v2200_v61  ;;  %v2234_v17 = vmax.f32 %v2218_v32, 0.0 }
 0x323   :  { %2244 = vst [vmem:[%s4108_s5 + $0x28] sm:$0xff] %v2228_v48  ;;  %v2235_v11 = vmax.f32 %v2219_v56, 0.0  ;;  %v2236_v3 = vmax.f32 %v2220_v42, 0.0 }
 0x324   :  { %2245 = vst [vmem:[%s4108_s5 + $0x30] sm:$0xff] %v2229_v14  ;;  %v2237_v63 = vmax.f32 %v2221_v4, 0.0  ;;  %v2238_v16 = vmax.f32 %v2222_v43, 0.0 }
 0x325   :  { %2246 = vst [vmem:[%s4108_s5 + $0x38] sm:$0xff] %v2230_v15 }
 0x326   :  { %2247 = vst [vmem:[%s4108_s5 + $0x40] sm:$0xff] %v2231_v10 }
 0x327   :  { %2248 = vst [vmem:[%s4108_s5 + $0x48] sm:$0xff] %v2232_v13 }
 0x328   :  { %2249 = vst [vmem:[%s4108_s5 + $0x50] sm:$0xff] %v2233_v62 }
 0x329   :  { %2250 = vst [vmem:[%s4108_s5 + $0x58] sm:$0xff] %v2234_v17 }
 0x32a   :  { %2251 = vst [vmem:[%s4108_s5 + $0x60] sm:$0xff] %v2235_v11 }
 0x32b   :  { %2252 = vst [vmem:[%s4108_s5 + $0x68] sm:$0xff] %v2236_v3 }
 0x32c   :  { %2253 = vst [vmem:[%s4108_s5 + $0x70] sm:$0xff] %v2237_v63 }
 0x32d   :  { %2254 = vst [vmem:[%s4108_s5 + $0x78] sm:$0xff] %v2238_v16 }

</bundles_post_ra>
